<compile_context>
chip_gen: v6e
topology: v6e:2x2x1
jax: 0.10.0
libtpu: 0.0.40
codegen_flags: <defaults>
</compile_context>

<pallas_src>
import functools
import math

import jax
import jax.numpy as jnp
from jax.experimental import pallas as pl
from jax.experimental.pallas import tpu as pltpu


_TM = 512                           # row tile (N*H*W positions) for 1x1 matmuls
_LANE = 128                         # lane (channel) padding granularity
_VMEM_BUDGET = 24 * 1024 * 1024     # target double-buffered working set
_VMEM_LIMIT = 48 * 1024 * 1024      # explicit scoped-VMEM limit (v5e/v6e/v7x safe)


# ----------------------------------------------------------------------------
# Small helpers
# ----------------------------------------------------------------------------
def _round_up(x, m):
    return (x + m - 1) // m * m


def _pad_axis(a, axis, multiple):
    pad = (-a.shape[axis]) % multiple
    if pad == 0:
        return a
    widths = [(0, 0)] * a.ndim
    widths[axis] = (0, pad)
    return jnp.pad(a, widths)


def _cost(flops, arrays, out_shape, out_dtype):
    nbytes = sum(int(a.size) * a.dtype.itemsize for a in arrays)
    nbytes += math.prod(out_shape) * jnp.dtype(out_dtype).itemsize
    return pl.CostEstimate(flops=int(flops), transcendentals=0,
                           bytes_accessed=int(nbytes))


def _mm_compiler_params():
    return pltpu.CompilerParams(
        dimension_semantics=("parallel", "parallel"),
        vmem_limit_bytes=_VMEM_LIMIT)


def _choose_tm(m):
    return _TM if m >= _TM else _round_up(m, 16)


def _pick_tn(cpad, per_tn_bytes, fixed_bytes):
    """Largest multiple-of-128 divisor of cpad whose working set fits budget."""
    cands = [c for c in range(_LANE, cpad + 1, _LANE) if cpad % c == 0]
    for tn in sorted(cands, reverse=True):
        if fixed_bytes + per_tn_bytes * tn <= _VMEM_BUDGET:
            return tn
    return _LANE


# ----------------------------------------------------------------------------
# Pallas kernels (BN scale already folded into weights; epilogue = bias+ReLU)
# ----------------------------------------------------------------------------
def _mm_bias_kernel(x_ref, w_ref, b_ref, o_ref, *, relu):
    acc = jnp.dot(x_ref[...], w_ref[...], preferred_element_type=jnp.float32)
    out = acc + b_ref[...]
    if relu:
        out = jnp.maximum(out, 0.0)
    o_ref[...] = out.astype(o_ref.dtype)


def _mm_bias_res_kernel(x_ref, w_ref, b_ref, res_ref, o_ref):
    acc = jnp.dot(x_ref[...], w_ref[...], preferred_element_type=jnp.float32)
    out = acc + b_ref[...] + res_ref[...].astype(jnp.float32)
    o_ref[...] = jnp.maximum(out, 0.0).astype(o_ref.dtype)


def _mm_bias_dual_kernel(x_ref, w_ref, b_ref, xs_ref, ws_ref, bs_ref, o_ref):
    main = jnp.dot(x_ref[...], w_ref[...], preferred_element_type=jnp.float32)
    main = main + b_ref[...]
    sc = jnp.dot(xs_ref[...], ws_ref[...], preferred_element_type=jnp.float32)
    sc = sc + bs_ref[...]
    o_ref[...] = jnp.maximum(main + sc, 0.0).astype(o_ref.dtype)


def _conv3x3_kernel(x_ref, w_ref, b_ref, o_ref, *, hout, wrow, rows_per_chunk):
    # x_ref: (1, MflatP, Cp)   w_ref: (9, Cp, Cop)   b_ref: (1, Cop)
    # o_ref: (1, hout*wrow, Cop);  wrow = W + 2 (2 junk cols per row, dropped
    # by the caller).  Every tap is a contiguous shifted view of the flattened
    # padded image -- no strided per-tap relayouts.
    cop = w_ref.shape[-1]
    bias = b_ref[...]
    for h0 in range(0, hout, rows_per_chunk):
        rows = min(rows_per_chunk, hout - h0)
        m = rows * wrow
        acc = jnp.zeros((m, cop), jnp.float32)
        for kh in range(3):
            for kw in range(3):
                off = (h0 + kh) * wrow + kw
                xin = x_ref[0, pl.ds(off, m), :]
                acc = acc + jnp.dot(xin, w_ref[kh * 3 + kw],
                                    preferred_element_type=jnp.float32)
        out = jnp.maximum(acc + bias, 0.0)
        o_ref[0, pl.ds(h0 * wrow, m), :] = out.astype(o_ref.dtype)


# ----------------------------------------------------------------------------
# pallas_call wrappers
# ----------------------------------------------------------------------------
def fused_matmul_bias(x2d, w, bias, *, relu=True, out_dtype=jnp.bfloat16):
    """y = relu?( x2d @ w + bias );  bf16 MXU operands, f32 accumulation."""
    M, _ = x2d.shape
    cout = w.shape[1]
    tm = _choose_tm(M)
    x_p = _pad_axis(_pad_axis(x2d.astype(jnp.bfloat16), 1, _LANE), 0, tm)
    w_p = _pad_axis(_pad_axis(w.astype(jnp.bfloat16), 0, _LANE), 1, _LANE)
    b_p = _pad_axis(bias.astype(jnp.float32), 1, _LANE)
    mpad, kpad = x_p.shape
    cpad = w_p.shape[1]
    assert kpad == w_p.shape[0]
    out_isz = jnp.dtype(out_dtype).itemsize
    per_tn = 2 * (kpad * 2 + 4 + tm * out_isz)
    fixed = 2 * tm * kpad * 2
    tn = _pick_tn(cpad, per_tn, fixed)
    grid = (cpad // tn, mpad // tm)          # weights invariant along fast axis
    out = pl.pallas_call(
        functools.partial(_mm_bias_kernel, relu=relu),
        out_shape=jax.ShapeDtypeStruct((mpad, cpad), out_dtype),
        grid=grid,
        in_specs=[
            pl.BlockSpec((tm, kpad), lambda j, i: (i, 0)),
            pl.BlockSpec((kpad, tn), lambda j, i: (0, j)),
            pl.BlockSpec((1, tn), lambda j, i: (0, j)),
        ],
        out_specs=pl.BlockSpec((tm, tn), lambda j, i: (i, j)),
        compiler_params=_mm_compiler_params(),
        cost_estimate=_cost(2 * mpad * kpad * cpad, [x_p, w_p, b_p],
                            (mpad, cpad), out_dtype),
    )(x_p, w_p, b_p)
    if (mpad, cpad) != (M, cout):
        out = out[:M, :cout]
    return out


def fused_matmul_bias_res(x2d, w, bias, res2d, *, out_dtype=jnp.float32):
    """y = relu( x2d @ w + bias + res2d )   (identity shortcut, bf16 residual)."""
    M, _ = x2d.shape
    cout = w.shape[1]
    tm = _choose_tm(M)
    x_p = _pad_axis(_pad_axis(x2d.astype(jnp.bfloat16), 1, _LANE), 0, tm)
    w_p = _pad_axis(_pad_axis(w.astype(jnp.bfloat16), 0, _LANE), 1, _LANE)
    b_p = _pad_axis(bias.astype(jnp.float32), 1, _LANE)
    r_p = _pad_axis(_pad_axis(res2d.astype(jnp.bfloat16), 1, _LANE), 0, tm)
    mpad, kpad = x_p.shape
    cpad = w_p.shape[1]
    assert kpad == w_p.shape[0] and r_p.shape == (mpad, cpad)
    out_isz = jnp.dtype(out_dtype).itemsize
    per_tn = 2 * (kpad * 2 + 4 + tm * 2 + tm * out_isz)
    fixed = 2 * tm * kpad * 2
    tn = _pick_tn(cpad, per_tn, fixed)
    grid = (cpad // tn, mpad // tm)
    out = pl.pallas_call(
        _mm_bias_res_kernel,
        out_shape=jax.ShapeDtypeStruct((mpad, cpad), out_dtype),
        grid=grid,
        in_specs=[
            pl.BlockSpec((tm, kpad), lambda j, i: (i, 0)),
            pl.BlockSpec((kpad, tn), lambda j, i: (0, j)),
            pl.BlockSpec((1, tn), lambda j, i: (0, j)),
            pl.BlockSpec((tm, tn), lambda j, i: (i, j)),
        ],
        out_specs=pl.BlockSpec((tm, tn), lambda j, i: (i, j)),
        compiler_params=_mm_compiler_params(),
        cost_estimate=_cost(2 * mpad * kpad * cpad, [x_p, w_p, b_p, r_p],
                            (mpad, cpad), out_dtype),
    )(x_p, w_p, b_p, r_p)
    if (mpad, cpad) != (M, cout):
        out = out[:M, :cout]
    return out


def fused_matmul_bias_dual(x2d, w, bias, xs2d, ws, bs, *, out_dtype=jnp.float32):
    """y = relu( x2d@w + bias + xs2d@ws + bs )   (projection shortcut)."""
    M, _ = x2d.shape
    cout = w.shape[1]
    tm = _choose_tm(M)
    x_p = _pad_axis(_pad_axis(x2d.astype(jnp.bfloat16), 1, _LANE), 0, tm)
    xs_p = _pad_axis(_pad_axis(xs2d.astype(jnp.bfloat16), 1, _LANE), 0, tm)
    w_p = _pad_axis(_pad_axis(w.astype(jnp.bfloat16), 0, _LANE), 1, _LANE)
    ws_p = _pad_axis(_pad_axis(ws.astype(jnp.bfloat16), 0, _LANE), 1, _LANE)
    b_p = _pad_axis(bias.astype(jnp.float32), 1, _LANE)
    bs_p = _pad_axis(bs.astype(jnp.float32), 1, _LANE)
    mpad, k1p = x_p.shape
    k2p = xs_p.shape[1]
    cpad = w_p.shape[1]
    assert k1p == w_p.shape[0] and k2p == ws_p.shape[0]
    assert cpad == ws_p.shape[1] and xs_p.shape[0] == mpad
    out_isz = jnp.dtype(out_dtype).itemsize
    per_tn = 2 * ((k1p + k2p) * 2 + 8 + tm * out_isz)
    fixed = 2 * tm * (k1p + k2p) * 2
    tn = _pick_tn(cpad, per_tn, fixed)
    grid = (cpad // tn, mpad // tm)
    out = pl.pallas_call(
        _mm_bias_dual_kernel,
        out_shape=jax.ShapeDtypeStruct((mpad, cpad), out_dtype),
        grid=grid,
        in_specs=[
            pl.BlockSpec((tm, k1p), lambda j, i: (i, 0)),
            pl.BlockSpec((k1p, tn), lambda j, i: (0, j)),
            pl.BlockSpec((1, tn), lambda j, i: (0, j)),
            pl.BlockSpec((tm, k2p), lambda j, i: (i, 0)),
            pl.BlockSpec((k2p, tn), lambda j, i: (0, j)),
            pl.BlockSpec((1, tn), lambda j, i: (0, j)),
        ],
        out_specs=pl.BlockSpec((tm, tn), lambda j, i: (i, j)),
        compiler_params=_mm_compiler_params(),
        cost_estimate=_cost(2 * mpad * (k1p + k2p) * cpad,
                            [x_p, w_p, b_p, xs_p, ws_p, bs_p],
                            (mpad, cpad), out_dtype),
    )(x_p, w_p, b_p, xs_p, ws_p, bs_p)
    if (mpad, cpad) != (M, cout):
        out = out[:M, :cout]
    return out


def conv3x3_bn_relu(x_nhwc, w_taps, bias, *, out_dtype=jnp.bfloat16):
    """3x3 / stride 1 / pad 1 conv (BN scale folded into w_taps) + bias + ReLU.

    Returns (N, H, W, Cop) with channels lane-padded to a multiple of 128; the
    padded channels are exactly zero and are consumed by the next 1x1 matmul
    (which zero-pads its weight K dim to match).
    """
    N, H, W, C = x_nhwc.shape
    cout = w_taps.shape[-1]
    cp = _round_up(C, _LANE)
    cop = _round_up(cout, _LANE)
    wrow = W + 2
    mflat = (H + 2) * wrow
    mflat_p = _round_up(mflat + 2, 16)      # +2 so the (kh=2, kw=2) view is in range
    mout = H * wrow

    xp = jnp.pad(x_nhwc.astype(jnp.bfloat16),
                 ((0, 0), (1, 1), (1, 1), (0, cp - C)))
    xflat = jnp.pad(xp.reshape(N, mflat, cp),
                    ((0, 0), (0, mflat_p - mflat), (0, 0)))
    w_p = jnp.pad(w_taps.astype(jnp.bfloat16),
                  ((0, 0), (0, cp - C), (0, cop - cout)))
    b_p = jnp.pad(bias.astype(jnp.float32), ((0, 0), (0, cop - cout)))

    rows_per_chunk = max(1, min(H, 512 // wrow))   # bound the f32 accumulator

    out = pl.pallas_call(
        functools.partial(_conv3x3_kernel, hout=H, wrow=wrow,
                          rows_per_chunk=rows_per_chunk),
        out_shape=jax.ShapeDtypeStruct((N, mout, cop), out_dtype),
        grid=(N,),
        in_specs=[
            pl.BlockSpec((1, mflat_p, cp), lambda n: (n, 0, 0)),
            pl.BlockSpec((9, cp, cop), lambda n: (0, 0, 0)),
            pl.BlockSpec((1, cop), lambda n: (0, 0)),
        ],
        out_specs=pl.BlockSpec((1, mout, cop), lambda n: (n, 0, 0)),
        compiler_params=pltpu.CompilerParams(
            dimension_semantics=("parallel",),
            vmem_limit_bytes=_VMEM_LIMIT),
        cost_estimate=_cost(2 * N * mout * 9 * cp * cop,
                            [xflat, w_p, b_p], (N, mout, cop), out_dtype),
    )(xflat, w_p, b_p)
    # Drop the 2 junk columns per row; keep the zero-padded channels.
    return out.reshape(N, H, wrow, cop)[:, :, :W, :]


# ----------------------------------------------------------------------------
# Fallback glue: im2col for the 3x3 conv when stride != 1 (NHWC, pad=1).
# ----------------------------------------------------------------------------
def _im2col_3x3(x, stride):
    N, H, W, C = x.shape
    hout = (H + 2 - 3) // stride + 1
    wout = (W + 2 - 3) // stride + 1
    xp = jnp.pad(x, ((0, 0), (1, 1), (1, 1), (0, 0)))
    cols = []
    for kh in range(3):
        for kw in range(3):
            cols.append(
                xp[:, kh:kh + (hout - 1) * stride + 1:stride,
                      kw:kw + (wout - 1) * stride + 1:stride, :])
    patches = jnp.stack(cols, axis=3)                 # (N, hout, wout, 9, C)
    return patches.reshape(N * hout * wout, 9 * C), hout, wout


# ----------------------------------------------------------------------------
# Parameter construction (deterministic).  Inference BN folded: scale into the
# weights, shift into a bias vector.
# ----------------------------------------------------------------------------
def _fold_bn(gamma, beta, mean, var, eps=1e-5):
    scale = gamma / jnp.sqrt(var + eps)
    bias = beta - mean * scale
    return scale.astype(jnp.float32), bias.astype(jnp.float32)


def make_bottleneck_params(key, in_planes, planes, stride=1, expansion=4):
    out_planes = expansion * planes
    ks = jax.random.split(key, 8)
    k = iter(ks)

    def bn_params(kk, c):
        k1, k2, k3, k4 = jax.random.split(kk, 4)
        gamma = jax.random.uniform(k1, (c,), minval=0.5, maxval=1.5)
        beta = 0.1 * jax.random.normal(k2, (c,))
        mean = 0.1 * jax.random.normal(k3, (c,))
        var = jax.random.uniform(k4, (c,), minval=0.5, maxval=1.5)
        return _fold_bn(gamma, beta, mean, var)

    p = {}
    # conv1: 1x1, in_planes -> planes   (Cin, Cout) weight with BN scale folded
    w1 = 0.1 * jax.random.normal(next(k), (in_planes, planes))
    s1, b1 = bn_params(next(k), planes)
    p["w1"] = (w1 * s1[None, :]).astype(jnp.bfloat16)
    p["b1"] = b1[None, :]
    # conv2: 3x3, planes -> planes      tap-major (9, Cin, Cout), scale folded
    w2 = 0.1 * jax.random.normal(next(k), (3, 3, planes, planes))
    s2, b2 = bn_params(next(k), planes)
    p["w2"] = (w2 * s2[None, None, None, :]).reshape(9, planes, planes
                                                     ).astype(jnp.bfloat16)
    p["b2"] = b2[None, :]
    # conv3: 1x1, planes -> 4*planes
    w3 = 0.1 * jax.random.normal(next(k), (planes, out_planes))
    s3, b3 = bn_params(next(k), out_planes)
    p["w3"] = (w3 * s3[None, :]).astype(jnp.bfloat16)
    p["b3"] = b3[None, :]
    # projection shortcut (used when stride != 1 or in_planes != 4*planes)
    ws = 0.1 * jax.random.normal(next(k), (in_planes, out_planes))
    ss, bs = bn_params(next(k), out_planes)
    p["ws"] = (ws * ss[None, :]).astype(jnp.bfloat16)
    p["bs"] = bs[None, :]
    return p


# ----------------------------------------------------------------------------
# Bottleneck forward (NCHW in / NCHW out, like the PyTorch module).
# ----------------------------------------------------------------------------
def bottleneck_forward(x_nchw, params, stride=1, expansion=4,
                       out_dtype=jnp.float32):
    x = jnp.transpose(x_nchw, (0, 2, 3, 1))                      # NHWC
    N, H, W, cin = x.shape
    planes = params["w1"].shape[1]
    out_planes = expansion * planes
    x_bf = x.astype(jnp.bfloat16)

    # conv1 (1x1) + bn1 + relu -> bf16 intermediate
    h = fused_matmul_bias(x_bf.reshape(N * H * W, cin),
                          params["w1"], params["b1"],
                          relu=True, out_dtype=jnp.bfloat16)
    h = h.reshape(N, H, W, planes)

    # conv2 (3x3, pad=1) + bn2 + relu
    if stride == 1:
        h = conv3x3_bn_relu(h, params["w2"], params["b2"])  # channels lane-padded
        hout, wout = H, W
        h2d = h.reshape(N * hout * wout, h.shape[-1])
    else:
        # TODO(synk): fold the stride into the flat-offset conv kernel
        #             (phase-decomposed taps) instead of HBM im2col.
        patches, hout, wout = _im2col_3x3(h, stride)
        h = fused_matmul_bias(patches, params["w2"].reshape(-1, planes),
                              params["b2"], relu=True, out_dtype=jnp.bfloat16)
        h2d = h

    # conv3 (1x1) + bn3 + shortcut + add + relu, fused in one kernel
    if stride != 1 or cin != out_planes:
        xs = x_bf[:, ::stride, ::stride, :].reshape(N * hout * wout, cin)
        y = fused_matmul_bias_dual(h2d, params["w3"], params["b3"],
                                   xs, params["ws"], params["bs"],
                                   out_dtype=out_dtype)
    else:
        res = x_bf.reshape(N * hout * wout, out_planes)          # bf16 residual
        y = fused_matmul_bias_res(h2d, params["w3"], params["b3"], res,
                                  out_dtype=out_dtype)

    y = y.reshape(N, hout, wout, out_planes)
    return jnp.transpose(y, (0, 3, 1, 2))                        # back to NCHW


# ----------------------------------------------------------------------------
# Pure-JAX (XLA) reference with matching bf16-operand / f32-accum numerics.
# ----------------------------------------------------------------------------
def reference_forward(x_nchw, params, stride=1, expansion=4):
    f32 = jnp.float32
    x = jnp.transpose(x_nchw, (0, 2, 3, 1))
    cin = x.shape[-1]
    planes = params["w1"].shape[1]
    out_planes = expansion * planes
    xb = x.astype(jnp.bfloat16)

    h = jnp.einsum("nhwc,cd->nhwd", xb.astype(f32), params["w1"].astype(f32))
    h = jnp.maximum(h + params["b1"], 0.0).astype(jnp.bfloat16)

    w2 = params["w2"].reshape(3, 3, planes, planes).astype(f32)
    h2 = jax.lax.conv_general_dilated(
        h.astype(f32), w2, window_strides=(stride, stride),
        padding=((1, 1), (1, 1)),
        dimension_numbers=("NHWC", "HWIO", "NHWC"))
    h2 = jnp.maximum(h2 + params["b2"], 0.0).astype(jnp.bfloat16)

    y = jnp.einsum("nhwc,cd->nhwd", h2.astype(f32), params["w3"].astype(f32))
    y = y + params["b3"]
    if stride != 1 or cin != out_planes:
        xs = xb[:, ::stride, ::stride, :].astype(f32)
        y = y + jnp.einsum("nhwc,cd->nhwd", xs, params["ws"].astype(f32))
        y = y + params["bs"]
    else:
        y = y + xb.astype(f32)
    y = jnp.maximum(y, 0.0)
    return jnp.transpose(y, (0, 3, 1, 2))


# ----------------------------------------------------------------------------
if __name__ == "__main__":
    key = jax.random.PRNGKey(0)
    expansion = 4

    configs = [
        # (name, N, in_planes, planes, H, W, stride)
        ("proj_s1",  2, 4,  4, 16, 16, 1),   # projection shortcut, stride 1
        ("identity", 2, 16, 4, 16, 16, 1),   # identity shortcut
        ("proj_s2",  2, 8,  4, 16, 16, 2),   # projection shortcut, stride 2
    ]
    for i, (name, N, cin, planes, H, W, stride) in enumerate(configs):
        kx, kp = jax.random.split(jax.random.fold_in(key, i))
        x = jax.random.normal(kx, (N, cin, H, W), jnp.float32)
        params = make_bottleneck_params(kp, cin, planes, stride=stride)

        fwd = jax.jit(functools.partial(bottleneck_forward, stride=stride))
        y = jax.block_until_ready(fwd(x, params))

        ho = (H + 2 - 3) // stride + 1
        wo = (W + 2 - 3) // stride + 1
        assert y.shape == (N, expansion * planes, ho, wo), (name, y.shape)
        assert bool(jnp.all(jnp.isfinite(y))), name
        assert bool(jnp.all(y >= 0.0)), name          # final ReLU

        y_ref = reference_forward(x, params, stride=stride)
        err = float(jnp.max(jnp.abs(y.astype(jnp.float32)
                                    - y_ref.astype(jnp.float32))))
        assert err < 2e-2, (name, err)

    print("KERNEL_OK")
</pallas_src>

<mosaic_0001>
module attributes {stable_mosaic.version = 11 : i64} {
  func.func @_mm_bias_kernel(%arg0: i32, %arg1: i32, %arg2: memref<512x128xbf16, #tpu.memory_space<vmem>>, %arg3: memref<128x128xbf16, #tpu.memory_space<vmem>>, %arg4: memref<1x128xf32, #tpu.memory_space<vmem>>, %arg5: memref<512x128xbf16, #tpu.memory_space<vmem>>) attributes {dimension_semantics = [#tpu.dimension_semantics<parallel>, #tpu.dimension_semantics<parallel>], iteration_bounds = array<i64: 1, 1>, scalar_prefetch = 0 : i64, scratch_operands = 0 : i64, tpu.core_type = #tpu.core_type<tc>, window_params = [{transform_indices = @transform_0, window_bounds = array<i64: 512, 128>}, {transform_indices = @transform_1, window_bounds = array<i64: 128, 128>}, {transform_indices = @transform_2, window_bounds = array<i64: 1, 128>}, {transform_indices = @transform_3, window_bounds = array<i64: 512, 128>}]} {
    %c0 = arith.constant 0 : index
    %c0_0 = arith.constant 0 : index
    %0 = vector.load %arg2[%c0, %c0_0] : memref<512x128xbf16, #tpu.memory_space<vmem>>, vector<512x128xbf16>
    %c0_1 = arith.constant 0 : index
    %c0_2 = arith.constant 0 : index
    %1 = vector.load %arg3[%c0_1, %c0_2] : memref<128x128xbf16, #tpu.memory_space<vmem>>, vector<128x128xbf16>
    %cst = arith.constant dense<0.000000e+00> : vector<512x128xf32>
    %2 = tpu.matmul %0, %1, %cst {dimension_numbers = #tpu.dot_dimension_numbers<[1], [0], [0], [1], [0, 0, 1, 1], [], []>} : vector<512x128xbf16>, vector<128x128xbf16>, vector<512x128xf32> -> vector<512x128xf32>
    %c0_3 = arith.constant 0 : index
    %c0_4 = arith.constant 0 : index
    %3 = vector.load %arg4[%c0_3, %c0_4] : memref<1x128xf32, #tpu.memory_space<vmem>>, vector<1x128xf32>
    %4 = vector.broadcast %3 : vector<1x128xf32> to vector<512x128xf32>
    %5 = arith.addf %2, %4 : vector<512x128xf32>
    %cst_5 = arith.constant 0.000000e+00 : f32
    %6 = vector.broadcast %cst_5 : f32 to vector<512x128xf32>
    %7 = arith.maximumf %5, %6 : vector<512x128xf32>
    %8 = arith.truncf %7 : vector<512x128xf32> to vector<512x128xbf16>
    %c0_6 = arith.constant 0 : index
    %c0_7 = arith.constant 0 : index
    %9 = vector.load %arg5[%c0_6, %c0_7] : memref<512x128xbf16, #tpu.memory_space<vmem>>, vector<512x128xbf16>
    tpu.vector_store %arg5[%c0_6, %c0_7], %8 {strides = array<i32>} : memref<512x128xbf16, #tpu.memory_space<vmem>>, vector<512x128xbf16>,
    return
  }
  func.func @transform_0(%arg0: i32, %arg1: i32) -> (i32, i32) {
    %c0_i32 = arith.constant 0 : i32
    %c0_i32_0 = arith.constant 0 : i32
    return %arg1, %c0_i32 : i32, i32
  }
  func.func @transform_1(%arg0: i32, %arg1: i32) -> (i32, i32) {
    %c0_i32 = arith.constant 0 : i32
    %c0_i32_0 = arith.constant 0 : i32
    return %c0_i32, %arg0 : i32, i32
  }
  func.func @transform_2(%arg0: i32, %arg1: i32) -> (i32, i32) {
    %c0_i32 = arith.constant 0 : i32
    %c0_i32_0 = arith.constant 0 : i32
    return %c0_i32, %arg0 : i32, i32
  }
  func.func @transform_3(%arg0: i32, %arg1: i32) -> (i32, i32) {
    %c0_i32 = arith.constant 0 : i32
    return %arg1, %arg0 : i32, i32
  }
}

module attributes {stable_mosaic.version = 11 : i64} {
  func.func @_conv3x3_kernel(%arg0: i32, %arg1: memref<1x336x128xbf16, #tpu.memory_space<vmem>>, %arg2: memref<9x128x128xbf16, #tpu.memory_space<vmem>>, %arg3: memref<1x128xf32, #tpu.memory_space<vmem>>, %arg4: memref<1x288x128xbf16, #tpu.memory_space<vmem>>) attributes {dimension_semantics = [#tpu.dimension_semantics<parallel>], iteration_bounds = array<i64: 2>, scalar_prefetch = 0 : i64, scratch_operands = 0 : i64, tpu.core_type = #tpu.core_type<tc>, window_params = [{transform_indices = @transform_0, window_bounds = array<i64: 1, 336, 128>}, {pipeline_mode = #tpu.pipeline_mode<synchronous>, transform_indices = @transform_1, window_bounds = array<i64: 9, 128, 128>}, {pipeline_mode = #tpu.pipeline_mode<synchronous>, transform_indices = @transform_2, window_bounds = array<i64: 1, 128>}, {transform_indices = @transform_3, window_bounds = array<i64: 1, 288, 128>}]} {
    %c0 = arith.constant 0 : index
    %c0_0 = arith.constant 0 : index
    %0 = vector.load %arg3[%c0, %c0_0] : memref<1x128xf32, #tpu.memory_space<vmem>>, vector<1x128xf32>
    %cst = arith.constant 0.000000e+00 : f32
    %1 = vector.broadcast %cst : f32 to vector<288x128xf32>
    %c0_1 = arith.constant 0 : index
    %c0_2 = arith.constant 0 : index
    %c0_3 = arith.constant 0 : index
    %2 = vector.load %arg1[%c0_1, %c0_2, %c0_3] : memref<1x336x128xbf16, #tpu.memory_space<vmem>>, vector<1x288x128xbf16>
    %3 = vector.shape_cast %2 : vector<1x288x128xbf16> to vector<288x128xbf16>
    %c0_4 = arith.constant 0 : index
    %c0_5 = arith.constant 0 : index
    %c0_6 = arith.constant 0 : index
    %4 = vector.load %arg2[%c0_4, %c0_5, %c0_6] : memref<9x128x128xbf16, #tpu.memory_space<vmem>>, vector<1x128x128xbf16>
    %5 = vector.shape_cast %4 : vector<1x128x128xbf16> to vector<128x128xbf16>
    %cst_7 = arith.constant dense<0.000000e+00> : vector<288x128xf32>
    %6 = tpu.matmul %3, %5, %cst_7 {dimension_numbers = #tpu.dot_dimension_numbers<[1], [0], [0], [1], [0, 0, 1, 1], [], []>} : vector<288x128xbf16>, vector<128x128xbf16>, vector<288x128xf32> -> vector<288x128xf32>
    %7 = arith.addf %1, %6 : vector<288x128xf32>
    %c0_8 = arith.constant 0 : index
    %c1 = arith.constant 1 : index
    %c0_9 = arith.constant 0 : index
    %8 = vector.load %arg1[%c0_8, %c1, %c0_9] : memref<1x336x128xbf16, #tpu.memory_space<vmem>>, vector<1x288x128xbf16>
    %9 = vector.shape_cast %8 : vector<1x288x128xbf16> to vector<288x128xbf16>
    %c1_10 = arith.constant 1 : index
    %c0_11 = arith.constant 0 : index
    %c0_12 = arith.constant 0 : index
    %10 = vector.load %arg2[%c1_10, %c0_11, %c0_12] : memref<9x128x128xbf16, #tpu.memory_space<vmem>>, vector<1x128x128xbf16>
    %11 = vector.shape_cast %10 : vector<1x128x128xbf16> to vector<128x128xbf16>
    %cst_13 = arith.constant dense<0.000000e+00> : vector<288x128xf32>
    %12 = tpu.matmul %9, %11, %cst_13 {dimension_numbers = #tpu.dot_dimension_numbers<[1], [0], [0], [1], [0, 0, 1, 1], [], []>} : vector<288x128xbf16>, vector<128x128xbf16>, vector<288x128xf32> -> vector<288x128xf32>
    %13 = arith.addf %7, %12 : vector<288x128xf32>
    %c0_14 = arith.constant 0 : index
    %c2 = arith.constant 2 : index
    %c0_15 = arith.constant 0 : index
    %14 = vector.load %arg1[%c0_14, %c2, %c0_15] : memref<1x336x128xbf16, #tpu.memory_space<vmem>>, vector<1x288x128xbf16>
    %15 = vector.shape_cast %14 : vector<1x288x128xbf16> to vector<288x128xbf16>
    %c2_16 = arith.constant 2 : index
    %c0_17 = arith.constant 0 : index
    %c0_18 = arith.constant 0 : index
    %16 = vector.load %arg2[%c2_16, %c0_17, %c0_18] : memref<9x128x128xbf16, #tpu.memory_space<vmem>>, vector<1x128x128xbf16>
    %17 = vector.shape_cast %16 : vector<1x128x128xbf16> to vector<128x128xbf16>
    %cst_19 = arith.constant dense<0.000000e+00> : vector<288x128xf32>
    %18 = tpu.matmul %15, %17, %cst_19 {dimension_numbers = #tpu.dot_dimension_numbers<[1], [0], [0], [1], [0, 0, 1, 1], [], []>} : vector<288x128xbf16>, vector<128x128xbf16>, vector<288x128xf32> -> vector<288x128xf32>
    %19 = arith.addf %13, %18 : vector<288x128xf32>
    %c0_20 = arith.constant 0 : index
    %c18 = arith.constant 18 : index
    %c0_21 = arith.constant 0 : index
    %20 = vector.load %arg1[%c0_20, %c18, %c0_21] : memref<1x336x128xbf16, #tpu.memory_space<vmem>>, vector<1x288x128xbf16>
    %21 = vector.shape_cast %20 : vector<1x288x128xbf16> to vector<288x128xbf16>
    %c3 = arith.constant 3 : index
    %c0_22 = arith.constant 0 : index
    %c0_23 = arith.constant 0 : index
    %22 = vector.load %arg2[%c3, %c0_22, %c0_23] : memref<9x128x128xbf16, #tpu.memory_space<vmem>>, vector<1x128x128xbf16>
    %23 = vector.shape_cast %22 : vector<1x128x128xbf16> to vector<128x128xbf16>
    %cst_24 = arith.constant dense<0.000000e+00> : vector<288x128xf32>
    %24 = tpu.matmul %21, %23, %cst_24 {dimension_numbers = #tpu.dot_dimension_numbers<[1], [0], [0], [1], [0, 0, 1, 1], [], []>} : vector<288x128xbf16>, vector<128x128xbf16>, vector<288x128xf32> -> vector<288x128xf32>
    %25 = arith.addf %19, %24 : vector<288x128xf32>
    %c0_25 = arith.constant 0 : index
    %c19 = arith.constant 19 : index
    %c0_26 = arith.constant 0 : index
    %26 = vector.load %arg1[%c0_25, %c19, %c0_26] : memref<1x336x128xbf16, #tpu.memory_space<vmem>>, vector<1x288x128xbf16>
    %27 = vector.shape_cast %26 : vector<1x288x128xbf16> to vector<288x128xbf16>
    %c4 = arith.constant 4 : index
    %c0_27 = arith.constant 0 : index
    %c0_28 = arith.constant 0 : index
    %28 = vector.load %arg2[%c4, %c0_27, %c0_28] : memref<9x128x128xbf16, #tpu.memory_space<vmem>>, vector<1x128x128xbf16>
    %29 = vector.shape_cast %28 : vector<1x128x128xbf16> to vector<128x128xbf16>
    %cst_29 = arith.constant dense<0.000000e+00> : vector<288x128xf32>
    %30 = tpu.matmul %27, %29, %cst_29 {dimension_numbers = #tpu.dot_dimension_numbers<[1], [0], [0], [1], [0, 0, 1, 1], [], []>} : vector<288x128xbf16>, vector<128x128xbf16>, vector<288x128xf32> -> vector<288x128xf32>
    %31 = arith.addf %25, %30 : vector<288x128xf32>
    %c0_30 = arith.constant 0 : index
    %c20 = arith.constant 20 : index
    %c0_31 = arith.constant 0 : index
    %32 = vector.load %arg1[%c0_30, %c20, %c0_31] : memref<1x336x128xbf16, #tpu.memory_space<vmem>>, vector<1x288x128xbf16>
    %33 = vector.shape_cast %32 : vector<1x288x128xbf16> to vector<288x128xbf16>
    %c5 = arith.constant 5 : index
    %c0_32 = arith.constant 0 : index
    %c0_33 = arith.constant 0 : index
    %34 = vector.load %arg2[%c5, %c0_32, %c0_33] : memref<9x128x128xbf16, #tpu.memory_space<vmem>>, vector<1x128x128xbf16>
    %35 = vector.shape_cast %34 : vector<1x128x128xbf16> to vector<128x128xbf16>
    %cst_34 = arith.constant dense<0.000000e+00> : vector<288x128xf32>
    %36 = tpu.matmul %33, %35, %cst_34 {dimension_numbers = #tpu.dot_dimension_numbers<[1], [0], [0], [1], [0, 0, 1, 1], [], []>} : vector<288x128xbf16>, vector<128x128xbf16>, vector<288x128xf32> -> vector<288x128xf32>
    %37 = arith.addf %31, %36 : vector<288x128xf32>
    %c0_35 = arith.constant 0 : index
    %c36 = arith.constant 36 : index
    %c0_36 = arith.constant 0 : index
    %38 = vector.load %arg1[%c0_35, %c36, %c0_36] : memref<1x336x128xbf16, #tpu.memory_space<vmem>>, vector<1x288x128xbf16>
    %39 = vector.shape_cast %38 : vector<1x288x128xbf16> to vector<288x128xbf16>
    %c6 = arith.constant 6 : index
    %c0_37 = arith.constant 0 : index
    %c0_38 = arith.constant 0 : index
    %40 = vector.load %arg2[%c6, %c0_37, %c0_38] : memref<9x128x128xbf16, #tpu.memory_space<vmem>>, vector<1x128x128xbf16>
    %41 = vector.shape_cast %40 : vector<1x128x128xbf16> to vector<128x128xbf16>
    %cst_39 = arith.constant dense<0.000000e+00> : vector<288x128xf32>
    %42 = tpu.matmul %39, %41, %cst_39 {dimension_numbers = #tpu.dot_dimension_numbers<[1], [0], [0], [1], [0, 0, 1, 1], [], []>} : vector<288x128xbf16>, vector<128x128xbf16>, vector<288x128xf32> -> vector<288x128xf32>
    %43 = arith.addf %37, %42 : vector<288x128xf32>
    %c0_40 = arith.constant 0 : index
    %c37 = arith.constant 37 : index
    %c0_41 = arith.constant 0 : index
    %44 = vector.load %arg1[%c0_40, %c37, %c0_41] : memref<1x336x128xbf16, #tpu.memory_space<vmem>>, vector<1x288x128xbf16>
    %45 = vector.shape_cast %44 : vector<1x288x128xbf16> to vector<288x128xbf16>
    %c7 = arith.constant 7 : index
    %c0_42 = arith.constant 0 : index
    %c0_43 = arith.constant 0 : index
    %46 = vector.load %arg2[%c7, %c0_42, %c0_43] : memref<9x128x128xbf16, #tpu.memory_space<vmem>>, vector<1x128x128xbf16>
    %47 = vector.shape_cast %46 : vector<1x128x128xbf16> to vector<128x128xbf16>
    %cst_44 = arith.constant dense<0.000000e+00> : vector<288x128xf32>
    %48 = tpu.matmul %45, %47, %cst_44 {dimension_numbers = #tpu.dot_dimension_numbers<[1], [0], [0], [1], [0, 0, 1, 1], [], []>} : vector<288x128xbf16>, vector<128x128xbf16>, vector<288x128xf32> -> vector<288x128xf32>
    %49 = arith.addf %43, %48 : vector<288x128xf32>
    %c0_45 = arith.constant 0 : index
    %c38 = arith.constant 38 : index
    %c0_46 = arith.constant 0 : index
    %50 = vector.load %arg1[%c0_45, %c38, %c0_46] : memref<1x336x128xbf16, #tpu.memory_space<vmem>>, vector<1x288x128xbf16>
    %51 = vector.shape_cast %50 : vector<1x288x128xbf16> to vector<288x128xbf16>
    %c8 = arith.constant 8 : index
    %c0_47 = arith.constant 0 : index
    %c0_48 = arith.constant 0 : index
    %52 = vector.load %arg2[%c8, %c0_47, %c0_48] : memref<9x128x128xbf16, #tpu.memory_space<vmem>>, vector<1x128x128xbf16>
    %53 = vector.shape_cast %52 : vector<1x128x128xbf16> to vector<128x128xbf16>
    %cst_49 = arith.constant dense<0.000000e+00> : vector<288x128xf32>
    %54 = tpu.matmul %51, %53, %cst_49 {dimension_numbers = #tpu.dot_dimension_numbers<[1], [0], [0], [1], [0, 0, 1, 1], [], []>} : vector<288x128xbf16>, vector<128x128xbf16>, vector<288x128xf32> -> vector<288x128xf32>
    %55 = arith.addf %49, %54 : vector<288x128xf32>
    %56 = vector.broadcast %0 : vector<1x128xf32> to vector<288x128xf32>
    %57 = arith.addf %55, %56 : vector<288x128xf32>
    %cst_50 = arith.constant 0.000000e+00 : f32
    %58 = vector.broadcast %cst_50 : f32 to vector<288x128xf32>
    %59 = arith.maximumf %57, %58 : vector<288x128xf32>
    %60 = arith.truncf %59 : vector<288x128xf32> to vector<288x128xbf16>
    %c0_51 = arith.constant 0 : index
    %c0_52 = arith.constant 0 : index
    %c0_53 = arith.constant 0 : index
    %61 = vector.load %arg4[%c0_51, %c0_52, %c0_53] : memref<1x288x128xbf16, #tpu.memory_space<vmem>>, vector<1x288x128xbf16>
    %62 = vector.shape_cast %61 : vector<1x288x128xbf16> to vector<288x128xbf16>
    %63 = vector.shape_cast %60 : vector<288x128xbf16> to vector<1x288x128xbf16>
    tpu.vector_store %arg4[%c0_51, %c0_52, %c0_53], %63 {strides = array<i32>} : memref<1x288x128xbf16, #tpu.memory_space<vmem>>, vector<1x288x128xbf16>,
    return
  }
  func.func @transform_0(%arg0: i32) -> (i32, i32, i32) {
    %c0_i32 = arith.constant 0 : i32
    %c0_i32_0 = arith.constant 0 : i32
    %c0_i32_1 = arith.constant 0 : i32
    return %arg0, %c0_i32, %c0_i32_0 : i32, i32, i32
  }
  func.func @transform_1(%arg0: i32) -> (i32, i32, i32) {
    %c0_i32 = arith.constant 0 : i32
    %c0_i32_0 = arith.constant 0 : i32
    %c0_i32_1 = arith.constant 0 : i32
    %c0_i32_2 = arith.constant 0 : i32
    return %c0_i32, %c0_i32_0, %c0_i32_1 : i32, i32, i32
  }
  func.func @transform_2(%arg0: i32) -> (i32, i32) {
    %c0_i32 = arith.constant 0 : i32
    %c0_i32_0 = arith.constant 0 : i32
    %c0_i32_1 = arith.constant 0 : i32
    return %c0_i32, %c0_i32_0 : i32, i32
  }
  func.func @transform_3(%arg0: i32) -> (i32, i32, i32) {
    %c0_i32 = arith.constant 0 : i32
    %c0_i32_0 = arith.constant 0 : i32
    %c0_i32_1 = arith.constant 0 : i32
    return %arg0, %c0_i32, %c0_i32_0 : i32, i32, i32
  }
}

module attributes {stable_mosaic.version = 11 : i64} {
  func.func @_mm_bias_dual_kernel(%arg0: i32, %arg1: i32, %arg2: memref<512x128xbf16, #tpu.memory_space<vmem>>, %arg3: memref<128x128xbf16, #tpu.memory_space<vmem>>, %arg4: memref<1x128xf32, #tpu.memory_space<vmem>>, %arg5: memref<512x128xbf16, #tpu.memory_space<vmem>>, %arg6: memref<128x128xbf16, #tpu.memory_space<vmem>>, %arg7: memref<1x128xf32, #tpu.memory_space<vmem>>, %arg8: memref<512x128xf32, #tpu.memory_space<vmem>>) attributes {dimension_semantics = [#tpu.dimension_semantics<parallel>, #tpu.dimension_semantics<parallel>], iteration_bounds = array<i64: 1, 1>, scalar_prefetch = 0 : i64, scratch_operands = 0 : i64, tpu.core_type = #tpu.core_type<tc>, window_params = [{transform_indices = @transform_0, window_bounds = array<i64: 512, 128>}, {transform_indices = @transform_1, window_bounds = array<i64: 128, 128>}, {transform_indices = @transform_2, window_bounds = array<i64: 1, 128>}, {transform_indices = @transform_3, window_bounds = array<i64: 512, 128>}, {transform_indices = @transform_4, window_bounds = array<i64: 128, 128>}, {transform_indices = @transform_5, window_bounds = array<i64: 1, 128>}, {transform_indices = @transform_6, window_bounds = array<i64: 512, 128>}]} {
    %c0 = arith.constant 0 : index
    %c0_0 = arith.constant 0 : index
    %0 = vector.load %arg2[%c0, %c0_0] : memref<512x128xbf16, #tpu.memory_space<vmem>>, vector<512x128xbf16>
    %c0_1 = arith.constant 0 : index
    %c0_2 = arith.constant 0 : index
    %1 = vector.load %arg3[%c0_1, %c0_2] : memref<128x128xbf16, #tpu.memory_space<vmem>>, vector<128x128xbf16>
    %cst = arith.constant dense<0.000000e+00> : vector<512x128xf32>
    %2 = tpu.matmul %0, %1, %cst {dimension_numbers = #tpu.dot_dimension_numbers<[1], [0], [0], [1], [0, 0, 1, 1], [], []>} : vector<512x128xbf16>, vector<128x128xbf16>, vector<512x128xf32> -> vector<512x128xf32>
    %c0_3 = arith.constant 0 : index
    %c0_4 = arith.constant 0 : index
    %3 = vector.load %arg4[%c0_3, %c0_4] : memref<1x128xf32, #tpu.memory_space<vmem>>, vector<1x128xf32>
    %4 = vector.broadcast %3 : vector<1x128xf32> to vector<512x128xf32>
    %5 = arith.addf %2, %4 : vector<512x128xf32>
    %c0_5 = arith.constant 0 : index
    %c0_6 = arith.constant 0 : index
    %6 = vector.load %arg5[%c0_5, %c0_6] : memref<512x128xbf16, #tpu.memory_space<vmem>>, vector<512x128xbf16>
    %c0_7 = arith.constant 0 : index
    %c0_8 = arith.constant 0 : index
    %7 = vector.load %arg6[%c0_7, %c0_8] : memref<128x128xbf16, #tpu.memory_space<vmem>>, vector<128x128xbf16>
    %cst_9 = arith.constant dense<0.000000e+00> : vector<512x128xf32>
    %8 = tpu.matmul %6, %7, %cst_9 {dimension_numbers = #tpu.dot_dimension_numbers<[1], [0], [0], [1], [0, 0, 1, 1], [], []>} : vector<512x128xbf16>, vector<128x128xbf16>, vector<512x128xf32> -> vector<512x128xf32>
    %c0_10 = arith.constant 0 : index
    %c0_11 = arith.constant 0 : index
    %9 = vector.load %arg7[%c0_10, %c0_11] : memref<1x128xf32, #tpu.memory_space<vmem>>, vector<1x128xf32>
    %10 = vector.broadcast %9 : vector<1x128xf32> to vector<512x128xf32>
    %11 = arith.addf %8, %10 : vector<512x128xf32>
    %12 = arith.addf %5, %11 : vector<512x128xf32>
    %cst_12 = arith.constant 0.000000e+00 : f32
    %13 = vector.broadcast %cst_12 : f32 to vector<512x128xf32>
    %14 = arith.maximumf %12, %13 : vector<512x128xf32>
    %c0_13 = arith.constant 0 : index
    %c0_14 = arith.constant 0 : index
    %15 = vector.load %arg8[%c0_13, %c0_14] : memref<512x128xf32, #tpu.memory_space<vmem>>, vector<512x128xf32>
    tpu.vector_store %arg8[%c0_13, %c0_14], %14 {strides = array<i32>} : memref<512x128xf32, #tpu.memory_space<vmem>>, vector<512x128xf32>,
    return
  }
  func.func @transform_0(%arg0: i32, %arg1: i32) -> (i32, i32) {
    %c0_i32 = arith.constant 0 : i32
    %c0_i32_0 = arith.constant 0 : i32
    return %arg1, %c0_i32 : i32, i32
  }
  func.func @transform_1(%arg0: i32, %arg1: i32) -> (i32, i32) {
    %c0_i32 = arith.constant 0 : i32
    %c0_i32_0 = arith.constant 0 : i32
    return %c0_i32, %arg0 : i32, i32
  }
  func.func @transform_2(%arg0: i32, %arg1: i32) -> (i32, i32) {
    %c0_i32 = arith.constant 0 : i32
    %c0_i32_0 = arith.constant 0 : i32
    return %c0_i32, %arg0 : i32, i32
  }
  func.func @transform_3(%arg0: i32, %arg1: i32) -> (i32, i32) {
    %c0_i32 = arith.constant 0 : i32
    %c0_i32_0 = arith.constant 0 : i32
    return %arg1, %c0_i32 : i32, i32
  }
  func.func @transform_4(%arg0: i32, %arg1: i32) -> (i32, i32) {
    %c0_i32 = arith.constant 0 : i32
    %c0_i32_0 = arith.constant 0 : i32
    return %c0_i32, %arg0 : i32, i32
  }
  func.func @transform_5(%arg0: i32, %arg1: i32) -> (i32, i32) {
    %c0_i32 = arith.constant 0 : i32
    %c0_i32_0 = arith.constant 0 : i32
    return %c0_i32, %arg0 : i32, i32
  }
  func.func @transform_6(%arg0: i32, %arg1: i32) -> (i32, i32) {
    %c0_i32 = arith.constant 0 : i32
    return %arg1, %arg0 : i32, i32
  }
}

</mosaic_0001>

<bundles_post_ra>
// kernel: bottleneck_forward.3
= control target key start
LH: loop header
LB: loop body
LE: loop exit
PB: predicated region body
PF: predicated region fallthrough
CT: control target
= control target key end

     0   :  { %s1860_s1 = inlined_call_operand.vmem [shape: bf16[128,128], index: 1, kind: input, shape index: {}]   ;;  %s1861_s0 = inlined_call_operand.vmem [shape: bf16[512,128], index: 0, kind: input, shape index: {}]   ;;  %s1862_s2 = inlined_call_operand.vmem [shape: f32[1,128], index: 2, kind: input, shape index: {}]   ;;  %s1863_s3 = inlined_call_operand.vmem [shape: bf16[512,128], index: 3, kind: output, shape index: {}]  }
   0x1   :  { %v1515_v0 = vld [vmem:[%s1860_s1 + $0x38] sm:$0xff]   ;;  %v1516_v1 = vld [vmem:[%s1860_s1 + $0x30] sm:$0xff]   ;;  %v1517_v2 = vld [vmem:[%s1860_s1 + $0x28] sm:$0xff]  }
   0x2   :  { %1419 = vmatprep.subr.bf16.mxu0 %v1515_v0  ;;  %1499 = vmatprep.subr.bf16.mxu1 %v1515_v0  ;;  %v1518_v3 = vld [vmem:[%s1860_s1 + $0x20] sm:$0xff]   ;;  %v1519_v6 = vld [vmem:[%s1860_s1 + $0x18] sm:$0xff]   ;;  %v1520_v7 = vld [vmem:[%s1860_s1 + $0x10] sm:$0xff]  }
   0x3   :  { %1420 = vmatpush3.bf16.msra.mxu0 %v1515_v0  ;;  %1507 = vmatpush3.bf16.msra.mxu1 %v1515_v0  ;;  %v1523_v4 = vld [vmem:[%s1861_s0] sm:$0xff]   ;;  %v1521_v8 = vld [vmem:[%s1860_s1 + $0x8] sm:$0xff]   ;;  %v1527_v12 = vld [vmem:[%s1861_s0 + $0x10] sm:$0xff]  }
   0x4   :  { %1421 = vmatprep.subr.bf16.mxu0 %v1516_v1  ;;  %1500 = vmatprep.subr.bf16.mxu1 %v1516_v1  ;;  %v1524_v5 = vld [vmem:[%s1861_s0 + $0x80] sm:$0xff]   ;;  %v1525_v10 = vld [vmem:[%s1861_s0 + $0x8] sm:$0xff]   ;;  %v1528_v13 = vld [vmem:[%s1861_s0 + $0x90] sm:$0xff]  }
   0x5   :  { %1435 = vmatprep.mubr.bf16.mxu0 %v1523_v4  ;;  %1467 = vmatprep.mubr.bf16.mxu1 %v1524_v5  ;;  %v1522_v9 = vld [vmem:[%s1860_s1] sm:$0xff]   ;;  %v1526_v11 = vld [vmem:[%s1861_s0 + $0x88] sm:$0xff]   ;;  %v1529_v14 = vld [vmem:[%s1861_s0 + $0x18] sm:$0xff]  }
   0x6   :  { %v1530_v15 = vld [vmem:[%s1861_s0 + $0x98] sm:$0xff]   ;;  %v1531_v16 = vld [vmem:[%s1861_s0 + $0x20] sm:$0xff]   ;;  %v1533_v18 = vld [vmem:[%s1861_s0 + $0x28] sm:$0xff]  }
   0x7   :  { %1422 = vmatpush3.bf16.msra.mxu0 %v1516_v1  ;;  %1508 = vmatpush3.bf16.msra.mxu1 %v1516_v1  ;;  %v1532_v17 = vld [vmem:[%s1861_s0 + $0xa0] sm:$0xff]   ;;  %v1534_v19 = vld [vmem:[%s1861_s0 + $0xa8] sm:$0xff]   ;;  %v1535_v20 = vld [vmem:[%s1861_s0 + $0x30] sm:$0xff]  }
   0x8   :  { %1423 = vmatprep.subr.bf16.mxu0 %v1517_v2  ;;  %1501 = vmatprep.subr.bf16.mxu1 %v1517_v2  ;;  %v1536_v21 = vld [vmem:[%s1861_s0 + $0xb0] sm:$0xff]   ;;  %v1537_v22 = vld [vmem:[%s1861_s0 + $0x38] sm:$0xff]   ;;  %v1539_v24 = vld [vmem:[%s1861_s0 + $0x40] sm:$0xff]  }
   0x9   :  { %v1538_v23 = vld [vmem:[%s1861_s0 + $0xb8] sm:$0xff]   ;;  %v1540_v25 = vld [vmem:[%s1861_s0 + $0xc0] sm:$0xff]   ;;  %v1541_v26 = vld [vmem:[%s1861_s0 + $0x48] sm:$0xff]  }
   0xa   :  { %v1542_v27 = vld [vmem:[%s1861_s0 + $0xc8] sm:$0xff]   ;;  %v1543_v28 = vld [vmem:[%s1861_s0 + $0x50] sm:$0xff]   ;;  %v1545_v30 = vld [vmem:[%s1861_s0 + $0x58] sm:$0xff]  }
   0xb   :  { %1424 = vmatpush3.bf16.msra.mxu0 %v1517_v2  ;;  %1509 = vmatpush3.bf16.msra.mxu1 %v1517_v2  ;;  %v1544_v29 = vld [vmem:[%s1861_s0 + $0xd0] sm:$0xff]   ;;  %v1546_v31 = vld [vmem:[%s1861_s0 + $0xd8] sm:$0xff]   ;;  %v1547_v32 = vld [vmem:[%s1861_s0 + $0x60] sm:$0xff]  }
   0xc   :  { %1425 = vmatprep.subr.bf16.mxu0 %v1518_v3  ;;  %1502 = vmatprep.subr.bf16.mxu1 %v1518_v3  ;;  %v1548_v33 = vld [vmem:[%s1861_s0 + $0xe0] sm:$0xff]   ;;  %v1549_v34 = vld [vmem:[%s1861_s0 + $0x68] sm:$0xff]   ;;  %v1551_v36 = vld [vmem:[%s1861_s0 + $0x70] sm:$0xff]  }
   0xd   :  { %v1550_v35 = vld [vmem:[%s1861_s0 + $0xe8] sm:$0xff]   ;;  %v1552_v37 = vld [vmem:[%s1861_s0 + $0xf0] sm:$0xff]   ;;  %v1553_v38 = vld [vmem:[%s1861_s0 + $0x78] sm:$0xff]  }
   0xe   :  { %v1554_v39 = vld [vmem:[%s1861_s0 + $0xf8] sm:$0xff]   ;;  %v1698_v40 = vld [vmem:[%s1862_s2] ss:$0 sm:$0xff] }
   0xf   :  { %1426 = vmatpush3.bf16.msra.mxu0 %v1518_v3  ;;  %1510 = vmatpush3.bf16.msra.mxu1 %v1518_v3 }
  0x10   :  { %1427 = vmatprep.subr.bf16.mxu0 %v1519_v6  ;;  %1503 = vmatprep.subr.bf16.mxu1 %v1519_v6 }
  0x13   :  { %1428 = vmatpush3.bf16.msra.mxu0 %v1519_v6  ;;  %1511 = vmatpush3.bf16.msra.mxu1 %v1519_v6 }
  0x14   :  { %1429 = vmatprep.subr.bf16.mxu0 %v1520_v7  ;;  %1504 = vmatprep.subr.bf16.mxu1 %v1520_v7 }
  0x17   :  { %1430 = vmatpush3.bf16.msra.mxu0 %v1520_v7  ;;  %1512 = vmatpush3.bf16.msra.mxu1 %v1520_v7 }
  0x18   :  { %1431 = vmatprep.subr.bf16.mxu0 %v1521_v8  ;;  %1505 = vmatprep.subr.bf16.mxu1 %v1521_v8 }
  0x1b   :  { %1432 = vmatpush3.bf16.msra.mxu0 %v1521_v8  ;;  %1513 = vmatpush3.bf16.msra.mxu1 %v1521_v8 }
  0x1c   :  { %1433 = vmatprep.subr.bf16.mxu0 %v1522_v9  ;;  %1506 = vmatprep.subr.bf16.mxu1 %v1522_v9 }
  0x1f   :  { %1434 = vmatpush3.bf16.msra.mxu0 %v1522_v9  ;;  %1514 = vmatpush3.bf16.msra.mxu1 %v1522_v9 }
  0x22   :  { %1436 = vmatmul.mubr.bf16.vlgmr.msra.gmra.mxu0 %v1525_v10  ;;  %1468 = vmatmul.mubr.bf16.vlgmr.msra.gmra.mxu1 %v1526_v11 }
  0x23   :  { %1439 = vmatprep.mubr.bf16.mxu0 %v1527_v12  ;;  %1471 = vmatprep.mubr.bf16.mxu1 %v1528_v13 }
  0x2a   :  { %1440 = vmatmul.mubr.bf16.gmra.mxu0 %v1529_v14  ;;  %1472 = vmatmul.mubr.bf16.gmra.mxu1 %v1530_v15 }
  0x2b   :  { %1443 = vmatprep.mubr.bf16.mxu0 %v1531_v16  ;;  %1475 = vmatprep.mubr.bf16.mxu1 %v1532_v17 }
  0x32   :  { %1444 = vmatmul.mubr.bf16.gmra.mxu0 %v1533_v18  ;;  %1476 = vmatmul.mubr.bf16.gmra.mxu1 %v1534_v19 }
  0x33   :  { %1447 = vmatprep.mubr.bf16.mxu0 %v1535_v20  ;;  %1479 = vmatprep.mubr.bf16.mxu1 %v1536_v21 }
  0x3a   :  { %1448 = vmatmul.mubr.bf16.gmra.mxu0 %v1537_v22  ;;  %1480 = vmatmul.mubr.bf16.gmra.mxu1 %v1538_v23 }
  0x3b   :  { %1451 = vmatprep.mubr.bf16.mxu0 %v1539_v24  ;;  %1483 = vmatprep.mubr.bf16.mxu1 %v1540_v25 }
  0x42   :  { %1452 = vmatmul.mubr.bf16.gmra.mxu0 %v1541_v26  ;;  %1484 = vmatmul.mubr.bf16.gmra.mxu1 %v1542_v27 }
  0x43   :  { %1455 = vmatprep.mubr.bf16.mxu0 %v1543_v28  ;;  %1487 = vmatprep.mubr.bf16.mxu1 %v1544_v29 }
  0x4a   :  { %1456 = vmatmul.mubr.bf16.gmra.mxu0 %v1545_v30  ;;  %1488 = vmatmul.mubr.bf16.gmra.mxu1 %v1546_v31 }
  0x4b   :  { %1459 = vmatprep.mubr.bf16.mxu0 %v1547_v32  ;;  %1491 = vmatprep.mubr.bf16.mxu1 %v1548_v33 }
  0x52   :  { %1460 = vmatmul.mubr.bf16.gmra.mxu0 %v1549_v34  ;;  %1492 = vmatmul.mubr.bf16.gmra.mxu1 %v1550_v35 }
  0x53   :  { %1463 = vmatprep.mubr.bf16.mxu0 %v1551_v36  ;;  %1495 = vmatprep.mubr.bf16.mxu1 %v1552_v37 }
  0x5a   :  { %1464 = vmatmul.mubr.bf16.gmra.mxu0 %v1553_v38  ;;  %1496 = vmatmul.mubr.bf16.gmra.mxu1 %v1554_v39 }
  0xe2   :  { %v1437_v41 = vpop.f32.mrf.mxu0  ;;  %v1469_v42 = vpop.f32.mrf.mxu1 }
  0xe3   :  { %v385_v43 = vadd.f32 %v1437_v41, %v1698_v40  ;;  %v513_v44 = vadd.f32 %v1469_v42, %v1698_v40 }
  0xe4   :  { %v376_v45 = vpop.f32.mrf.mxu0  ;;  %v504_v46 = vpop.f32.mrf.mxu1 }
  0xe5   :  { %v377_v47 = vadd.f32 %v1698_v40, %v376_v45  ;;  %v505_v48 = vadd.f32 %v1698_v40, %v504_v46  ;;  %v633_v53 = vmax.f32 %v385_v43, 0.0  ;;  %v665_v54 = vmax.f32 %v513_v44, 0.0 }
  0xe6   :  { %v1438_v49 = vpop.f32.mrf.mxu0  ;;  %v1470_v50 = vpop.f32.mrf.mxu1 }
  0xe7   :  { %v388_v51 = vadd.f32 %v1438_v49, %v1698_v40  ;;  %v516_v52 = vadd.f32 %v1470_v50, %v1698_v40  ;;  %v631_v61 = vmax.f32 %v377_v47, 0.0  ;;  %v663_v62 = vmax.f32 %v505_v48, 0.0 }
  0xe8   :  { %v379_v55 = vpop.f32.mrf.mxu0  ;;  %v507_v56 = vpop.f32.mrf.mxu1 }
  0xe9   :  { %v634_v57 = vmax.f32 %v388_v51, 0.0  ;;  %v666_v58 = vmax.f32 %v516_v52, 0.0  ;;  %v380_v59 = vadd.f32 %v1698_v40, %v379_v55  ;;  %v508_v60 = vadd.f32 %v1698_v40, %v507_v56 }
  0xea   :  { %v1441_v63 = vpop.f32.mrf.mxu0  ;;  %v1473_v0 = vpop.f32.mrf.mxu1 }
  0xeb   :  { %v1196_v1 = vpack.c.bf16 %v634_v57, %v633_v53  ;;  %v1276_v2 = vpack.c.bf16 %v666_v58, %v665_v54  ;;  %v632_v3 = vmax.f32 %v380_v59, 0.0  ;;  %v664_v4 = vmax.f32 %v508_v60, 0.0 }
  0xec   :  { %v401_v5 = vadd.f32 %v1441_v63, %v1698_v40  ;;  %v529_v6 = vadd.f32 %v1473_v0, %v1698_v40  ;;  %v392_v7 = vpop.f32.mrf.mxu0  ;;  %v520_v8 = vpop.f32.mrf.mxu1 }
  0xed   :  { %1348 = vst [vmem:[%s1863_s3 + $0x8] sm:$0xff] %v1196_v1   ;;  %1364 = vst [vmem:[%s1863_s3 + $0x88] sm:$0xff] %v1276_v2   ;;  %v1191_v9 = vpack.c.bf16 %v632_v3, %v631_v61  ;;  %v1271_v10 = vpack.c.bf16 %v664_v4, %v663_v62  ;;  %v393_v11 = vadd.f32 %v1698_v40, %v392_v7 }
  0xee   :  { %v521_v12 = vadd.f32 %v1698_v40, %v520_v8  ;;  %v1442_v13 = vpop.f32.mrf.mxu0  ;;  %v1474_v14 = vpop.f32.mrf.mxu1  ;;  %v637_v17 = vmax.f32 %v401_v5, 0.0  ;;  %v669_v18 = vmax.f32 %v529_v6, 0.0 }
  0xef   :  { %1192 = vst [vmem:[%s1863_s3] sm:$0xff] %v1191_v9   ;;  %1363 = vst [vmem:[%s1863_s3 + $0x80] sm:$0xff] %v1271_v10   ;;  %v404_v15 = vadd.f32 %v1442_v13, %v1698_v40  ;;  %v532_v16 = vadd.f32 %v1474_v14, %v1698_v40  ;;  %v635_v25 = vmax.f32 %v393_v11, 0.0 }
  0xf0   :  { %v395_v19 = vpop.f32.mrf.mxu0  ;;  %v523_v20 = vpop.f32.mrf.mxu1  ;;  %v667_v26 = vmax.f32 %v521_v12, 0.0 }
  0xf1   :  { %v638_v21 = vmax.f32 %v404_v15, 0.0  ;;  %v670_v22 = vmax.f32 %v532_v16, 0.0  ;;  %v396_v23 = vadd.f32 %v1698_v40, %v395_v19  ;;  %v524_v24 = vadd.f32 %v1698_v40, %v523_v20 }
  0xf2   :  { %v1445_v27 = vpop.f32.mrf.mxu0  ;;  %v1477_v28 = vpop.f32.mrf.mxu1 }
  0xf3   :  { %v1206_v29 = vpack.c.bf16 %v638_v21, %v637_v17  ;;  %v1286_v30 = vpack.c.bf16 %v670_v22, %v669_v18  ;;  %v636_v31 = vmax.f32 %v396_v23, 0.0  ;;  %v668_v32 = vmax.f32 %v524_v24, 0.0 }
  0xf4   :  { %v417_v33 = vadd.f32 %v1445_v27, %v1698_v40  ;;  %v545_v34 = vadd.f32 %v1477_v28, %v1698_v40  ;;  %v408_v35 = vpop.f32.mrf.mxu0  ;;  %v536_v36 = vpop.f32.mrf.mxu1 }
  0xf5   :  { %1350 = vst [vmem:[%s1863_s3 + $0x18] sm:$0xff] %v1206_v29   ;;  %1366 = vst [vmem:[%s1863_s3 + $0x98] sm:$0xff] %v1286_v30   ;;  %v1201_v37 = vpack.c.bf16 %v636_v31, %v635_v25  ;;  %v1281_v38 = vpack.c.bf16 %v668_v32, %v667_v26  ;;  %v409_v39 = vadd.f32 %v1698_v40, %v408_v35 }
  0xf6   :  { %v537_v41 = vadd.f32 %v1698_v40, %v536_v36  ;;  %v1446_v42 = vpop.f32.mrf.mxu0  ;;  %v1478_v43 = vpop.f32.mrf.mxu1  ;;  %v641_v46 = vmax.f32 %v417_v33, 0.0  ;;  %v673_v47 = vmax.f32 %v545_v34, 0.0 }
  0xf7   :  { %1349 = vst [vmem:[%s1863_s3 + $0x10] sm:$0xff] %v1201_v37   ;;  %1365 = vst [vmem:[%s1863_s3 + $0x90] sm:$0xff] %v1281_v38   ;;  %v420_v44 = vadd.f32 %v1446_v42, %v1698_v40  ;;  %v548_v45 = vadd.f32 %v1478_v43, %v1698_v40  ;;  %v639_v54 = vmax.f32 %v409_v39, 0.0 }
  0xf8   :  { %v411_v48 = vpop.f32.mrf.mxu0  ;;  %v539_v49 = vpop.f32.mrf.mxu1  ;;  %v671_v55 = vmax.f32 %v537_v41, 0.0 }
  0xf9   :  { %v642_v50 = vmax.f32 %v420_v44, 0.0  ;;  %v674_v51 = vmax.f32 %v548_v45, 0.0  ;;  %v412_v52 = vadd.f32 %v1698_v40, %v411_v48  ;;  %v540_v53 = vadd.f32 %v1698_v40, %v539_v49 }
  0xfa   :  { %v1449_v56 = vpop.f32.mrf.mxu0  ;;  %v1481_v57 = vpop.f32.mrf.mxu1 }
  0xfb   :  { %v1216_v58 = vpack.c.bf16 %v642_v50, %v641_v46  ;;  %v1296_v59 = vpack.c.bf16 %v674_v51, %v673_v47  ;;  %v640_v60 = vmax.f32 %v412_v52, 0.0  ;;  %v672_v61 = vmax.f32 %v540_v53, 0.0 }
  0xfc   :  { %v433_v62 = vadd.f32 %v1449_v56, %v1698_v40  ;;  %v561_v63 = vadd.f32 %v1481_v57, %v1698_v40  ;;  %v424_v0 = vpop.f32.mrf.mxu0  ;;  %v552_v1 = vpop.f32.mrf.mxu1 }
  0xfd   :  { %1352 = vst [vmem:[%s1863_s3 + $0x28] sm:$0xff] %v1216_v58   ;;  %1368 = vst [vmem:[%s1863_s3 + $0xa8] sm:$0xff] %v1296_v59   ;;  %v1211_v2 = vpack.c.bf16 %v640_v60, %v639_v54  ;;  %v1291_v3 = vpack.c.bf16 %v672_v61, %v671_v55  ;;  %v425_v4 = vadd.f32 %v1698_v40, %v424_v0 }
  0xfe   :  { %v553_v5 = vadd.f32 %v1698_v40, %v552_v1  ;;  %v1450_v6 = vpop.f32.mrf.mxu0  ;;  %v1482_v7 = vpop.f32.mrf.mxu1  ;;  %v645_v10 = vmax.f32 %v433_v62, 0.0  ;;  %v677_v11 = vmax.f32 %v561_v63, 0.0 }
  0xff   :  { %1351 = vst [vmem:[%s1863_s3 + $0x20] sm:$0xff] %v1211_v2   ;;  %1367 = vst [vmem:[%s1863_s3 + $0xa0] sm:$0xff] %v1291_v3   ;;  %v436_v8 = vadd.f32 %v1450_v6, %v1698_v40  ;;  %v564_v9 = vadd.f32 %v1482_v7, %v1698_v40  ;;  %v643_v18 = vmax.f32 %v425_v4, 0.0 }
 0x100   :  { %v427_v12 = vpop.f32.mrf.mxu0  ;;  %v555_v13 = vpop.f32.mrf.mxu1  ;;  %v675_v19 = vmax.f32 %v553_v5, 0.0 }
 0x101   :  { %v646_v14 = vmax.f32 %v436_v8, 0.0  ;;  %v678_v15 = vmax.f32 %v564_v9, 0.0  ;;  %v428_v16 = vadd.f32 %v1698_v40, %v427_v12  ;;  %v556_v17 = vadd.f32 %v1698_v40, %v555_v13 }
 0x102   :  { %v1453_v20 = vpop.f32.mrf.mxu0  ;;  %v1485_v21 = vpop.f32.mrf.mxu1 }
 0x103   :  { %v1226_v22 = vpack.c.bf16 %v646_v14, %v645_v10  ;;  %v1306_v23 = vpack.c.bf16 %v678_v15, %v677_v11  ;;  %v644_v24 = vmax.f32 %v428_v16, 0.0  ;;  %v676_v25 = vmax.f32 %v556_v17, 0.0 }
 0x104   :  { %v449_v26 = vadd.f32 %v1453_v20, %v1698_v40  ;;  %v577_v27 = vadd.f32 %v1485_v21, %v1698_v40  ;;  %v440_v28 = vpop.f32.mrf.mxu0  ;;  %v568_v29 = vpop.f32.mrf.mxu1 }
 0x105   :  { %1354 = vst [vmem:[%s1863_s3 + $0x38] sm:$0xff] %v1226_v22   ;;  %1370 = vst [vmem:[%s1863_s3 + $0xb8] sm:$0xff] %v1306_v23   ;;  %v1221_v30 = vpack.c.bf16 %v644_v24, %v643_v18  ;;  %v1301_v31 = vpack.c.bf16 %v676_v25, %v675_v19  ;;  %v441_v32 = vadd.f32 %v1698_v40, %v440_v28 }
 0x106   :  { %v569_v33 = vadd.f32 %v1698_v40, %v568_v29  ;;  %v1454_v34 = vpop.f32.mrf.mxu0  ;;  %v1486_v35 = vpop.f32.mrf.mxu1  ;;  %v649_v38 = vmax.f32 %v449_v26, 0.0  ;;  %v681_v39 = vmax.f32 %v577_v27, 0.0 }
 0x107   :  { %1353 = vst [vmem:[%s1863_s3 + $0x30] sm:$0xff] %v1221_v30   ;;  %1369 = vst [vmem:[%s1863_s3 + $0xb0] sm:$0xff] %v1301_v31   ;;  %v452_v36 = vadd.f32 %v1454_v34, %v1698_v40  ;;  %v580_v37 = vadd.f32 %v1486_v35, %v1698_v40  ;;  %v647_v47 = vmax.f32 %v441_v32, 0.0 }
 0x108   :  { %v443_v41 = vpop.f32.mrf.mxu0  ;;  %v571_v42 = vpop.f32.mrf.mxu1  ;;  %v679_v48 = vmax.f32 %v569_v33, 0.0 }
 0x109   :  { %v650_v43 = vmax.f32 %v452_v36, 0.0  ;;  %v682_v44 = vmax.f32 %v580_v37, 0.0  ;;  %v444_v45 = vadd.f32 %v1698_v40, %v443_v41  ;;  %v572_v46 = vadd.f32 %v1698_v40, %v571_v42 }
 0x10a   :  { %v1457_v49 = vpop.f32.mrf.mxu0  ;;  %v1489_v50 = vpop.f32.mrf.mxu1 }
 0x10b   :  { %v1236_v51 = vpack.c.bf16 %v650_v43, %v649_v38  ;;  %v1316_v52 = vpack.c.bf16 %v682_v44, %v681_v39  ;;  %v648_v53 = vmax.f32 %v444_v45, 0.0  ;;  %v680_v54 = vmax.f32 %v572_v46, 0.0 }
 0x10c   :  { %v465_v55 = vadd.f32 %v1457_v49, %v1698_v40  ;;  %v593_v56 = vadd.f32 %v1489_v50, %v1698_v40  ;;  %v456_v57 = vpop.f32.mrf.mxu0  ;;  %v584_v58 = vpop.f32.mrf.mxu1 }
 0x10d   :  { %1356 = vst [vmem:[%s1863_s3 + $0x48] sm:$0xff] %v1236_v51   ;;  %1372 = vst [vmem:[%s1863_s3 + $0xc8] sm:$0xff] %v1316_v52   ;;  %v1231_v59 = vpack.c.bf16 %v648_v53, %v647_v47  ;;  %v1311_v60 = vpack.c.bf16 %v680_v54, %v679_v48  ;;  %v457_v61 = vadd.f32 %v1698_v40, %v456_v57 }
 0x10e   :  { %v585_v62 = vadd.f32 %v1698_v40, %v584_v58  ;;  %v1458_v63 = vpop.f32.mrf.mxu0  ;;  %v1490_v0 = vpop.f32.mrf.mxu1  ;;  %v653_v3 = vmax.f32 %v465_v55, 0.0  ;;  %v685_v4 = vmax.f32 %v593_v56, 0.0 }
 0x10f   :  { %1355 = vst [vmem:[%s1863_s3 + $0x40] sm:$0xff] %v1231_v59   ;;  %1371 = vst [vmem:[%s1863_s3 + $0xc0] sm:$0xff] %v1311_v60   ;;  %v468_v1 = vadd.f32 %v1458_v63, %v1698_v40  ;;  %v596_v2 = vadd.f32 %v1490_v0, %v1698_v40  ;;  %v651_v11 = vmax.f32 %v457_v61, 0.0 }
 0x110   :  { %v459_v5 = vpop.f32.mrf.mxu0  ;;  %v587_v6 = vpop.f32.mrf.mxu1  ;;  %v683_v12 = vmax.f32 %v585_v62, 0.0 }
 0x111   :  { %v654_v7 = vmax.f32 %v468_v1, 0.0  ;;  %v686_v8 = vmax.f32 %v596_v2, 0.0  ;;  %v460_v9 = vadd.f32 %v1698_v40, %v459_v5  ;;  %v588_v10 = vadd.f32 %v1698_v40, %v587_v6 }
 0x112   :  { %v1461_v13 = vpop.f32.mrf.mxu0  ;;  %v1493_v14 = vpop.f32.mrf.mxu1 }
 0x113   :  { %v1246_v15 = vpack.c.bf16 %v654_v7, %v653_v3  ;;  %v1326_v16 = vpack.c.bf16 %v686_v8, %v685_v4  ;;  %v652_v17 = vmax.f32 %v460_v9, 0.0  ;;  %v684_v18 = vmax.f32 %v588_v10, 0.0 }
 0x114   :  { %v481_v19 = vadd.f32 %v1461_v13, %v1698_v40  ;;  %v609_v20 = vadd.f32 %v1493_v14, %v1698_v40  ;;  %v472_v21 = vpop.f32.mrf.mxu0  ;;  %v600_v22 = vpop.f32.mrf.mxu1 }
 0x115   :  { %1358 = vst [vmem:[%s1863_s3 + $0x58] sm:$0xff] %v1246_v15   ;;  %1374 = vst [vmem:[%s1863_s3 + $0xd8] sm:$0xff] %v1326_v16   ;;  %v1241_v23 = vpack.c.bf16 %v652_v17, %v651_v11  ;;  %v1321_v24 = vpack.c.bf16 %v684_v18, %v683_v12  ;;  %v473_v25 = vadd.f32 %v1698_v40, %v472_v21 }
 0x116   :  { %v601_v26 = vadd.f32 %v1698_v40, %v600_v22  ;;  %v1462_v27 = vpop.f32.mrf.mxu0  ;;  %v1494_v28 = vpop.f32.mrf.mxu1  ;;  %v657_v31 = vmax.f32 %v481_v19, 0.0  ;;  %v689_v32 = vmax.f32 %v609_v20, 0.0 }
 0x117   :  { %1357 = vst [vmem:[%s1863_s3 + $0x50] sm:$0xff] %v1241_v23   ;;  %1373 = vst [vmem:[%s1863_s3 + $0xd0] sm:$0xff] %v1321_v24   ;;  %v484_v29 = vadd.f32 %v1462_v27, %v1698_v40  ;;  %v612_v30 = vadd.f32 %v1494_v28, %v1698_v40  ;;  %v655_v39 = vmax.f32 %v473_v25, 0.0 }
 0x118   :  { %v475_v33 = vpop.f32.mrf.mxu0  ;;  %v603_v34 = vpop.f32.mrf.mxu1  ;;  %v687_v41 = vmax.f32 %v601_v26, 0.0 }
 0x119   :  { %v658_v35 = vmax.f32 %v484_v29, 0.0  ;;  %v690_v36 = vmax.f32 %v612_v30, 0.0  ;;  %v476_v37 = vadd.f32 %v1698_v40, %v475_v33  ;;  %v604_v38 = vadd.f32 %v1698_v40, %v603_v34 }
 0x11a   :  { %v1465_v42 = vpop.f32.mrf.mxu0  ;;  %v1497_v43 = vpop.f32.mrf.mxu1 }
 0x11b   :  { %v1256_v44 = vpack.c.bf16 %v658_v35, %v657_v31  ;;  %v1336_v45 = vpack.c.bf16 %v690_v36, %v689_v32  ;;  %v656_v46 = vmax.f32 %v476_v37, 0.0  ;;  %v688_v47 = vmax.f32 %v604_v38, 0.0 }
 0x11c   :  { %v497_v48 = vadd.f32 %v1465_v42, %v1698_v40  ;;  %v625_v49 = vadd.f32 %v1497_v43, %v1698_v40  ;;  %v488_v50 = vpop.f32.mrf.mxu0  ;;  %v616_v51 = vpop.f32.mrf.mxu1 }
 0x11d   :  { %1360 = vst [vmem:[%s1863_s3 + $0x68] sm:$0xff] %v1256_v44   ;;  %1376 = vst [vmem:[%s1863_s3 + $0xe8] sm:$0xff] %v1336_v45   ;;  %v1251_v52 = vpack.c.bf16 %v656_v46, %v655_v39  ;;  %v1331_v53 = vpack.c.bf16 %v688_v47, %v687_v41  ;;  %v489_v54 = vadd.f32 %v1698_v40, %v488_v50 }
 0x11e   :  { %v617_v55 = vadd.f32 %v1698_v40, %v616_v51  ;;  %v1466_v56 = vpop.f32.mrf.mxu0  ;;  %v1498_v57 = vpop.f32.mrf.mxu1  ;;  %v661_v60 = vmax.f32 %v497_v48, 0.0  ;;  %v693_v61 = vmax.f32 %v625_v49, 0.0 }
 0x11f   :  { %1359 = vst [vmem:[%s1863_s3 + $0x60] sm:$0xff] %v1251_v52   ;;  %1375 = vst [vmem:[%s1863_s3 + $0xe0] sm:$0xff] %v1331_v53   ;;  %v500_v58 = vadd.f32 %v1466_v56, %v1698_v40  ;;  %v628_v59 = vadd.f32 %v1498_v57, %v1698_v40  ;;  %v659_v4 = vmax.f32 %v489_v54, 0.0 }
 0x120   :  { %v491_v62 = vpop.f32.mrf.mxu0  ;;  %v619_v63 = vpop.f32.mrf.mxu1  ;;  %v691_v5 = vmax.f32 %v617_v55, 0.0 }
 0x121   :  { %v662_v0 = vmax.f32 %v500_v58, 0.0  ;;  %v694_v1 = vmax.f32 %v628_v59, 0.0  ;;  %v492_v2 = vadd.f32 %v1698_v40, %v491_v62  ;;  %v620_v3 = vadd.f32 %v1698_v40, %v619_v63 }
 0x123   :  { %v1266_v6 = vpack.c.bf16 %v662_v0, %v661_v60  ;;  %v1346_v7 = vpack.c.bf16 %v694_v1, %v693_v61  ;;  %v660_v8 = vmax.f32 %v492_v2, 0.0  ;;  %v692_v9 = vmax.f32 %v620_v3, 0.0 }
 0x125   :  { %1362 = vst [vmem:[%s1863_s3 + $0x78] sm:$0xff] %v1266_v6   ;;  %1378 = vst [vmem:[%s1863_s3 + $0xf8] sm:$0xff] %v1346_v7   ;;  %v1261_v10 = vpack.c.bf16 %v660_v8, %v659_v4  ;;  %v1341_v11 = vpack.c.bf16 %v692_v9, %v691_v5 }
 0x127   :  { %1361 = vst [vmem:[%s1863_s3 + $0x70] sm:$0xff] %v1261_v10   ;;  %1377 = vst [vmem:[%s1863_s3 + $0xf0] sm:$0xff] %v1341_v11  }

// kernel: bottleneck_forward.5
= control target key start
LH: loop header
LB: loop body
LE: loop exit
PB: predicated region body
PF: predicated region fallthrough
CT: control target
= control target key end

     0   :  { %s2459_s1 = inlined_call_operand.vmem [shape: bf16[128,128], index: 1, kind: input, shape index: {}]   ;;  %s2460_s4 = inlined_call_operand.vmem [shape: bf16[128,128], index: 4, kind: input, shape index: {}]   ;;  %s2461_s0 = inlined_call_operand.vmem [shape: bf16[512,128], index: 0, kind: input, shape index: {}]   ;;  %s2462_s3 = inlined_call_operand.vmem [shape: bf16[512,128], index: 3, kind: input, shape index: {}]   ;;  %s2463_s2 = inlined_call_operand.vmem [shape: f32[1,128], index: 2, kind: input, shape index: {}]   ;;  %s2464_s5 = inlined_call_operand.vmem [shape: f32[1,128], index: 5, kind: input, shape index: {}]   ;;  %s2465_s6 = inlined_call_operand.vmem [shape: f32[512,128], index: 6, kind: output, shape index: {}]  }
   0x1   :  { %v1774_v0 = vld [vmem:[%s2459_s1 + $0x38] sm:$0xff]   ;;  %v1776_v2 = vld [vmem:[%s2459_s1 + $0x30] sm:$0xff]   ;;  %v1778_v4 = vld [vmem:[%s2459_s1 + $0x28] sm:$0xff]  }
   0x2   :  { %v1775_v1 = vld [vmem:[%s2460_s4 + $0x38] sm:$0xff]   ;;  %1614 = vmatprep.subr.bf16.mxu0 %v1774_v0  ;;  %v1777_v3 = vld [vmem:[%s2460_s4 + $0x30] sm:$0xff]   ;;  %v1779_v5 = vld [vmem:[%s2460_s4 + $0x28] sm:$0xff]  }
   0x3   :  { %1694 = vmatprep.subr.bf16.mxu1 %v1775_v1  ;;  %1615 = vmatpush3.bf16.msra.mxu0 %v1774_v0  ;;  %v1780_v6 = vld [vmem:[%s2459_s1 + $0x20] sm:$0xff]   ;;  %v1782_v8 = vld [vmem:[%s2459_s1 + $0x18] sm:$0xff]   ;;  %v1784_v10 = vld [vmem:[%s2459_s1 + $0x10] sm:$0xff]  }
   0x4   :  { %1695 = vmatpush3.bf16.msra.mxu1 %v1775_v1  ;;  %1616 = vmatprep.subr.bf16.mxu0 %v1776_v2  ;;  %v1781_v7 = vld [vmem:[%s2460_s4 + $0x20] sm:$0xff]   ;;  %v1783_v9 = vld [vmem:[%s2460_s4 + $0x18] sm:$0xff]   ;;  %v1785_v11 = vld [vmem:[%s2460_s4 + $0x10] sm:$0xff]  }
   0x5   :  { %1696 = vmatprep.subr.bf16.mxu1 %v1777_v3  ;;  %v1790_v12 = vld [vmem:[%s2461_s0] sm:$0xff]   ;;  %v1786_v14 = vld [vmem:[%s2459_s1 + $0x8] sm:$0xff]   ;;  %v1794_v20 = vld [vmem:[%s2461_s0 + $0x10] sm:$0xff]  }
   0x6   :  { %v1791_v13 = vld [vmem:[%s2462_s3] sm:$0xff]   ;;  %1630 = vmatprep.mubr.bf16.mxu0 %v1790_v12  ;;  %v1787_v15 = vld [vmem:[%s2460_s4 + $0x8] sm:$0xff]   ;;  %v1795_v21 = vld [vmem:[%s2462_s3 + $0x10] sm:$0xff]  }
   0x7   :  { %1617 = vmatpush3.bf16.msra.mxu0 %v1776_v2  ;;  %1710 = vmatprep.mubr.bf16.mxu1 %v1791_v13  ;;  %v1788_v16 = vld [vmem:[%s2459_s1] sm:$0xff]   ;;  %v1792_v18 = vld [vmem:[%s2461_s0 + $0x8] sm:$0xff]   ;;  %v1796_v22 = vld [vmem:[%s2461_s0 + $0x18] sm:$0xff]  }
   0x8   :  { %1697 = vmatpush3.bf16.msra.mxu1 %v1777_v3  ;;  %1618 = vmatprep.subr.bf16.mxu0 %v1778_v4  ;;  %v1789_v17 = vld [vmem:[%s2460_s4] sm:$0xff]   ;;  %v1793_v19 = vld [vmem:[%s2462_s3 + $0x8] sm:$0xff]   ;;  %v1797_v23 = vld [vmem:[%s2462_s3 + $0x18] sm:$0xff]  }
   0x9   :  { %1698 = vmatprep.subr.bf16.mxu1 %v1779_v5  ;;  %v1798_v24 = vld [vmem:[%s2461_s0 + $0x20] sm:$0xff]   ;;  %v1800_v26 = vld [vmem:[%s2461_s0 + $0x28] sm:$0xff]   ;;  %v1802_v28 = vld [vmem:[%s2461_s0 + $0x30] sm:$0xff]  }
   0xa   :  { %v1799_v25 = vld [vmem:[%s2462_s3 + $0x20] sm:$0xff]   ;;  %v1801_v27 = vld [vmem:[%s2462_s3 + $0x28] sm:$0xff]   ;;  %v1803_v29 = vld [vmem:[%s2462_s3 + $0x30] sm:$0xff]  }
   0xb   :  { %1619 = vmatpush3.bf16.msra.mxu0 %v1778_v4  ;;  %v1804_v30 = vld [vmem:[%s2461_s0 + $0x38] sm:$0xff]   ;;  %v1806_v32 = vld [vmem:[%s2461_s0 + $0x40] sm:$0xff]   ;;  %v1808_v34 = vld [vmem:[%s2461_s0 + $0x48] sm:$0xff]  }
   0xc   :  { %1699 = vmatpush3.bf16.msra.mxu1 %v1779_v5  ;;  %1620 = vmatprep.subr.bf16.mxu0 %v1780_v6  ;;  %v1805_v31 = vld [vmem:[%s2462_s3 + $0x38] sm:$0xff]   ;;  %v1807_v33 = vld [vmem:[%s2462_s3 + $0x40] sm:$0xff]   ;;  %v1809_v35 = vld [vmem:[%s2462_s3 + $0x48] sm:$0xff]  }
   0xd   :  { %1700 = vmatprep.subr.bf16.mxu1 %v1781_v7  ;;  %v1810_v36 = vld [vmem:[%s2461_s0 + $0x50] sm:$0xff]   ;;  %v1812_v38 = vld [vmem:[%s2461_s0 + $0x58] sm:$0xff]   ;;  %v1814_v40 = vld [vmem:[%s2461_s0 + $0x60] sm:$0xff]  }
   0xe   :  { %v1811_v37 = vld [vmem:[%s2462_s3 + $0x50] sm:$0xff]   ;;  %v1813_v39 = vld [vmem:[%s2462_s3 + $0x58] sm:$0xff]   ;;  %v1815_v41 = vld [vmem:[%s2462_s3 + $0x60] sm:$0xff]  }
   0xf   :  { %1621 = vmatpush3.bf16.msra.mxu0 %v1780_v6  ;;  %v1816_v42 = vld [vmem:[%s2461_s0 + $0x68] sm:$0xff]   ;;  %v1818_v44 = vld [vmem:[%s2461_s0 + $0x70] sm:$0xff]   ;;  %v1820_v46 = vld [vmem:[%s2461_s0 + $0x78] sm:$0xff]  }
  0x10   :  { %1701 = vmatpush3.bf16.msra.mxu1 %v1781_v7  ;;  %1622 = vmatprep.subr.bf16.mxu0 %v1782_v8  ;;  %v1817_v43 = vld [vmem:[%s2462_s3 + $0x68] sm:$0xff]   ;;  %v1819_v45 = vld [vmem:[%s2462_s3 + $0x70] sm:$0xff]   ;;  %v1821_v47 = vld [vmem:[%s2462_s3 + $0x78] sm:$0xff]  }
  0x11   :  { %1702 = vmatprep.subr.bf16.mxu1 %v1783_v9  ;;  %v1822_v48 = vld [vmem:[%s2461_s0 + $0x80] sm:$0xff]   ;;  %v1824_v50 = vld [vmem:[%s2461_s0 + $0x88] sm:$0xff]   ;;  %v1826_v52 = vld [vmem:[%s2461_s0 + $0x90] sm:$0xff]  }
  0x12   :  { %v1823_v49 = vld [vmem:[%s2462_s3 + $0x80] sm:$0xff]   ;;  %v1825_v51 = vld [vmem:[%s2462_s3 + $0x88] sm:$0xff]   ;;  %v1827_v53 = vld [vmem:[%s2462_s3 + $0x90] sm:$0xff]  }
  0x13   :  { %1623 = vmatpush3.bf16.msra.mxu0 %v1782_v8  ;;  %v1828_v54 = vld [vmem:[%s2461_s0 + $0x98] sm:$0xff]   ;;  %v1830_v56 = vld [vmem:[%s2461_s0 + $0xa0] sm:$0xff]   ;;  %v1832_v58 = vld [vmem:[%s2461_s0 + $0xa8] sm:$0xff]  }
  0x14   :  { %1703 = vmatpush3.bf16.msra.mxu1 %v1783_v9  ;;  %1624 = vmatprep.subr.bf16.mxu0 %v1784_v10  ;;  %v1829_v55 = vld [vmem:[%s2462_s3 + $0x98] sm:$0xff]   ;;  %v1831_v57 = vld [vmem:[%s2462_s3 + $0xa0] sm:$0xff]   ;;  %v1833_v59 = vld [vmem:[%s2462_s3 + $0xa8] sm:$0xff]  }
  0x15   :  { %1704 = vmatprep.subr.bf16.mxu1 %v1785_v11  ;;  %v1834_v60 = vld [vmem:[%s2461_s0 + $0xb0] sm:$0xff]   ;;  %v1836_v62 = vld [vmem:[%s2461_s0 + $0xb8] sm:$0xff]   ;;  %v1838_v0 = vld [vmem:[%s2461_s0 + $0xc0] sm:$0xff]  }
  0x16   :  { %v1835_v61 = vld [vmem:[%s2462_s3 + $0xb0] sm:$0xff]   ;;  %v1837_v63 = vld [vmem:[%s2462_s3 + $0xb8] sm:$0xff]   ;;  %v1839_v1 = vld [vmem:[%s2462_s3 + $0xc0] sm:$0xff]  }
  0x17   :  { %1625 = vmatpush3.bf16.msra.mxu0 %v1784_v10  ;;  %v1840_v2 = vld [vmem:[%s2461_s0 + $0xc8] sm:$0xff]   ;;  %v1842_v4 = vld [vmem:[%s2461_s0 + $0xd0] sm:$0xff]   ;;  %v1844_v6 = vld [vmem:[%s2461_s0 + $0xd8] sm:$0xff]  }
  0x18   :  { %1705 = vmatpush3.bf16.msra.mxu1 %v1785_v11  ;;  %1626 = vmatprep.subr.bf16.mxu0 %v1786_v14  ;;  %v1841_v3 = vld [vmem:[%s2462_s3 + $0xc8] sm:$0xff]   ;;  %v1843_v5 = vld [vmem:[%s2462_s3 + $0xd0] sm:$0xff]   ;;  %v1845_v7 = vld [vmem:[%s2462_s3 + $0xd8] sm:$0xff]  }
  0x19   :  { %1706 = vmatprep.subr.bf16.mxu1 %v1787_v15  ;;  %v1846_v8 = vld [vmem:[%s2461_s0 + $0xe0] sm:$0xff]   ;;  %v1848_v10 = vld [vmem:[%s2461_s0 + $0xe8] sm:$0xff]   ;;  %v1850_v12 = vld [vmem:[%s2461_s0 + $0xf0] sm:$0xff]  }
  0x1a   :  { %v1847_v9 = vld [vmem:[%s2462_s3 + $0xe0] sm:$0xff]   ;;  %v1849_v11 = vld [vmem:[%s2462_s3 + $0xe8] sm:$0xff]   ;;  %v1851_v13 = vld [vmem:[%s2462_s3 + $0xf0] sm:$0xff]  }
  0x1b   :  { %1627 = vmatpush3.bf16.msra.mxu0 %v1786_v14  ;;  %v1852_v14 = vld [vmem:[%s2461_s0 + $0xf8] sm:$0xff]  }
  0x1c   :  { %1707 = vmatpush3.bf16.msra.mxu1 %v1787_v15  ;;  %1628 = vmatprep.subr.bf16.mxu0 %v1788_v16  ;;  %v1853_v15 = vld [vmem:[%s2462_s3 + $0xf8] sm:$0xff]  }
  0x1d   :  { %1708 = vmatprep.subr.bf16.mxu1 %v1789_v17 }
  0x1f   :  { %1629 = vmatpush3.bf16.msra.mxu0 %v1788_v16  ;;  %v2132_v16 = vld [vmem:[%s2463_s2] ss:$0 sm:$0xff] }
  0x20   :  { %1709 = vmatpush3.bf16.msra.mxu1 %v1789_v17  ;;  %v2137_v17 = vld [vmem:[%s2464_s5] ss:$0 sm:$0xff] }
  0x22   :  { %1631 = vmatmul.mubr.bf16.vlgmr.msra.gmra.mxu0 %v1792_v18 }
  0x23   :  { %1711 = vmatmul.mubr.bf16.vlgmr.msra.gmra.mxu1 %v1793_v19  ;;  %1634 = vmatprep.mubr.bf16.mxu0 %v1794_v20 }
  0x24   :  { %1714 = vmatprep.mubr.bf16.mxu1 %v1795_v21 }
  0x2a   :  { %1635 = vmatmul.mubr.bf16.gmra.mxu0 %v1796_v22 }
  0x2b   :  { %1715 = vmatmul.mubr.bf16.gmra.mxu1 %v1797_v23  ;;  %1638 = vmatprep.mubr.bf16.mxu0 %v1798_v24 }
  0x2c   :  { %1718 = vmatprep.mubr.bf16.mxu1 %v1799_v25 }
  0x32   :  { %1639 = vmatmul.mubr.bf16.gmra.mxu0 %v1800_v26 }
  0x33   :  { %1719 = vmatmul.mubr.bf16.gmra.mxu1 %v1801_v27  ;;  %1642 = vmatprep.mubr.bf16.mxu0 %v1802_v28 }
  0x34   :  { %1722 = vmatprep.mubr.bf16.mxu1 %v1803_v29 }
  0x3a   :  { %1643 = vmatmul.mubr.bf16.gmra.mxu0 %v1804_v30 }
  0x3b   :  { %1723 = vmatmul.mubr.bf16.gmra.mxu1 %v1805_v31  ;;  %1646 = vmatprep.mubr.bf16.mxu0 %v1806_v32 }
  0x3c   :  { %1726 = vmatprep.mubr.bf16.mxu1 %v1807_v33 }
  0x42   :  { %1647 = vmatmul.mubr.bf16.gmra.mxu0 %v1808_v34 }
  0x43   :  { %1727 = vmatmul.mubr.bf16.gmra.mxu1 %v1809_v35  ;;  %1650 = vmatprep.mubr.bf16.mxu0 %v1810_v36 }
  0x44   :  { %1730 = vmatprep.mubr.bf16.mxu1 %v1811_v37 }
  0x4a   :  { %1651 = vmatmul.mubr.bf16.gmra.mxu0 %v1812_v38 }
  0x4b   :  { %1731 = vmatmul.mubr.bf16.gmra.mxu1 %v1813_v39  ;;  %1654 = vmatprep.mubr.bf16.mxu0 %v1814_v40 }
  0x4c   :  { %1734 = vmatprep.mubr.bf16.mxu1 %v1815_v41 }
  0x52   :  { %1655 = vmatmul.mubr.bf16.gmra.mxu0 %v1816_v42 }
  0x53   :  { %1735 = vmatmul.mubr.bf16.gmra.mxu1 %v1817_v43  ;;  %1658 = vmatprep.mubr.bf16.mxu0 %v1818_v44 }
  0x54   :  { %1738 = vmatprep.mubr.bf16.mxu1 %v1819_v45 }
  0x5a   :  { %1659 = vmatmul.mubr.bf16.gmra.mxu0 %v1820_v46 }
  0x5b   :  { %1739 = vmatmul.mubr.bf16.gmra.mxu1 %v1821_v47  ;;  %1662 = vmatprep.mubr.bf16.mxu0 %v1822_v48 }
  0x5c   :  { %1742 = vmatprep.mubr.bf16.mxu1 %v1823_v49 }
  0x62   :  { %1663 = vmatmul.mubr.bf16.gmra.mxu0 %v1824_v50 }
  0x63   :  { %1743 = vmatmul.mubr.bf16.gmra.mxu1 %v1825_v51  ;;  %1666 = vmatprep.mubr.bf16.mxu0 %v1826_v52 }
  0x64   :  { %1746 = vmatprep.mubr.bf16.mxu1 %v1827_v53 }
  0x6a   :  { %1667 = vmatmul.mubr.bf16.gmra.mxu0 %v1828_v54 }
  0x6b   :  { %1747 = vmatmul.mubr.bf16.gmra.mxu1 %v1829_v55  ;;  %1670 = vmatprep.mubr.bf16.mxu0 %v1830_v56 }
  0x6c   :  { %1750 = vmatprep.mubr.bf16.mxu1 %v1831_v57 }
  0x72   :  { %1671 = vmatmul.mubr.bf16.gmra.mxu0 %v1832_v58 }
  0x73   :  { %1751 = vmatmul.mubr.bf16.gmra.mxu1 %v1833_v59  ;;  %1674 = vmatprep.mubr.bf16.mxu0 %v1834_v60 }
  0x74   :  { %1754 = vmatprep.mubr.bf16.mxu1 %v1835_v61 }
  0x7a   :  { %1675 = vmatmul.mubr.bf16.gmra.mxu0 %v1836_v62 }
  0x7b   :  { %1755 = vmatmul.mubr.bf16.gmra.mxu1 %v1837_v63  ;;  %1678 = vmatprep.mubr.bf16.mxu0 %v1838_v0 }
  0x7c   :  { %1758 = vmatprep.mubr.bf16.mxu1 %v1839_v1 }
  0x82   :  { %1679 = vmatmul.mubr.bf16.gmra.mxu0 %v1840_v2 }
  0x83   :  { %1759 = vmatmul.mubr.bf16.gmra.mxu1 %v1841_v3  ;;  %1682 = vmatprep.mubr.bf16.mxu0 %v1842_v4 }
  0x84   :  { %1762 = vmatprep.mubr.bf16.mxu1 %v1843_v5 }
  0x8a   :  { %1683 = vmatmul.mubr.bf16.gmra.mxu0 %v1844_v6 }
  0x8b   :  { %1763 = vmatmul.mubr.bf16.gmra.mxu1 %v1845_v7  ;;  %1686 = vmatprep.mubr.bf16.mxu0 %v1846_v8 }
  0x8c   :  { %1766 = vmatprep.mubr.bf16.mxu1 %v1847_v9 }
  0x92   :  { %1687 = vmatmul.mubr.bf16.gmra.mxu0 %v1848_v10 }
  0x93   :  { %1767 = vmatmul.mubr.bf16.gmra.mxu1 %v1849_v11  ;;  %1690 = vmatprep.mubr.bf16.mxu0 %v1850_v12 }
  0x94   :  { %1770 = vmatprep.mubr.bf16.mxu1 %v1851_v13 }
  0x9a   :  { %1691 = vmatmul.mubr.bf16.gmra.mxu0 %v1852_v14 }
  0x9b   :  { %1771 = vmatmul.mubr.bf16.gmra.mxu1 %v1853_v15 }
  0xe2   :  { %v1632_v18 = vpop.f32.mrf.mxu0 }
  0xe3   :  { %v394_v19 = vadd.f32 %v1632_v18, %v2132_v16  ;;  %v1712_v20 = vpop.f32.mrf.mxu1 }
  0xe4   :  { %v1010_v21 = vadd.f32 %v1712_v20, %v2137_v17  ;;  %v385_v22 = vpop.f32.mrf.mxu0 }
  0xe5   :  { %v386_v23 = vadd.f32 %v2132_v16, %v385_v22  ;;  %v1001_v24 = vpop.f32.mrf.mxu1 }
  0xe6   :  { %v1258_v25 = vadd.f32 %v1010_v21, %v394_v19  ;;  %v1002_v26 = vadd.f32 %v2137_v17, %v1001_v24  ;;  %v1633_v27 = vpop.f32.mrf.mxu0 }
  0xe7   :  { %v397_v28 = vadd.f32 %v1633_v27, %v2132_v16  ;;  %v1713_v29 = vpop.f32.mrf.mxu1 }
  0xe8   :  { %v1322_v30 = vmax.f32 %v1258_v25, 0.0  ;;  %v1256_v31 = vadd.f32 %v1002_v26, %v386_v23  ;;  %v1013_v32 = vadd.f32 %v1713_v29, %v2137_v17  ;;  %v388_v33 = vpop.f32.mrf.mxu0 }
  0xe9   :  { %v389_v34 = vadd.f32 %v2132_v16, %v388_v33  ;;  %v1004_v35 = vpop.f32.mrf.mxu1 }
  0xea   :  { %1386 = vst [vmem:[%s2465_s6 + $0x10] sm:$0xff] %v1322_v30  ;;  %v1320_v36 = vmax.f32 %v1256_v31, 0.0  ;;  %v1259_v37 = vadd.f32 %v1013_v32, %v397_v28  ;;  %v1005_v38 = vadd.f32 %v2137_v17, %v1004_v35  ;;  %v1636_v39 = vpop.f32.mrf.mxu0 }
  0xeb   :  { %v410_v40 = vadd.f32 %v1636_v39, %v2132_v16  ;;  %v1716_v41 = vpop.f32.mrf.mxu1 }
  0xec   :  { %1384 = vst [vmem:[%s2465_s6] sm:$0xff] %v1320_v36  ;;  %v1323_v42 = vmax.f32 %v1259_v37, 0.0  ;;  %v1257_v43 = vadd.f32 %v1005_v38, %v389_v34  ;;  %v1026_v44 = vadd.f32 %v1716_v41, %v2137_v17  ;;  %v401_v45 = vpop.f32.mrf.mxu0 }
  0xed   :  { %v402_v46 = vadd.f32 %v2132_v16, %v401_v45  ;;  %v1017_v47 = vpop.f32.mrf.mxu1 }
  0xee   :  { %1387 = vst [vmem:[%s2465_s6 + $0x18] sm:$0xff] %v1323_v42  ;;  %v1321_v48 = vmax.f32 %v1257_v43, 0.0  ;;  %v1262_v49 = vadd.f32 %v1026_v44, %v410_v40  ;;  %v1018_v50 = vadd.f32 %v2137_v17, %v1017_v47  ;;  %v1637_v51 = vpop.f32.mrf.mxu0 }
  0xef   :  { %v413_v52 = vadd.f32 %v1637_v51, %v2132_v16  ;;  %v1717_v53 = vpop.f32.mrf.mxu1 }
  0xf0   :  { %1385 = vst [vmem:[%s2465_s6 + $0x8] sm:$0xff] %v1321_v48  ;;  %v1326_v54 = vmax.f32 %v1262_v49, 0.0  ;;  %v1260_v55 = vadd.f32 %v1018_v50, %v402_v46  ;;  %v1029_v56 = vadd.f32 %v1717_v53, %v2137_v17  ;;  %v404_v57 = vpop.f32.mrf.mxu0 }
  0xf1   :  { %v405_v58 = vadd.f32 %v2132_v16, %v404_v57  ;;  %v1020_v59 = vpop.f32.mrf.mxu1 }
  0xf2   :  { %1390 = vst [vmem:[%s2465_s6 + $0x30] sm:$0xff] %v1326_v54  ;;  %v1324_v60 = vmax.f32 %v1260_v55, 0.0  ;;  %v1263_v61 = vadd.f32 %v1029_v56, %v413_v52  ;;  %v1021_v62 = vadd.f32 %v2137_v17, %v1020_v59  ;;  %v1640_v63 = vpop.f32.mrf.mxu0 }
  0xf3   :  { %v426_v0 = vadd.f32 %v1640_v63, %v2132_v16  ;;  %v1720_v1 = vpop.f32.mrf.mxu1 }
  0xf4   :  { %1388 = vst [vmem:[%s2465_s6 + $0x20] sm:$0xff] %v1324_v60  ;;  %v1327_v2 = vmax.f32 %v1263_v61, 0.0  ;;  %v1261_v3 = vadd.f32 %v1021_v62, %v405_v58  ;;  %v1042_v4 = vadd.f32 %v1720_v1, %v2137_v17  ;;  %v417_v5 = vpop.f32.mrf.mxu0 }
  0xf5   :  { %v418_v6 = vadd.f32 %v2132_v16, %v417_v5  ;;  %v1033_v7 = vpop.f32.mrf.mxu1 }
  0xf6   :  { %1391 = vst [vmem:[%s2465_s6 + $0x38] sm:$0xff] %v1327_v2  ;;  %v1325_v8 = vmax.f32 %v1261_v3, 0.0  ;;  %v1266_v9 = vadd.f32 %v1042_v4, %v426_v0  ;;  %v1034_v10 = vadd.f32 %v2137_v17, %v1033_v7  ;;  %v1641_v11 = vpop.f32.mrf.mxu0 }
  0xf7   :  { %v429_v12 = vadd.f32 %v1641_v11, %v2132_v16  ;;  %v1721_v13 = vpop.f32.mrf.mxu1 }
  0xf8   :  { %1389 = vst [vmem:[%s2465_s6 + $0x28] sm:$0xff] %v1325_v8  ;;  %v1330_v14 = vmax.f32 %v1266_v9, 0.0  ;;  %v1264_v15 = vadd.f32 %v1034_v10, %v418_v6  ;;  %v1045_v18 = vadd.f32 %v1721_v13, %v2137_v17  ;;  %v420_v19 = vpop.f32.mrf.mxu0 }
  0xf9   :  { %v421_v20 = vadd.f32 %v2132_v16, %v420_v19  ;;  %v1036_v21 = vpop.f32.mrf.mxu1 }
  0xfa   :  { %1394 = vst [vmem:[%s2465_s6 + $0x50] sm:$0xff] %v1330_v14  ;;  %v1328_v22 = vmax.f32 %v1264_v15, 0.0  ;;  %v1267_v23 = vadd.f32 %v1045_v18, %v429_v12  ;;  %v1037_v24 = vadd.f32 %v2137_v17, %v1036_v21  ;;  %v1644_v25 = vpop.f32.mrf.mxu0 }
  0xfb   :  { %v442_v26 = vadd.f32 %v1644_v25, %v2132_v16  ;;  %v1724_v27 = vpop.f32.mrf.mxu1 }
  0xfc   :  { %1392 = vst [vmem:[%s2465_s6 + $0x40] sm:$0xff] %v1328_v22  ;;  %v1331_v28 = vmax.f32 %v1267_v23, 0.0  ;;  %v1265_v29 = vadd.f32 %v1037_v24, %v421_v20  ;;  %v1058_v30 = vadd.f32 %v1724_v27, %v2137_v17  ;;  %v433_v31 = vpop.f32.mrf.mxu0 }
  0xfd   :  { %v434_v32 = vadd.f32 %v2132_v16, %v433_v31  ;;  %v1049_v33 = vpop.f32.mrf.mxu1 }
  0xfe   :  { %1395 = vst [vmem:[%s2465_s6 + $0x58] sm:$0xff] %v1331_v28  ;;  %v1329_v34 = vmax.f32 %v1265_v29, 0.0  ;;  %v1270_v35 = vadd.f32 %v1058_v30, %v442_v26  ;;  %v1050_v36 = vadd.f32 %v2137_v17, %v1049_v33  ;;  %v1645_v37 = vpop.f32.mrf.mxu0 }
  0xff   :  { %v445_v38 = vadd.f32 %v1645_v37, %v2132_v16  ;;  %v1725_v39 = vpop.f32.mrf.mxu1 }
 0x100   :  { %1393 = vst [vmem:[%s2465_s6 + $0x48] sm:$0xff] %v1329_v34  ;;  %v1334_v40 = vmax.f32 %v1270_v35, 0.0  ;;  %v1268_v41 = vadd.f32 %v1050_v36, %v434_v32  ;;  %v1061_v42 = vadd.f32 %v1725_v39, %v2137_v17  ;;  %v436_v43 = vpop.f32.mrf.mxu0 }
 0x101   :  { %v437_v44 = vadd.f32 %v2132_v16, %v436_v43  ;;  %v1052_v45 = vpop.f32.mrf.mxu1 }
 0x102   :  { %1398 = vst [vmem:[%s2465_s6 + $0x70] sm:$0xff] %v1334_v40  ;;  %v1332_v46 = vmax.f32 %v1268_v41, 0.0  ;;  %v1271_v47 = vadd.f32 %v1061_v42, %v445_v38  ;;  %v1053_v48 = vadd.f32 %v2137_v17, %v1052_v45  ;;  %v1648_v49 = vpop.f32.mrf.mxu0 }
 0x103   :  { %v458_v50 = vadd.f32 %v1648_v49, %v2132_v16  ;;  %v1728_v51 = vpop.f32.mrf.mxu1 }
 0x104   :  { %1396 = vst [vmem:[%s2465_s6 + $0x60] sm:$0xff] %v1332_v46  ;;  %v1335_v52 = vmax.f32 %v1271_v47, 0.0  ;;  %v1269_v53 = vadd.f32 %v1053_v48, %v437_v44  ;;  %v1074_v54 = vadd.f32 %v1728_v51, %v2137_v17  ;;  %v449_v55 = vpop.f32.mrf.mxu0 }
 0x105   :  { %v450_v56 = vadd.f32 %v2132_v16, %v449_v55  ;;  %v1065_v57 = vpop.f32.mrf.mxu1 }
 0x106   :  { %1399 = vst [vmem:[%s2465_s6 + $0x78] sm:$0xff] %v1335_v52  ;;  %v1333_v58 = vmax.f32 %v1269_v53, 0.0  ;;  %v1274_v59 = vadd.f32 %v1074_v54, %v458_v50  ;;  %v1066_v60 = vadd.f32 %v2137_v17, %v1065_v57  ;;  %v1649_v61 = vpop.f32.mrf.mxu0 }
 0x107   :  { %v461_v62 = vadd.f32 %v1649_v61, %v2132_v16  ;;  %v1729_v63 = vpop.f32.mrf.mxu1 }
 0x108   :  { %1397 = vst [vmem:[%s2465_s6 + $0x68] sm:$0xff] %v1333_v58  ;;  %v1338_v0 = vmax.f32 %v1274_v59, 0.0  ;;  %v1272_v1 = vadd.f32 %v1066_v60, %v450_v56  ;;  %v1077_v2 = vadd.f32 %v1729_v63, %v2137_v17  ;;  %v452_v3 = vpop.f32.mrf.mxu0 }
 0x109   :  { %v453_v4 = vadd.f32 %v2132_v16, %v452_v3  ;;  %v1068_v5 = vpop.f32.mrf.mxu1 }
 0x10a   :  { %1402 = vst [vmem:[%s2465_s6 + $0x90] sm:$0xff] %v1338_v0  ;;  %v1336_v6 = vmax.f32 %v1272_v1, 0.0  ;;  %v1275_v7 = vadd.f32 %v1077_v2, %v461_v62  ;;  %v1069_v8 = vadd.f32 %v2137_v17, %v1068_v5  ;;  %v1652_v9 = vpop.f32.mrf.mxu0 }
 0x10b   :  { %v474_v10 = vadd.f32 %v1652_v9, %v2132_v16  ;;  %v1732_v11 = vpop.f32.mrf.mxu1 }
 0x10c   :  { %1400 = vst [vmem:[%s2465_s6 + $0x80] sm:$0xff] %v1336_v6  ;;  %v1339_v12 = vmax.f32 %v1275_v7, 0.0  ;;  %v1273_v13 = vadd.f32 %v1069_v8, %v453_v4  ;;  %v1090_v14 = vadd.f32 %v1732_v11, %v2137_v17  ;;  %v465_v15 = vpop.f32.mrf.mxu0 }
 0x10d   :  { %v466_v18 = vadd.f32 %v2132_v16, %v465_v15  ;;  %v1081_v19 = vpop.f32.mrf.mxu1 }
 0x10e   :  { %1403 = vst [vmem:[%s2465_s6 + $0x98] sm:$0xff] %v1339_v12  ;;  %v1337_v20 = vmax.f32 %v1273_v13, 0.0  ;;  %v1278_v21 = vadd.f32 %v1090_v14, %v474_v10  ;;  %v1082_v22 = vadd.f32 %v2137_v17, %v1081_v19  ;;  %v1653_v23 = vpop.f32.mrf.mxu0 }
 0x10f   :  { %v477_v24 = vadd.f32 %v1653_v23, %v2132_v16  ;;  %v1733_v25 = vpop.f32.mrf.mxu1 }
 0x110   :  { %1401 = vst [vmem:[%s2465_s6 + $0x88] sm:$0xff] %v1337_v20  ;;  %v1342_v26 = vmax.f32 %v1278_v21, 0.0  ;;  %v1276_v27 = vadd.f32 %v1082_v22, %v466_v18  ;;  %v1093_v28 = vadd.f32 %v1733_v25, %v2137_v17  ;;  %v468_v29 = vpop.f32.mrf.mxu0 }
 0x111   :  { %v469_v30 = vadd.f32 %v2132_v16, %v468_v29  ;;  %v1084_v31 = vpop.f32.mrf.mxu1 }
 0x112   :  { %1406 = vst [vmem:[%s2465_s6 + $0xb0] sm:$0xff] %v1342_v26  ;;  %v1340_v32 = vmax.f32 %v1276_v27, 0.0  ;;  %v1279_v33 = vadd.f32 %v1093_v28, %v477_v24  ;;  %v1085_v34 = vadd.f32 %v2137_v17, %v1084_v31  ;;  %v1656_v35 = vpop.f32.mrf.mxu0 }
 0x113   :  { %v490_v36 = vadd.f32 %v1656_v35, %v2132_v16  ;;  %v1736_v37 = vpop.f32.mrf.mxu1 }
 0x114   :  { %1404 = vst [vmem:[%s2465_s6 + $0xa0] sm:$0xff] %v1340_v32  ;;  %v1343_v38 = vmax.f32 %v1279_v33, 0.0  ;;  %v1277_v39 = vadd.f32 %v1085_v34, %v469_v30  ;;  %v1106_v40 = vadd.f32 %v1736_v37, %v2137_v17  ;;  %v481_v41 = vpop.f32.mrf.mxu0 }
 0x115   :  { %v482_v42 = vadd.f32 %v2132_v16, %v481_v41  ;;  %v1097_v43 = vpop.f32.mrf.mxu1 }
 0x116   :  { %1407 = vst [vmem:[%s2465_s6 + $0xb8] sm:$0xff] %v1343_v38  ;;  %v1341_v44 = vmax.f32 %v1277_v39, 0.0  ;;  %v1282_v45 = vadd.f32 %v1106_v40, %v490_v36  ;;  %v1098_v46 = vadd.f32 %v2137_v17, %v1097_v43  ;;  %v1657_v47 = vpop.f32.mrf.mxu0 }
 0x117   :  { %v493_v48 = vadd.f32 %v1657_v47, %v2132_v16  ;;  %v1737_v49 = vpop.f32.mrf.mxu1 }
 0x118   :  { %1405 = vst [vmem:[%s2465_s6 + $0xa8] sm:$0xff] %v1341_v44  ;;  %v1346_v50 = vmax.f32 %v1282_v45, 0.0  ;;  %v1280_v51 = vadd.f32 %v1098_v46, %v482_v42  ;;  %v1109_v52 = vadd.f32 %v1737_v49, %v2137_v17  ;;  %v484_v53 = vpop.f32.mrf.mxu0 }
 0x119   :  { %v485_v54 = vadd.f32 %v2132_v16, %v484_v53  ;;  %v1100_v55 = vpop.f32.mrf.mxu1 }
 0x11a   :  { %1410 = vst [vmem:[%s2465_s6 + $0xd0] sm:$0xff] %v1346_v50  ;;  %v1344_v56 = vmax.f32 %v1280_v51, 0.0  ;;  %v1283_v57 = vadd.f32 %v1109_v52, %v493_v48  ;;  %v1101_v58 = vadd.f32 %v2137_v17, %v1100_v55  ;;  %v1660_v59 = vpop.f32.mrf.mxu0 }
 0x11b   :  { %v506_v60 = vadd.f32 %v1660_v59, %v2132_v16  ;;  %v1740_v61 = vpop.f32.mrf.mxu1 }
 0x11c   :  { %1408 = vst [vmem:[%s2465_s6 + $0xc0] sm:$0xff] %v1344_v56  ;;  %v1347_v62 = vmax.f32 %v1283_v57, 0.0  ;;  %v1281_v63 = vadd.f32 %v1101_v58, %v485_v54  ;;  %v1122_v0 = vadd.f32 %v1740_v61, %v2137_v17  ;;  %v497_v1 = vpop.f32.mrf.mxu0 }
 0x11d   :  { %v498_v2 = vadd.f32 %v2132_v16, %v497_v1  ;;  %v1113_v3 = vpop.f32.mrf.mxu1 }
 0x11e   :  { %1411 = vst [vmem:[%s2465_s6 + $0xd8] sm:$0xff] %v1347_v62  ;;  %v1345_v4 = vmax.f32 %v1281_v63, 0.0  ;;  %v1286_v5 = vadd.f32 %v1122_v0, %v506_v60  ;;  %v1114_v6 = vadd.f32 %v2137_v17, %v1113_v3  ;;  %v1661_v7 = vpop.f32.mrf.mxu0 }
 0x11f   :  { %v509_v8 = vadd.f32 %v1661_v7, %v2132_v16  ;;  %v1741_v9 = vpop.f32.mrf.mxu1 }
 0x120   :  { %1409 = vst [vmem:[%s2465_s6 + $0xc8] sm:$0xff] %v1345_v4  ;;  %v1350_v10 = vmax.f32 %v1286_v5, 0.0  ;;  %v1284_v11 = vadd.f32 %v1114_v6, %v498_v2  ;;  %v1125_v12 = vadd.f32 %v1741_v9, %v2137_v17  ;;  %v500_v13 = vpop.f32.mrf.mxu0 }
 0x121   :  { %v501_v14 = vadd.f32 %v2132_v16, %v500_v13  ;;  %v1116_v15 = vpop.f32.mrf.mxu1 }
 0x122   :  { %1414 = vst [vmem:[%s2465_s6 + $0xf0] sm:$0xff] %v1350_v10  ;;  %v1348_v18 = vmax.f32 %v1284_v11, 0.0  ;;  %v1287_v19 = vadd.f32 %v1125_v12, %v509_v8  ;;  %v1117_v20 = vadd.f32 %v2137_v17, %v1116_v15  ;;  %v1664_v21 = vpop.f32.mrf.mxu0 }
 0x123   :  { %v522_v22 = vadd.f32 %v1664_v21, %v2132_v16  ;;  %v1744_v23 = vpop.f32.mrf.mxu1 }
 0x124   :  { %1412 = vst [vmem:[%s2465_s6 + $0xe0] sm:$0xff] %v1348_v18  ;;  %v1351_v24 = vmax.f32 %v1287_v19, 0.0  ;;  %v1285_v25 = vadd.f32 %v1117_v20, %v501_v14  ;;  %v1138_v26 = vadd.f32 %v1744_v23, %v2137_v17  ;;  %v513_v27 = vpop.f32.mrf.mxu0 }
 0x125   :  { %v514_v28 = vadd.f32 %v2132_v16, %v513_v27  ;;  %v1129_v29 = vpop.f32.mrf.mxu1 }
 0x126   :  { %1415 = vst [vmem:[%s2465_s6 + $0xf8] sm:$0xff] %v1351_v24  ;;  %v1349_v30 = vmax.f32 %v1285_v25, 0.0  ;;  %v1290_v31 = vadd.f32 %v1138_v26, %v522_v22  ;;  %v1130_v32 = vadd.f32 %v2137_v17, %v1129_v29  ;;  %v1665_v33 = vpop.f32.mrf.mxu0 }
 0x127   :  { %v525_v34 = vadd.f32 %v1665_v33, %v2132_v16  ;;  %v1745_v35 = vpop.f32.mrf.mxu1 }
 0x128   :  { %1413 = vst [vmem:[%s2465_s6 + $0xe8] sm:$0xff] %v1349_v30  ;;  %v1354_v36 = vmax.f32 %v1290_v31, 0.0  ;;  %v1288_v37 = vadd.f32 %v1130_v32, %v514_v28  ;;  %v1141_v38 = vadd.f32 %v1745_v35, %v2137_v17  ;;  %v516_v39 = vpop.f32.mrf.mxu0 }
 0x129   :  { %v517_v40 = vadd.f32 %v2132_v16, %v516_v39  ;;  %v1132_v41 = vpop.f32.mrf.mxu1 }
 0x12a   :  { %1418 = vst [vmem:[%s2465_s6 + $0x110] sm:$0xff] %v1354_v36  ;;  %v1352_v42 = vmax.f32 %v1288_v37, 0.0  ;;  %v1291_v43 = vadd.f32 %v1141_v38, %v525_v34  ;;  %v1133_v44 = vadd.f32 %v2137_v17, %v1132_v41  ;;  %v1668_v45 = vpop.f32.mrf.mxu0 }
 0x12b   :  { %v538_v46 = vadd.f32 %v1668_v45, %v2132_v16  ;;  %v1748_v47 = vpop.f32.mrf.mxu1 }
 0x12c   :  { %1416 = vst [vmem:[%s2465_s6 + $0x100] sm:$0xff] %v1352_v42  ;;  %v1355_v48 = vmax.f32 %v1291_v43, 0.0  ;;  %v1289_v49 = vadd.f32 %v1133_v44, %v517_v40  ;;  %v1154_v50 = vadd.f32 %v1748_v47, %v2137_v17  ;;  %v529_v51 = vpop.f32.mrf.mxu0 }
 0x12d   :  { %v530_v52 = vadd.f32 %v2132_v16, %v529_v51  ;;  %v1145_v53 = vpop.f32.mrf.mxu1 }
 0x12e   :  { %1419 = vst [vmem:[%s2465_s6 + $0x118] sm:$0xff] %v1355_v48  ;;  %v1353_v54 = vmax.f32 %v1289_v49, 0.0  ;;  %v1294_v55 = vadd.f32 %v1154_v50, %v538_v46  ;;  %v1146_v56 = vadd.f32 %v2137_v17, %v1145_v53  ;;  %v1669_v57 = vpop.f32.mrf.mxu0 }
 0x12f   :  { %v541_v58 = vadd.f32 %v1669_v57, %v2132_v16  ;;  %v1749_v59 = vpop.f32.mrf.mxu1 }
 0x130   :  { %1417 = vst [vmem:[%s2465_s6 + $0x108] sm:$0xff] %v1353_v54  ;;  %v1358_v60 = vmax.f32 %v1294_v55, 0.0  ;;  %v1292_v61 = vadd.f32 %v1146_v56, %v530_v52  ;;  %v1157_v62 = vadd.f32 %v1749_v59, %v2137_v17  ;;  %v532_v63 = vpop.f32.mrf.mxu0 }
 0x131   :  { %v533_v0 = vadd.f32 %v2132_v16, %v532_v63  ;;  %v1148_v1 = vpop.f32.mrf.mxu1 }
 0x132   :  { %1422 = vst [vmem:[%s2465_s6 + $0x130] sm:$0xff] %v1358_v60  ;;  %v1356_v2 = vmax.f32 %v1292_v61, 0.0  ;;  %v1295_v3 = vadd.f32 %v1157_v62, %v541_v58  ;;  %v1149_v4 = vadd.f32 %v2137_v17, %v1148_v1  ;;  %v1672_v5 = vpop.f32.mrf.mxu0 }
 0x133   :  { %v554_v6 = vadd.f32 %v1672_v5, %v2132_v16  ;;  %v1752_v7 = vpop.f32.mrf.mxu1 }
 0x134   :  { %1420 = vst [vmem:[%s2465_s6 + $0x120] sm:$0xff] %v1356_v2  ;;  %v1359_v8 = vmax.f32 %v1295_v3, 0.0  ;;  %v1293_v9 = vadd.f32 %v1149_v4, %v533_v0  ;;  %v1170_v10 = vadd.f32 %v1752_v7, %v2137_v17  ;;  %v545_v11 = vpop.f32.mrf.mxu0 }
 0x135   :  { %v546_v12 = vadd.f32 %v2132_v16, %v545_v11  ;;  %v1161_v13 = vpop.f32.mrf.mxu1 }
 0x136   :  { %1423 = vst [vmem:[%s2465_s6 + $0x138] sm:$0xff] %v1359_v8  ;;  %v1357_v14 = vmax.f32 %v1293_v9, 0.0  ;;  %v1298_v15 = vadd.f32 %v1170_v10, %v554_v6  ;;  %v1162_v18 = vadd.f32 %v2137_v17, %v1161_v13  ;;  %v1673_v19 = vpop.f32.mrf.mxu0 }
 0x137   :  { %v557_v20 = vadd.f32 %v1673_v19, %v2132_v16  ;;  %v1753_v21 = vpop.f32.mrf.mxu1 }
 0x138   :  { %1421 = vst [vmem:[%s2465_s6 + $0x128] sm:$0xff] %v1357_v14  ;;  %v1362_v22 = vmax.f32 %v1298_v15, 0.0  ;;  %v1296_v23 = vadd.f32 %v1162_v18, %v546_v12  ;;  %v1173_v24 = vadd.f32 %v1753_v21, %v2137_v17  ;;  %v548_v25 = vpop.f32.mrf.mxu0 }
 0x139   :  { %v549_v26 = vadd.f32 %v2132_v16, %v548_v25  ;;  %v1164_v27 = vpop.f32.mrf.mxu1 }
 0x13a   :  { %1426 = vst [vmem:[%s2465_s6 + $0x150] sm:$0xff] %v1362_v22  ;;  %v1360_v28 = vmax.f32 %v1296_v23, 0.0  ;;  %v1299_v29 = vadd.f32 %v1173_v24, %v557_v20  ;;  %v1165_v30 = vadd.f32 %v2137_v17, %v1164_v27  ;;  %v1676_v31 = vpop.f32.mrf.mxu0 }
 0x13b   :  { %v570_v32 = vadd.f32 %v1676_v31, %v2132_v16  ;;  %v1756_v33 = vpop.f32.mrf.mxu1 }
 0x13c   :  { %1424 = vst [vmem:[%s2465_s6 + $0x140] sm:$0xff] %v1360_v28  ;;  %v1363_v34 = vmax.f32 %v1299_v29, 0.0  ;;  %v1297_v35 = vadd.f32 %v1165_v30, %v549_v26  ;;  %v1186_v36 = vadd.f32 %v1756_v33, %v2137_v17  ;;  %v561_v37 = vpop.f32.mrf.mxu0 }
 0x13d   :  { %v562_v38 = vadd.f32 %v2132_v16, %v561_v37  ;;  %v1177_v39 = vpop.f32.mrf.mxu1 }
 0x13e   :  { %1427 = vst [vmem:[%s2465_s6 + $0x158] sm:$0xff] %v1363_v34  ;;  %v1361_v40 = vmax.f32 %v1297_v35, 0.0  ;;  %v1302_v41 = vadd.f32 %v1186_v36, %v570_v32  ;;  %v1178_v42 = vadd.f32 %v2137_v17, %v1177_v39  ;;  %v1677_v43 = vpop.f32.mrf.mxu0 }
 0x13f   :  { %v573_v44 = vadd.f32 %v1677_v43, %v2132_v16  ;;  %v1757_v45 = vpop.f32.mrf.mxu1 }
 0x140   :  { %1425 = vst [vmem:[%s2465_s6 + $0x148] sm:$0xff] %v1361_v40  ;;  %v1366_v46 = vmax.f32 %v1302_v41, 0.0  ;;  %v1300_v47 = vadd.f32 %v1178_v42, %v562_v38  ;;  %v1189_v48 = vadd.f32 %v1757_v45, %v2137_v17  ;;  %v564_v49 = vpop.f32.mrf.mxu0 }
 0x141   :  { %v565_v50 = vadd.f32 %v2132_v16, %v564_v49  ;;  %v1180_v51 = vpop.f32.mrf.mxu1 }
 0x142   :  { %1430 = vst [vmem:[%s2465_s6 + $0x170] sm:$0xff] %v1366_v46  ;;  %v1364_v52 = vmax.f32 %v1300_v47, 0.0  ;;  %v1303_v53 = vadd.f32 %v1189_v48, %v573_v44  ;;  %v1181_v54 = vadd.f32 %v2137_v17, %v1180_v51  ;;  %v1680_v55 = vpop.f32.mrf.mxu0 }
 0x143   :  { %v586_v56 = vadd.f32 %v1680_v55, %v2132_v16  ;;  %v1760_v57 = vpop.f32.mrf.mxu1 }
 0x144   :  { %1428 = vst [vmem:[%s2465_s6 + $0x160] sm:$0xff] %v1364_v52  ;;  %v1367_v58 = vmax.f32 %v1303_v53, 0.0  ;;  %v1301_v59 = vadd.f32 %v1181_v54, %v565_v50  ;;  %v1202_v60 = vadd.f32 %v1760_v57, %v2137_v17  ;;  %v577_v61 = vpop.f32.mrf.mxu0 }
 0x145   :  { %v578_v62 = vadd.f32 %v2132_v16, %v577_v61  ;;  %v1193_v63 = vpop.f32.mrf.mxu1 }
 0x146   :  { %1431 = vst [vmem:[%s2465_s6 + $0x178] sm:$0xff] %v1367_v58  ;;  %v1365_v0 = vmax.f32 %v1301_v59, 0.0  ;;  %v1306_v1 = vadd.f32 %v1202_v60, %v586_v56  ;;  %v1194_v2 = vadd.f32 %v2137_v17, %v1193_v63  ;;  %v1681_v3 = vpop.f32.mrf.mxu0 }
 0x147   :  { %v589_v4 = vadd.f32 %v1681_v3, %v2132_v16  ;;  %v1761_v5 = vpop.f32.mrf.mxu1 }
 0x148   :  { %1429 = vst [vmem:[%s2465_s6 + $0x168] sm:$0xff] %v1365_v0  ;;  %v1370_v6 = vmax.f32 %v1306_v1, 0.0  ;;  %v1304_v7 = vadd.f32 %v1194_v2, %v578_v62  ;;  %v1205_v8 = vadd.f32 %v1761_v5, %v2137_v17  ;;  %v580_v9 = vpop.f32.mrf.mxu0 }
 0x149   :  { %v581_v10 = vadd.f32 %v2132_v16, %v580_v9  ;;  %v1196_v11 = vpop.f32.mrf.mxu1 }
 0x14a   :  { %1434 = vst [vmem:[%s2465_s6 + $0x190] sm:$0xff] %v1370_v6  ;;  %v1368_v12 = vmax.f32 %v1304_v7, 0.0  ;;  %v1307_v13 = vadd.f32 %v1205_v8, %v589_v4  ;;  %v1197_v14 = vadd.f32 %v2137_v17, %v1196_v11  ;;  %v1684_v15 = vpop.f32.mrf.mxu0 }
 0x14b   :  { %v602_v18 = vadd.f32 %v1684_v15, %v2132_v16  ;;  %v1764_v19 = vpop.f32.mrf.mxu1 }
 0x14c   :  { %1432 = vst [vmem:[%s2465_s6 + $0x180] sm:$0xff] %v1368_v12  ;;  %v1371_v20 = vmax.f32 %v1307_v13, 0.0  ;;  %v1305_v21 = vadd.f32 %v1197_v14, %v581_v10  ;;  %v1218_v22 = vadd.f32 %v1764_v19, %v2137_v17  ;;  %v593_v23 = vpop.f32.mrf.mxu0 }
 0x14d   :  { %v594_v24 = vadd.f32 %v2132_v16, %v593_v23  ;;  %v1209_v25 = vpop.f32.mrf.mxu1 }
 0x14e   :  { %1435 = vst [vmem:[%s2465_s6 + $0x198] sm:$0xff] %v1371_v20  ;;  %v1369_v26 = vmax.f32 %v1305_v21, 0.0  ;;  %v1310_v27 = vadd.f32 %v1218_v22, %v602_v18  ;;  %v1210_v28 = vadd.f32 %v2137_v17, %v1209_v25  ;;  %v1685_v29 = vpop.f32.mrf.mxu0 }
 0x14f   :  { %v605_v30 = vadd.f32 %v1685_v29, %v2132_v16  ;;  %v1765_v31 = vpop.f32.mrf.mxu1 }
 0x150   :  { %1433 = vst [vmem:[%s2465_s6 + $0x188] sm:$0xff] %v1369_v26  ;;  %v1374_v32 = vmax.f32 %v1310_v27, 0.0  ;;  %v1308_v33 = vadd.f32 %v1210_v28, %v594_v24  ;;  %v1221_v34 = vadd.f32 %v1765_v31, %v2137_v17  ;;  %v596_v35 = vpop.f32.mrf.mxu0 }
 0x151   :  { %v597_v36 = vadd.f32 %v2132_v16, %v596_v35  ;;  %v1212_v37 = vpop.f32.mrf.mxu1 }
 0x152   :  { %1438 = vst [vmem:[%s2465_s6 + $0x1b0] sm:$0xff] %v1374_v32  ;;  %v1372_v38 = vmax.f32 %v1308_v33, 0.0  ;;  %v1311_v39 = vadd.f32 %v1221_v34, %v605_v30  ;;  %v1213_v40 = vadd.f32 %v2137_v17, %v1212_v37  ;;  %v1688_v41 = vpop.f32.mrf.mxu0 }
 0x153   :  { %v618_v42 = vadd.f32 %v1688_v41, %v2132_v16  ;;  %v1768_v43 = vpop.f32.mrf.mxu1 }
 0x154   :  { %1436 = vst [vmem:[%s2465_s6 + $0x1a0] sm:$0xff] %v1372_v38  ;;  %v1375_v44 = vmax.f32 %v1311_v39, 0.0  ;;  %v1309_v45 = vadd.f32 %v1213_v40, %v597_v36  ;;  %v1234_v46 = vadd.f32 %v1768_v43, %v2137_v17  ;;  %v609_v47 = vpop.f32.mrf.mxu0 }
 0x155   :  { %v610_v48 = vadd.f32 %v2132_v16, %v609_v47  ;;  %v1225_v49 = vpop.f32.mrf.mxu1 }
 0x156   :  { %1439 = vst [vmem:[%s2465_s6 + $0x1b8] sm:$0xff] %v1375_v44  ;;  %v1373_v50 = vmax.f32 %v1309_v45, 0.0  ;;  %v1314_v51 = vadd.f32 %v1234_v46, %v618_v42  ;;  %v1226_v52 = vadd.f32 %v2137_v17, %v1225_v49  ;;  %v1689_v53 = vpop.f32.mrf.mxu0 }
 0x157   :  { %v621_v54 = vadd.f32 %v1689_v53, %v2132_v16  ;;  %v1769_v55 = vpop.f32.mrf.mxu1 }
 0x158   :  { %1437 = vst [vmem:[%s2465_s6 + $0x1a8] sm:$0xff] %v1373_v50  ;;  %v1378_v56 = vmax.f32 %v1314_v51, 0.0  ;;  %v1312_v57 = vadd.f32 %v1226_v52, %v610_v48  ;;  %v1237_v58 = vadd.f32 %v1769_v55, %v2137_v17  ;;  %v612_v59 = vpop.f32.mrf.mxu0 }
 0x159   :  { %v613_v60 = vadd.f32 %v2132_v16, %v612_v59  ;;  %v1228_v61 = vpop.f32.mrf.mxu1 }
 0x15a   :  { %1442 = vst [vmem:[%s2465_s6 + $0x1d0] sm:$0xff] %v1378_v56  ;;  %v1376_v62 = vmax.f32 %v1312_v57, 0.0  ;;  %v1315_v63 = vadd.f32 %v1237_v58, %v621_v54  ;;  %v1229_v0 = vadd.f32 %v2137_v17, %v1228_v61  ;;  %v1692_v1 = vpop.f32.mrf.mxu0 }
 0x15b   :  { %v634_v2 = vadd.f32 %v1692_v1, %v2132_v16  ;;  %v1772_v3 = vpop.f32.mrf.mxu1 }
 0x15c   :  { %1440 = vst [vmem:[%s2465_s6 + $0x1c0] sm:$0xff] %v1376_v62  ;;  %v1379_v4 = vmax.f32 %v1315_v63, 0.0  ;;  %v1313_v5 = vadd.f32 %v1229_v0, %v613_v60  ;;  %v1250_v6 = vadd.f32 %v1772_v3, %v2137_v17  ;;  %v625_v7 = vpop.f32.mrf.mxu0 }
 0x15d   :  { %v626_v8 = vadd.f32 %v2132_v16, %v625_v7  ;;  %v1241_v9 = vpop.f32.mrf.mxu1 }
 0x15e   :  { %1443 = vst [vmem:[%s2465_s6 + $0x1d8] sm:$0xff] %v1379_v4  ;;  %v1377_v10 = vmax.f32 %v1313_v5, 0.0  ;;  %v1318_v11 = vadd.f32 %v1250_v6, %v634_v2  ;;  %v1242_v12 = vadd.f32 %v2137_v17, %v1241_v9  ;;  %v1693_v13 = vpop.f32.mrf.mxu0 }
 0x15f   :  { %v637_v14 = vadd.f32 %v1693_v13, %v2132_v16  ;;  %v1773_v15 = vpop.f32.mrf.mxu1 }
 0x160   :  { %1441 = vst [vmem:[%s2465_s6 + $0x1c8] sm:$0xff] %v1377_v10  ;;  %v1382_v18 = vmax.f32 %v1318_v11, 0.0  ;;  %v1316_v19 = vadd.f32 %v1242_v12, %v626_v8  ;;  %v1253_v20 = vadd.f32 %v1773_v15, %v2137_v17  ;;  %v628_v21 = vpop.f32.mrf.mxu0 }
 0x161   :  { %v629_v22 = vadd.f32 %v2132_v16, %v628_v21  ;;  %v1244_v23 = vpop.f32.mrf.mxu1 }
 0x162   :  { %1446 = vst [vmem:[%s2465_s6 + $0x1f0] sm:$0xff] %v1382_v18  ;;  %v1380_v24 = vmax.f32 %v1316_v19, 0.0  ;;  %v1319_v25 = vadd.f32 %v1253_v20, %v637_v14  ;;  %v1245_v26 = vadd.f32 %v2137_v17, %v1244_v23 }
 0x164   :  { %1444 = vst [vmem:[%s2465_s6 + $0x1e0] sm:$0xff] %v1380_v24  ;;  %v1383_v27 = vmax.f32 %v1319_v25, 0.0  ;;  %v1317_v28 = vadd.f32 %v1245_v26, %v629_v22 }
 0x166   :  { %1447 = vst [vmem:[%s2465_s6 + $0x1f8] sm:$0xff] %v1383_v27  ;;  %v1381_v16 = vmax.f32 %v1317_v28, 0.0 }
 0x168   :  { %1445 = vst [vmem:[%s2465_s6 + $0x1e8] sm:$0xff] %v1381_v16 }

// kernel: bottleneck_forward.4
= control target key start
LH: loop header
LB: loop body
LE: loop exit
PB: predicated region body
PF: predicated region fallthrough
CT: control target
= control target key end

     0   :  { %s5507_s12 = smov 0   ;;  %s6995_s0 = inlined_call_operand.vmem [shape: bf16[2,336,128], index: 0, kind: input, shape index: {}]   ;;  %s6996_s1 = inlined_call_operand.vmem [shape: bf16[9,128,128], index: 1, kind: input, shape index: {}]   ;;  %s6997_s2 = inlined_call_operand.vmem [shape: f32[1,128], index: 2, kind: input, shape index: {}]   ;;  %s6998_s3 = inlined_call_operand.vmem [shape: bf16[2,288,128], index: 3, kind: output, shape index: {}]  }
   0x1 LB: > { %s4166_s13 = sadd.s32 4294967295, %s5485_s12   ;;  %p4170_p0 = scmp.ge.s32.totalorder %s5485_s12, 1  ;;  %s5485_s12 = sphi %s5507_s12, %s13_s12  }
   0x2   : > { %p137_p1 = scmp.lt.s32.totalorder %s5485_s12, 3 }
   0x4   : > { %p138_p2 = pnand %p4170_p0, %p137_p1 }
   0x6   : > { %141 = sbr.rel (%p138_p2) target bundleno = 574 (0x23e), region = 32 }
   0xb   : > { %v5345_v0 = vld [vmem:[%s6996_s1 + $0x78] sm:$0xff]   ;;  %p161_p3 = scmp.lt.s32.totalorder %s4166_s13, 1  ;;  %v5346_v1 = vld [vmem:[%s6996_s1 + $0x70] sm:$0xff]   ;;  %v5347_v2 = vld [vmem:[%s6996_s1 + $0x68] sm:$0xff]   ;;  %vm336_vm0 = vsmask.f32 7424 }
   0xc   : > { %5319 = vmatprep.subr.bf16.mxu1 %v5345_v0  ;;  %4851 = vmatprep.subr.bf16.mxu0 %v5345_v0  ;;  %v5348_v3 = vld [vmem:[%s6996_s1 + $0x60] sm:$0xff]   ;;  %v5349_v6 = vld [vmem:[%s6996_s1 + $0x58] sm:$0xff]   ;;  %v5350_v17 = vld [vmem:[%s6996_s1 + $0x50] sm:$0xff]   ;;  %vm992_vm1 = vcmask 1046528   ;;  %vm2264_vm2 = vcmask 1045504   ;;  %vm3536_vm4 = vcmask 1044480  }
   0xd   : > { %s7081_s13 = smov (!%p161_p3, %s4166_s13), 1  ;;  %5327 = vmatpush3.bf16.msra.mxu1 %v5345_v0  ;;  %4852 = vmatpush3.bf16.msra.mxu0 %v5345_v0  ;;  %v5351_v26 = vld [vmem:[%s6996_s1 + $0x48] sm:$0xff]   ;;  %v5352_v32 = vld [vmem:[%s6996_s1 + $0x40] sm:$0xff]   ;;  %v5356_v41 = vld [vmem:[%s6996_s1 + $0x38] sm:$0xff]   ;;  %vm1793_vm3 = vsmask.f32 6400 }
   0xe   : > { %5320 = vmatprep.subr.bf16.mxu1 %v5346_v1  ;;  %4853 = vmatprep.subr.bf16.mxu0 %v5346_v1  ;;  %s5335_s20 = smul.u32 168, %s7081_s13  ;;  %v5361_v47 = vld [vmem:[%s6996_s1 + $0xb8] sm:$0xff]   ;;  %v5360_v52 = vld [vmem:[%s6996_s1 + $0x30] sm:$0xff]   ;;  %vm3065_vm5 = vsmask.f32 5376 }
   0xf   : > { %v5364_v62 = vld [vmem:[%s6996_s1 + $0xb0] sm:$0xff]   ;;  %s5336_s18 = smul.u32 144, %s7081_s13 }
  0x10   : > { %s5530_s23 = scalar_lea.vmem %s6995_s0, %s5335_s20 }
  0x11   : > { %5328 = vmatpush3.bf16.msra.mxu1 %v5346_v1  ;;  %4854 = vmatpush3.bf16.msra.mxu0 %v5346_v1  ;;  %v5536_v4 = vld [vmem:[%s5530_s23 + $0x40] sm:$0xff]   ;;  %v5539_v5 = vld [vmem:[%s5530_s23 + $0x48] sm:$0xff]   ;;  %v5568_v22 = vld [vmem:[%s5530_s23 + $0x50] sm:$0xff]   ;;  %s6910_s13 = scalar_lea.vmem %s6998_s3, %s5336_s18 }
  0x12   : > { %5321 = vmatprep.subr.bf16.mxu1 %v5347_v2  ;;  %4855 = vmatprep.subr.bf16.mxu0 %v5347_v2  ;;  %v401_v7 = vshll.u32 %v5536_v4, 16  ;;  %v405_v8 = vshrl.u32 %v5536_v4, 16  ;;  %v409_v9 = vshll.u32 %v5539_v5, 16  ;;  %v173_v10 = vld [vmem:[%s5530_s23] sm:$0xf]  ;;  %v5557_v15 = vld [vmem:[%s5530_s23 + $0x8] sm:$0xff]  }
  0x13   : > { %v5551_v13 = vld [vmem:[%s5530_s23 + $0x4] sm:$0xf]  ;;  %v345_v20 = vshll.u32 %v5557_v15, 16  ;;  %v5571_v25 = vld [vmem:[%s5530_s23 + $0x10] sm:$0xff]   ;;  %v417_v28 = vshll.u32 %v5568_v22, 16  ;;  %v5578_v29 = vld [vmem:[%s5530_s23 + $0x58] sm:$0xff]  }
  0x14   : > { %v5548_v11 = vrot.slane %v401_v7, 1  ;;  %v411_v12 = vrot.slane %v409_v9, 1  ;;  %v5554_v14 = vcombine.low %v173_v10, %v5551_v13  ;;  %v413_v30 = vshrl.u32 %v5539_v5, 16  ;;  %v5588_v35 = vld [vmem:[%s5530_s23 + $0x18] sm:$0xff]   ;;  %v5593_v39 = vld [vmem:[%s5530_s23 + $0x60] sm:$0xff]   ;;  %v5607_v50 = vld [vmem:[%s5530_s23 + $0x68] sm:$0xff]  }
  0x15   : > { %5329 = vmatpush3.bf16.msra.mxu1 %v5347_v2  ;;  %4856 = vmatpush3.bf16.msra.mxu0 %v5347_v2  ;;  %v347_v24 = vrot.slane %v345_v20, 1  ;;  %v349_v33 = vshrl.u32 %v5557_v15, 16  ;;  %v353_v34 = vshll.u32 %v5571_v25, 16  ;;  %v419_v36 = vrot.slane %v417_v28, 1  ;;  %v5601_v46 = vld [vmem:[%s5530_s23 + $0x20] sm:$0xff]   ;;  %v5619_v60 = vld [vmem:[%s5530_s23 + $0x28] sm:$0xff]  }
  0x16   : > { %5322 = vmatprep.subr.bf16.mxu1 %v5348_v3  ;;  %4857 = vmatprep.subr.bf16.mxu0 %v5348_v3  ;;  %v407_v16 = vor.u32 %v405_v8, %v5548_v11  ;;  %v338_v18 = vshrl.u32 %v5554_v14, 16  ;;  %v340_v19 = vshll.u32 %v5554_v14, 16  ;;  %v421_v37 = vshrl.u32 %v5568_v22, 16  ;;  %v5628_v1 = vld [vmem:[%s5530_s23 + $0x70] sm:$0xff]   ;;  %v5365_v2 = vld [vmem:[%s6996_s1 + $0x28] sm:$0xff]  }
  0x17   : > { %v425_v38 = vshll.u32 %v5578_v29, 16  ;;  %v415_v40 = vor.u32 %v413_v30, %v411_v12  ;;  %v357_v42 = vshrl.u32 %v5571_v25, 16  ;;  %v361_v43 = vshll.u32 %v5588_v35, 16 }
  0x18   : > { %v412_v21 = vsel %vm336_vm0, %v407_v16, %v411_v12  ;;  %v342_v23 = vrot.slane %v340_v19, 1  ;;  %v351_v44 = vor.u32 %v349_v33, %v347_v24  ;;  %v355_v45 = vrot.slane %v353_v34, 1  ;;  %v5368_v16 = vld [vmem:[%s6996_s1 + $0xa8] sm:$0xff]   ;;  %v5655_v33 = vld [vmem:[%s5530_s23 + $0x38] sm:$0xff]   ;;  %v5372_v34 = vld [vmem:[%s6996_s1 + $0xa0] sm:$0xff]  }
  0x19   : > { %5330 = vmatpush3.bf16.msra.mxu1 %v5348_v3  ;;  %4858 = vmatpush3.bf16.msra.mxu0 %v5348_v3  ;;  %v423_v48 = vor.u32 %v421_v37, %v419_v36  ;;  %v427_v49 = vrot.slane %v425_v38, 1  ;;  %v420_v51 = vsel %vm336_vm0, %v415_v40, %v419_v36  ;;  %v429_v53 = vshrl.u32 %v5578_v29, 16  ;;  %v5664_v40 = vld [vmem:[%s5530_s23 + $0x80] sm:$0xff]  }
  0x1a   : > { %5323 = vmatprep.subr.bf16.mxu1 %v5349_v6  ;;  %4859 = vmatprep.subr.bf16.mxu0 %v5349_v6  ;;  %v343_v27 = vor.u32 %v342_v23, %v338_v18  ;;  %v359_v54 = vor.u32 %v357_v42, %v355_v45  ;;  %v363_v55 = vrot.slane %v361_v43, 1  ;;  %v356_v56 = vsel %vm336_vm0, %v351_v44, %v355_v45  ;;  %v5645_v23 = vld [vmem:[%s5530_s23 + $0x78] sm:$0xff]  }
  0x1b   : > { %4883 = vmatprep.mubr.bf16.mxu1 %v412_v21  ;;  %v433_v57 = vshll.u32 %v5593_v39, 16  ;;  %v365_v58 = vshrl.u32 %v5588_v35, 16  ;;  %v369_v59 = vshll.u32 %v5601_v46, 16  ;;  %v428_v61 = vsel %vm336_vm0, %v423_v48, %v427_v49 }
  0x1c   : > { %v348_v31 = vsel %vm336_vm0, %v343_v27, %v347_v24  ;;  %v437_v63 = vshrl.u32 %v5593_v39, 16  ;;  %v441_v0 = vshll.u32 %v5607_v50, 16  ;;  %v364_v3 = vsel %vm336_vm0, %v359_v54, %v363_v55  ;;  %v5370_v24 = vld [vmem:[%s6996_s1 + $0x20] sm:$0xff]  }
  0x1d   : > { %5331 = vmatpush3.bf16.msra.mxu1 %v5349_v6  ;;  %4860 = vmatpush3.bf16.msra.mxu0 %v5349_v6  ;;  %v373_v6 = vshrl.u32 %v5601_v46, 16  ;;  %v377_v7 = vshll.u32 %v5619_v60, 16  ;;  %v431_v8 = vor.u32 %v429_v53, %v427_v49  ;;  %v435_v9 = vrot.slane %v433_v57, 1  ;;  %v5379_v57 = vld [vmem:[%s6996_s1 + $0x10] sm:$0xff]  }
  0x1e   : > { %5324 = vmatprep.subr.bf16.mxu1 %v5350_v17  ;;  %4861 = vmatprep.subr.bf16.mxu0 %v5350_v17  ;;  %v367_v10 = vor.u32 %v365_v58, %v363_v55  ;;  %v371_v12 = vrot.slane %v369_v59, 1  ;;  %v443_v19 = vrot.slane %v441_v0, 1  ;;  %v445_v20 = vshrl.u32 %v5607_v50, 16  ;;  %v971_v0 = vld [vmem:[%s5530_s23] sm:$0xe] }
  0x1f   : > { %4867 = vmatprep.mubr.bf16.mxu0 %v348_v31  ;;  %v439_v18 = vor.u32 %v437_v63, %v435_v9  ;;  %v449_v21 = vshll.u32 %v5628_v1, 16  ;;  %v379_v27 = vrot.slane %v377_v7, 1  ;;  %v381_v28 = vshrl.u32 %v5619_v60, 16  ;;  %v5380_v7 = vld [vmem:[%s6996_s1 + $0x90] sm:$0xff]  }
  0x20   : > { %v436_v30 = vsel %vm336_vm0, %v431_v8, %v435_v9  ;;  %v372_v31 = vsel %vm336_vm0, %v367_v10, %v371_v12  ;;  %v453_v36 = vshrl.u32 %v5628_v1, 16  ;;  %v457_v38 = vshll.u32 %v5645_v23, 16  ;;  %v5385_v8 = vld [vmem:[%s5530_s23 + $0x90] ss:$0 sps:$4 sm:$0x11]  }
  0x21   : > { %5332 = vmatpush3.bf16.msra.mxu1 %v5350_v17  ;;  %4862 = vmatpush3.bf16.msra.mxu0 %v5350_v17  ;;  %v5640_v17 = vld [vmem:[%s5530_s23 + $0x30] sm:$0xff]   ;;  %v444_v37 = vsel %vm336_vm0, %v439_v18, %v443_v19  ;;  %v393_v42 = vshll.u32 %v5655_v33, 16  ;;  %v447_v44 = vor.u32 %v445_v20, %v443_v19  ;;  %v451_v45 = vrot.slane %v449_v21, 1  ;;  %v5382_v19 = vld [vmem:[%s6996_s1 + $0x88] sm:$0xff]  }
  0x22   : > { %5325 = vmatprep.subr.bf16.mxu1 %v5351_v26  ;;  %4863 = vmatprep.subr.bf16.mxu0 %v5351_v26  ;;  %v383_v48 = vor.u32 %v381_v28, %v379_v27  ;;  %v459_v54 = vrot.slane %v457_v38, 1  ;;  %v461_v55 = vshrl.u32 %v5645_v23, 16  ;;  %v5383_v20 = vld [vmem:[%s6996_s1 + $0x8] sm:$0xff]  }
  0x23   : > { %v455_v53 = vor.u32 %v453_v36, %v451_v45  ;;  %v395_v59 = vrot.slane %v393_v42, 1  ;;  %v5387_v36 = vld [vmem:[%s6996_s1] sm:$0xff]   ;;  %v5389_v42 = vld [vmem:[%s6996_s1 + $0xf8] sm:$0xff]  }
  0x25   : > { %5333 = vmatpush3.bf16.msra.mxu1 %v5351_v26  ;;  %4864 = vmatpush3.bf16.msra.mxu0 %v5351_v26  ;;  %v375_v26 = vor.u32 %v373_v6, %v371_v12  ;;  %v460_v6 = vsel %vm336_vm0, %v455_v53, %v459_v54  ;;  %v4240_v12 = vcombine.low %v971_v0, %v5551_v13  ;;  %v5392_v53 = vld [vmem:[%s6996_s1 + $0x130] sm:$0xff]   ;;  %v1006_v0 = vrot.slane %v5655_v33, 1 }
  0x26   : > { %5326 = vmatprep.subr.bf16.mxu1 %v5352_v32  ;;  %4865 = vmatprep.subr.bf16.mxu0 %v5352_v32 }
  0x27   : > { %v380_v43 = vsel %vm336_vm0, %v375_v26, %v379_v27  ;;  %v993_v13 = vrot.slane %v4240_v12, 1  ;;  %v994_v26 = vrot.slane %v5557_v15, 1  ;;  %v5402_v12 = vld [vmem:[%s6996_s1 + $0x108] sm:$0xff]  }
  0x29   : > { %5334 = vmatpush3.bf16.msra.mxu1 %v5352_v32  ;;  %4866 = vmatpush3.bf16.msra.mxu0 %v5352_v32  ;;  %v385_v32 = vshll.u32 %v5640_v17, 16 }
  0x2a   : > { %4903 = vmatprep.subr.bf16.mxu1 %v5356_v41  ;;  %4955 = vmatprep.subr.bf16.mxu0 %v5361_v47 }
  0x2b   : > { %v387_v49 = vrot.slane %v385_v32, 1 }
  0x2c   : > { %4884 = vmatmul.mubr.bf16.vlgmr.msra.gmra.mxu1 %v420_v51  ;;  %4868 = vmatmul.mubr.bf16.vlgmr.msra.gmra.mxu0 %v356_v56  ;;  %v5376_v51 = vld [vmem:[%s6996_s1 + $0x98] sm:$0xff]   ;;  %v465_v56 = vshll.u32 %v5664_v40, 16 }
  0x2d   : > { %4904 = vmatpush3.bf16.msra.mxu1 %v5356_v41  ;;  %4956 = vmatpush3.bf16.msra.mxu0 %v5361_v47  ;;  %v389_v41 = vshrl.u32 %v5640_v17, 16  ;;  %v5374_v47 = vld [vmem:[%s6996_s1 + $0x18] sm:$0xff]   ;;  %v388_v63 = vsel %vm336_vm0, %v383_v48, %v387_v49 }
  0x2e   : > { %4905 = vmatprep.subr.bf16.mxu1 %v5360_v52  ;;  %4887 = vmatprep.mubr.bf16.mxu1 %v428_v61  ;;  %v397_v61 = vshrl.u32 %v5655_v33, 16  ;;  %v467_v9 = vrot.slane %v465_v56, 1  ;;  %v5394_v56 = vld [vmem:[%s6996_s1 + $0x128] sm:$0xff]  }
  0x2f   : > { %4957 = vmatprep.subr.bf16.mxu0 %v5364_v62  ;;  %4871 = vmatprep.mubr.bf16.mxu0 %v364_v3  ;;  %v391_v58 = vor.u32 %v389_v41, %v387_v49  ;;  %v996_v41 = vrot.slane %v5571_v25, 1 }
  0x30   : > { %v399_v18 = vor.u32 %v397_v61, %v395_v59  ;;  %v5396_v61 = vld [vmem:[%s6996_s1 + $0x120] sm:$0xff]  }
  0x31   : > { %4906 = vmatpush3.bf16.msra.mxu1 %v5360_v52  ;;  %4958 = vmatpush3.bf16.msra.mxu0 %v5364_v62  ;;  %v5676_v52 = vld [vmem:[%s5530_s23 + $0x88] sm:$0xff]   ;;  %v452_v62 = vsel %vm336_vm0, %v447_v44, %v451_v45  ;;  %v396_v10 = vsel %vm336_vm0, %v391_v58, %v395_v59  ;;  %v998_v45 = vrot.slane %v5588_v35, 1  ;;  %v997_v49 = vsel %vm992_vm1, %v994_v26, %v996_v41  ;;  %v5391_v59 = vld [vmem:[%s6996_s1 + $0xf0] sm:$0xff]  }
  0x32   : > { %4907 = vmatprep.subr.bf16.mxu1 %v5365_v2  ;;  %4959 = vmatprep.subr.bf16.mxu0 %v5368_v16  ;;  %v473_v3 = vshll.u32 %v5676_v52, 16  ;;  %v404_v28 = vsel %vm336_vm0, %v399_v18, %v5548_v11  ;;  %v1026_v44 = vrot.slane %v5676_v52, 1  ;;  %v1014_v18 = vrot.slane %v5578_v29, 1 }
  0x34   : > { %4888 = vmatmul.mubr.bf16.gmra.mxu1 %v436_v30  ;;  %4872 = vmatmul.mubr.bf16.gmra.mxu0 %v372_v31  ;;  %v477_v30 = vshrl.u32 %v5676_v52, 16  ;;  %v481_v31 = vshll.u32 %v5385_v8, 16 }
  0x35   : > { %4908 = vmatpush3.bf16.msra.mxu1 %v5365_v2  ;;  %4960 = vmatpush3.bf16.msra.mxu0 %v5368_v16  ;;  %v469_v2 = vshrl.u32 %v5664_v40, 16  ;;  %v463_v16 = vor.u32 %v461_v55, %v459_v54  ;;  %v999_v54 = vsel %vm992_vm1, %v996_v41, %v998_v45  ;;  %v1000_v55 = vrot.slane %v5601_v46, 1 }
  0x36   : > { %4891 = vmatprep.mubr.bf16.mxu1 %v444_v37  ;;  %4909 = vmatprep.subr.bf16.mxu1 %v5370_v24  ;;  %v995_v37 = vsel %vm992_vm1, %v993_v13, %v994_v26  ;;  %v483_v38 = vrot.slane %v481_v31, 1  ;;  %v1309_v13 = vld [vmem:[%s5530_s23 + $0x8] sm:$0xe]  ;;  %v1310_v26 = vld [vmem:[%s5530_s23 + $0xc] sm:$0xf]  ;;  %v1018_v31 = vrot.slane %v5607_v50, 1 }
  0x37   : > { %4961 = vmatprep.subr.bf16.mxu0 %v5372_v34  ;;  %4875 = vmatprep.mubr.bf16.mxu0 %v380_v43  ;;  %v471_v21 = vor.u32 %v469_v2, %v467_v9  ;;  %v468_v27 = vsel %vm336_vm0, %v463_v16, %v467_v9  ;;  %v5390_v43 = vld [vmem:[%s6996_s1 + $0x138] sm:$0xff]   ;;  %v1001_v58 = vsel %vm992_vm1, %v998_v45, %v1000_v55  ;;  %v1012_v16 = vrot.slane %v5568_v22, 1 }
  0x38   : > { %v5397_v9 = vld [vmem:[%s6996_s1 + $0xd8] sm:$0xff]   ;;  %v1022_v45 = vrot.slane %v5645_v23, 1 }
  0x39   : > { %4910 = vmatpush3.bf16.msra.mxu1 %v5370_v24  ;;  %4962 = vmatpush3.bf16.msra.mxu0 %v5372_v34  ;;  %v475_v24 = vrot.slane %v473_v3, 1  ;;  %v5386_v34 = vld [vmem:[%s6996_s1 + $0x80] sm:$0xff]   ;;  %v5398_v3 = vld [vmem:[%s6996_s1 + $0x118] sm:$0xff]  }
  0x3a   : > { %4911 = vmatprep.subr.bf16.mxu1 %v5374_v47  ;;  %4963 = vmatprep.subr.bf16.mxu0 %v5376_v51 }
  0x3b   : > { %v476_v32 = vsel %vm336_vm0, %v471_v21, %v475_v24  ;;  %v479_v11 = vor.u32 %v477_v30, %v475_v24  ;;  %v5403_v21 = vld [vmem:[%s6996_s1 + $0xc0] sm:$0xff]   ;;  %v5800_v24 = vld [vmem:[%s6996_s1 + $0x1b8] sm:$0xff]  }
  0x3c   : > { %4892 = vmatmul.mubr.bf16.gmra.mxu1 %v452_v62  ;;  %4876 = vmatmul.mubr.bf16.gmra.mxu0 %v388_v63  ;;  %v1004_v62 = vrot.slane %v5640_v17, 1  ;;  %v5393_v63 = vld [vmem:[%s6996_s1 + $0xe8] sm:$0xff]   ;;  %v5811_v30 = vld [vmem:[%s5530_s23 + $0x18] sm:$0xff]  }
  0x3d   : > { %4912 = vmatpush3.bf16.msra.mxu1 %v5374_v47  ;;  %4964 = vmatpush3.bf16.msra.mxu0 %v5376_v51  ;;  %v1028_v47 = vrot.slane %v5385_v8, 1  ;;  %v484_v48 = vsel %vm336_vm0, %v479_v11, %v483_v38  ;;  %v1010_v8 = vrot.slane %v5539_v5, 1  ;;  %v1020_v38 = vrot.slane %v5628_v1, 1 }
  0x3e   : > { %4895 = vmatprep.mubr.bf16.mxu1 %v460_v6  ;;  %4913 = vmatprep.subr.bf16.mxu1 %v5379_v57  ;;  %v1007_v2 = vsel %vm992_vm1, %v1004_v62, %v1006_v0  ;;  %v1008_v6 = vrot.slane %v5536_v4, 1 }
  0x3f   : > { %4965 = vmatprep.subr.bf16.mxu0 %v5380_v7  ;;  %4879 = vmatprep.mubr.bf16.mxu0 %v396_v10  ;;  %v5729_v51 = vsel %vm992_vm1, %v1026_v44, %v1028_v47  ;;  %v5399_v10 = vld [vmem:[%s6996_s1 + $0xd0] sm:$0xff]   ;;  %v1021_v47 = vsel %vm992_vm1, %v1018_v31, %v1020_v38 }
  0x41   : > { %4914 = vmatpush3.bf16.msra.mxu1 %v5379_v57  ;;  %4966 = vmatpush3.bf16.msra.mxu0 %v5380_v7  ;;  %v1002_v57 = vrot.slane %v5619_v60, 1  ;;  %v5400_v7 = vld [vmem:[%s6996_s1 + $0x110] sm:$0xff]  }
  0x42   : > { %4967 = vmatprep.subr.bf16.mxu0 %v5382_v19  ;;  %4915 = vmatprep.subr.bf16.mxu1 %v5383_v20 }
  0x44   : > { %4896 = vmatmul.mubr.bf16.gmra.mxu1 %v468_v27  ;;  %4880 = vmatmul.mubr.bf16.gmra.mxu0 %v404_v28  ;;  %v5806_v27 = vld [vmem:[%s5530_s23 + $0x10] sm:$0xff]   ;;  %v1016_v28 = vrot.slane %v5593_v39, 1 }
  0x45   : > { %4968 = vmatpush3.bf16.msra.mxu0 %v5382_v19  ;;  %4899 = vmatprep.mubr.bf16.mxu1 %v476_v32  ;;  %v5401_v19 = vld [vmem:[%s6996_s1 + $0xc8] sm:$0xff]   ;;  %v2266_v32 = vrot.slane %v5806_v27, 2 }
  0x46   : > { %4916 = vmatpush3.bf16.msra.mxu1 %v5383_v20  ;;  %4969 = vmatprep.subr.bf16.mxu0 %v5386_v34  ;;  %v1015_v20 = vsel %vm992_vm1, %v1012_v16, %v1014_v18 }
  0x47   : > { %4917 = vmatprep.subr.bf16.mxu1 %v5387_v36  ;;  %4971 = vmatprep.mubr.bf16.mxu0 %v995_v37  ;;  %v1019_v37 = vsel %vm992_vm1, %v1016_v28, %v1018_v31 }
  0x49   : > { %4970 = vmatpush3.bf16.msra.mxu0 %v5386_v34  ;;  %v1017_v34 = vsel %vm992_vm1, %v1014_v18, %v1016_v28 }
  0x4a   : > { %4918 = vmatpush3.bf16.msra.mxu1 %v5387_v36  ;;  %5059 = vmatprep.subr.bf16.mxu0 %v5390_v43  ;;  %v5823_v36 = vcombine.low %v1309_v13, %v1310_v26 }
  0x4b   : > { %5007 = vmatprep.subr.bf16.mxu1 %v5389_v42 }
  0x4c   : > { %4900 = vmatmul.mubr.bf16.gmra.mxu1 %v484_v48  ;;  %4972 = vmatmul.mubr.bf16.vlgmr.msra.gmra.mxu0 %v997_v49  ;;  %v1795_v41 = vshrl.u32 %v5823_v36, 16  ;;  %v1806_v48 = vshll.u32 %v5806_v27, 16  ;;  %v1815_v49 = vshll.u32 %v5811_v30, 16 }
  0x4d   : > { %4919 = vmatprep.mubr.bf16.mxu1 %v5554_v14  ;;  %5060 = vmatpush3.bf16.msra.mxu0 %v5390_v43  ;;  %v1003_v14 = vsel %vm992_vm1, %v1000_v55, %v1002_v57  ;;  %v1803_v43 = vshrl.u32 %v5806_v27, 16 }
  0x4e   : > { %4975 = vmatprep.mubr.bf16.mxu0 %v999_v54  ;;  %5061 = vmatprep.subr.bf16.mxu0 %v5392_v53  ;;  %v1797_v54 = vrot.slane %v1795_v41, 1 }
  0x51   : > { %5062 = vmatpush3.bf16.msra.mxu0 %v5392_v53  ;;  %v1456_v53 = vrot.slane %v5823_v36, 1 }
  0x52   : > { %5063 = vmatprep.subr.bf16.mxu0 %v5394_v56 }
  0x54   : > { %4920 = vmatmul.mubr.bf16.vlgmr.msra.gmra.mxu1 %v5557_v15  ;;  %4976 = vmatmul.mubr.bf16.gmra.mxu0 %v1001_v58  ;;  %v1005_v15 = vsel %vm992_vm1, %v1002_v57, %v1004_v62  ;;  %v1457_v57 = vrot.slane %v5806_v27, 1  ;;  %v1023_v58 = vsel %vm992_vm1, %v1020_v38, %v1022_v45  ;;  %v5907_v38 = vld [vmem:[%s5530_s23 + $0x58] sm:$0xff]  }
  0x55   : > { %5008 = vmatpush3.bf16.msra.mxu1 %v5389_v42  ;;  %4923 = vmatprep.mubr.bf16.mxu1 %v5571_v25  ;;  %v5395_v25 = vld [vmem:[%s6996_s1 + $0xe0] sm:$0xff]   ;;  %v1798_v42 = vshll.u32 %v5823_v36, 16  ;;  %v5418_v36 = vld [vmem:[%s6996_s1 + $0x1a8] sm:$0xff]  }
  0x56   : > { %5009 = vmatprep.subr.bf16.mxu1 %v5391_v59  ;;  %4979 = vmatprep.mubr.bf16.mxu0 %v1003_v14  ;;  %v5846_v14 = vld [vmem:[%s5530_s23 + $0x20] sm:$0xff]  }
  0x57   : > { %5064 = vmatpush3.bf16.msra.mxu0 %v5394_v56  ;;  %v1800_v55 = vrot.slane %v1798_v42, 2  ;;  %v1805_v56 = vrot.slane %v1803_v43, 1 }
  0x58   : > { %5065 = vmatprep.subr.bf16.mxu0 %v5396_v61 }
  0x59   : > { %5010 = vmatpush3.bf16.msra.mxu1 %v5391_v59  ;;  %v1808_v59 = vrot.slane %v1806_v48, 2  ;;  %v1801_v31 = vor.u32 %v1800_v55, %v1797_v54  ;;  %v5921_v54 = vld [vmem:[%s5530_s23 + $0x60] sm:$0xff]  }
  0x5a   : > { %5011 = vmatprep.subr.bf16.mxu1 %v5393_v63 }
  0x5b   : > { %5066 = vmatpush3.bf16.msra.mxu0 %v5396_v61  ;;  %v2243_v61 = vld [vmem:[%s5530_s23 + $0x8] sm:$0xc] }
  0x5c   : > { %4924 = vmatmul.mubr.bf16.gmra.mxu1 %v5588_v35  ;;  %4980 = vmatmul.mubr.bf16.gmra.mxu0 %v1005_v15  ;;  %v1009_v35 = vsel %vm992_vm1, %v1006_v0, %v1008_v6  ;;  %v4333_v0 = vcombine.low %v2243_v61, %v1310_v26  ;;  %v1817_v15 = vrot.slane %v1815_v49, 2  ;;  %v5932_v61 = vld [vmem:[%s5530_s23 + $0x68] sm:$0xff]  }
  0x5d   : > { %4927 = vmatprep.mubr.bf16.mxu1 %v5601_v46  ;;  %5012 = vmatpush3.bf16.msra.mxu1 %v5393_v63  ;;  %v1011_v46 = vsel %vm992_vm1, %v1008_v6, %v1010_v8  ;;  %v5851_v63 = vld [vmem:[%s5530_s23 + $0x28] sm:$0xff]   ;;  %v2270_v6 = vrot.slane %v5846_v14, 2 }
  0x5e   : > { %4983 = vmatprep.mubr.bf16.mxu0 %v1007_v2  ;;  %5013 = vmatprep.subr.bf16.mxu1 %v5395_v25  ;;  %v1821_v2 = vshrl.u32 %v5846_v14, 16  ;;  %v1830_v13 = vshrl.u32 %v5851_v63, 16 }
  0x5f   : > { %5067 = vmatprep.subr.bf16.mxu0 %v5398_v3 }
  0x60   : > { %5068 = vmatpush3.bf16.msra.mxu0 %v5398_v3  ;;  %v5856_v3 = vld [vmem:[%s5530_s23 + $0x30] sm:$0xff]   ;;  %v1823_v18 = vrot.slane %v1821_v2, 1  ;;  %v1832_v43 = vrot.slane %v1830_v13, 1 }
  0x61   : > { %5014 = vmatpush3.bf16.msra.mxu1 %v5395_v25  ;;  %5069 = vmatprep.subr.bf16.mxu0 %v5400_v7  ;;  %v2265_v25 = vrot.slane %v4333_v0, 2  ;;  %v1842_v48 = vshll.u32 %v5856_v3, 16  ;;  %v2286_v0 = vrot.slane %v5921_v54, 2  ;;  %v5938_v2 = vld [vmem:[%s5530_s23 + $0x70] sm:$0xff]  }
  0x62   : > { %5015 = vmatprep.subr.bf16.mxu1 %v5397_v9 }
  0x64   : > { %4928 = vmatmul.mubr.bf16.gmra.mxu1 %v5619_v60  ;;  %4984 = vmatmul.mubr.bf16.gmra.mxu0 %v1009_v35  ;;  %v5404_v60 = vld [vmem:[%s6996_s1 + $0x100] sm:$0xff]   ;;  %v1824_v35 = vshll.u32 %v5846_v14, 16 }
  0x65   : > { %4931 = vmatprep.mubr.bf16.mxu1 %v5640_v17  ;;  %4987 = vmatprep.mubr.bf16.mxu0 %v1011_v46  ;;  %v1013_v17 = vsel %vm992_vm1, %v1010_v8, %v1012_v16  ;;  %v5862_v8 = vld [vmem:[%s5530_s23 + $0x38] sm:$0xff]   ;;  %v5870_v46 = vld [vmem:[%s5530_s23 + $0x40] sm:$0xff]  }
  0x66   : > { %5016 = vmatpush3.bf16.msra.mxu1 %v5397_v9  ;;  %5070 = vmatpush3.bf16.msra.mxu0 %v5400_v7  ;;  %v1459_v7 = vrot.slane %v5811_v30, 1  ;;  %v5865_v9 = vsel %vm2264_vm2, %v2265_v25, %v2266_v32  ;;  %v1848_v55 = vshrl.u32 %v5862_v8, 16 }
  0x67   : > { %5017 = vmatprep.subr.bf16.mxu1 %v5399_v10  ;;  %5071 = vmatprep.subr.bf16.mxu0 %v5402_v12 }
  0x6a   : > { %5018 = vmatpush3.bf16.msra.mxu1 %v5399_v10  ;;  %5072 = vmatpush3.bf16.msra.mxu0 %v5402_v12 }
  0x6b   : > { %5019 = vmatprep.subr.bf16.mxu1 %v5401_v19  ;;  %5073 = vmatprep.subr.bf16.mxu0 %v5404_v60 }
  0x6c   : > { %4932 = vmatmul.mubr.bf16.gmra.mxu1 %v5655_v33  ;;  %4988 = vmatmul.mubr.bf16.gmra.mxu0 %v1013_v17  ;;  %v5818_v33 = vld [vmem:[%s6996_s1 + $0x178] sm:$0xff]   ;;  %v2276_v17 = vrot.slane %v5862_v8, 2 }
  0x6d   : > { %4935 = vmatprep.mubr.bf16.mxu1 %v5536_v4  ;;  %4991 = vmatprep.mubr.bf16.mxu0 %v1015_v20  ;;  %v2268_v4 = vrot.slane %v5811_v30, 2  ;;  %v5886_v20 = vld [vmem:[%s5530_s23 + $0x48] sm:$0xff]  }
  0x6e   : > { %5020 = vmatpush3.bf16.msra.mxu1 %v5401_v19  ;;  %5074 = vmatpush3.bf16.msra.mxu0 %v5404_v60  ;;  %v1461_v19 = vrot.slane %v5846_v14, 1  ;;  %v2274_v60 = vrot.slane %v5856_v3, 2 }
  0x6f   : > { %5021 = vmatprep.subr.bf16.mxu1 %v5403_v21  ;;  %5163 = vmatprep.subr.bf16.mxu0 %v5800_v24  ;;  %v5827_v11 = vsel %vm2264_vm2, %v2266_v32, %v2268_v4  ;;  %v5873_v10 = vsel %vm2264_vm2, %v2268_v4, %v2270_v6  ;;  %v5898_v32 = vld [vmem:[%s5530_s23 + $0x50] sm:$0xff]  }
  0x70   : > { %v5895_v28 = vsel %vm2264_vm2, %v2274_v60, %v2276_v17  ;;  %v2282_v42 = vrot.slane %v5898_v32, 2 }
  0x72   : > { %5022 = vmatpush3.bf16.msra.mxu1 %v5403_v21  ;;  %v2278_v21 = vrot.slane %v5870_v46, 2 }
  0x73   : > { %5111 = vmatprep.subr.bf16.mxu1 %v5818_v33 }
  0x74   : > { %4936 = vmatmul.mubr.bf16.gmra.mxu1 %v5539_v5  ;;  %4992 = vmatmul.mubr.bf16.gmra.mxu0 %v1017_v34  ;;  %v1024_v5 = vrot.slane %v5664_v40, 1  ;;  %v5901_v4 = vsel %vm2264_vm2, %v2276_v17, %v2278_v21  ;;  %v1833_v34 = vshll.u32 %v5851_v63, 16 }
  0x75   : > { %4939 = vmatprep.mubr.bf16.mxu1 %v5568_v22  ;;  %4995 = vmatprep.mubr.bf16.mxu0 %v1019_v37  ;;  %v1812_v22 = vshrl.u32 %v5811_v30, 16  ;;  %v1463_v37 = vrot.slane %v5851_v63, 1 }
  0x76   : > { %v1027_v16 = vsel %vm992_vm1, %v1024_v5, %v1026_v44  ;;  %v1826_v44 = vrot.slane %v1824_v35, 2  ;;  %v1835_v49 = vrot.slane %v1833_v34, 2  ;;  %v5949_v35 = vld [vmem:[%s5530_s23 + $0x78] sm:$0xff]   ;;  %v1866_v34 = vshrl.u32 %v5886_v20, 16 }
  0x77   : > { %v1814_v62 = vrot.slane %v1812_v22, 1  ;;  %v2284_v22 = vrot.slane %v5907_v38, 2 }
  0x78   : > { %v1827_v25 = vor.u32 %v1826_v44, %v1823_v18  ;;  %v2290_v18 = vrot.slane %v5938_v2, 2 }
  0x7c   : > { %4940 = vmatmul.mubr.bf16.gmra.mxu1 %v5578_v29  ;;  %4996 = vmatmul.mubr.bf16.gmra.mxu0 %v1021_v47  ;;  %v2272_v29 = vrot.slane %v5851_v63, 2 }
  0x7d   : > { %4943 = vmatprep.mubr.bf16.mxu1 %v5593_v39  ;;  %4999 = vmatprep.mubr.bf16.mxu0 %v1023_v58  ;;  %v1025_v39 = vsel %vm992_vm1, %v1022_v45, %v1024_v5  ;;  %v1839_v45 = vshrl.u32 %v5856_v3, 16  ;;  %v5928_v58 = vsel %vm2264_vm2, %v2282_v42, %v2284_v22 }
  0x7e   : > { %v5876_v12 = vsel %vm2264_vm2, %v2270_v6, %v2272_v29  ;;  %v5892_v26 = vsel %vm2264_vm2, %v2272_v29, %v2274_v60  ;;  %v5941_v6 = vsel %vm2264_vm2, %v2284_v22, %v2286_v0  ;;  %v2288_v29 = vrot.slane %v5932_v61, 2  ;;  %v5412_v22 = vld [vmem:[%s6996_s1 + $0x170] sm:$0xff]  }
  0x7f   : > { %v1458_v60 = vsel %vm992_vm1, %v1456_v53, %v1457_v57  ;;  %v1836_v53 = vor.u32 %v1835_v49, %v1832_v43  ;;  %v1460_v49 = vsel %vm992_vm1, %v1457_v57, %v1459_v7 }
  0x84   : > { %4944 = vmatmul.mubr.bf16.gmra.mxu1 %v5607_v50  ;;  %5000 = vmatmul.mubr.bf16.gmra.mxu0 %v1025_v39  ;;  %v1809_v50 = vor.u32 %v1808_v59, %v1805_v56  ;;  %v1851_v56 = vshll.u32 %v5862_v8, 16  ;;  %v1818_v59 = vor.u32 %v1817_v15, %v1814_v62  ;;  %v1841_v62 = vrot.slane %v1839_v45, 1 }
  0x85   : > { %4947 = vmatprep.mubr.bf16.mxu1 %v5628_v1  ;;  %5003 = vmatprep.mubr.bf16.mxu0 %v1027_v16  ;;  %v2280_v1 = vrot.slane %v5886_v20, 2  ;;  %v1844_v15 = vrot.slane %v1842_v48, 2  ;;  %v5952_v16 = vsel %vm2264_vm2, %v2286_v0, %v2288_v29  ;;  %v5979_v48 = vld [vmem:[%s5530_s23 + $0x88] sm:$0xff]   ;;  %v1462_v0 = vsel %vm992_vm1, %v1459_v7, %v1461_v19 }
  0x86   : > { %v1810_v47 = vsel %vm1793_vm3, %v1801_v31, %v1809_v50  ;;  %v1819_v39 = vsel %vm1793_vm3, %v1809_v50, %v1818_v59  ;;  %v1828_v17 = vsel %vm1793_vm3, %v1818_v59, %v1827_v25  ;;  %v1853_v44 = vrot.slane %v1851_v56, 2 }
  0x87   : > { %v5910_v41 = vsel %vm2264_vm2, %v2278_v21, %v2280_v1  ;;  %v5917_v5 = vsel %vm2264_vm2, %v2280_v1, %v2282_v42  ;;  %v1850_v21 = vrot.slane %v1848_v55, 1  ;;  %v5962_v50 = vsel %vm2264_vm2, %v2288_v29, %v2290_v18  ;;  %v5972_v42 = vld [vmem:[%s5530_s23 + $0x80] sm:$0xff]  }
  0x88   : > { %v2292_v1 = vrot.slane %v5949_v35, 2  ;;  %v2294_v43 = vrot.slane %v5972_v42, 2  ;;  %v1837_v55 = vsel %vm1793_vm3, %v1827_v25, %v1836_v53  ;;  %v1878_v56 = vshll.u32 %v5898_v32, 16 }
  0x89   : > { %v2296_v59 = vrot.slane %v5979_v48, 2  ;;  %v1854_v25 = vor.u32 %v1853_v44, %v1850_v21  ;;  %v6999_v29 = vrot.slane %v5870_v46, 1  ;;  %v6029_v21 = vld [vmem:[%s5530_s23 + $0x98] ss:$0 sps:$4 sm:$0x33]  }
  0x8a   : > { %v5975_v45 = vsel %vm2264_vm2, %v2290_v18, %v2292_v1  ;;  %v6002_v27 = vsel %vm2264_vm2, %v2292_v1, %v2294_v43  ;;  %v1887_v18 = vshll.u32 %v5907_v38, 16  ;;  %v2582_v1 = vld [vmem:[%s5530_s23 + $0x14] sm:$0xf] }
  0x8c   : > { %4948 = vmatmul.mubr.bf16.gmra.mxu1 %v5645_v23  ;;  %5004 = vmatmul.mubr.bf16.gmra.mxu0 %v5729_v51  ;;  %v1857_v23 = vshrl.u32 %v5870_v46, 16  ;;  %v1860_v51 = vshll.u32 %v5870_v46, 16 }
  0x8d   : > { %4951 = vmatprep.mubr.bf16.mxu1 %v5664_v40  ;;  %5075 = vmatprep.mubr.bf16.mxu0 %v1810_v47  ;;  %v5413_v40 = vld [vmem:[%s6996_s1 + $0x1b0] sm:$0xff]   ;;  %v1845_v47 = vor.u32 %v1844_v15, %v1841_v62  ;;  %v1880_v15 = vrot.slane %v1878_v56, 2 }
  0x8e   : > { %v1859_v13 = vrot.slane %v1857_v23, 1  ;;  %v1862_v31 = vrot.slane %v1860_v51, 2  ;;  %v1465_v23 = vrot.slane %v5856_v3, 1  ;;  %v1467_v51 = vrot.slane %v5862_v8, 1  ;;  %v5423_v8 = vld [vmem:[%s6996_s1 + $0x1a0] sm:$0xff]  }
  0x8f   : > { %v1846_v57 = vsel %vm1793_vm3, %v1836_v53, %v1845_v47  ;;  %v1868_v3 = vrot.slane %v1866_v34, 1  ;;  %v1855_v44 = vsel %vm1793_vm3, %v1845_v47, %v1854_v25 }
  0x90   : > { %v6009_v30 = vor.u32 %v1862_v31, %v1859_v13  ;;  %v1466_v13 = vsel %vm992_vm1, %v1463_v37, %v1465_v23  ;;  %v6036_v14 = vsel %vm992_vm1, %v1465_v23, %v1467_v51  ;;  %v2581_v31 = vld [vmem:[%s5530_s23 + $0x10] sm:$0xc] }
  0x91   : > { %v6057_v56 = vcombine.low %v2581_v31, %v2582_v1 }
  0x92   : > { %v1864_v53 = vsel %vm1793_vm3, %v1854_v25, %v6009_v30  ;;  %v1905_v25 = vshll.u32 %v5932_v61, 16 }
  0x94   : > { %4952 = vmatmul.mubr.bf16.gmra.mxu1 %v5676_v52  ;;  %5076 = vmatmul.mubr.bf16.vlgmr.msra.gmra.mxu0 %v1819_v39  ;;  %v1869_v52 = vshll.u32 %v5886_v20, 16  ;;  %v1884_v39 = vshrl.u32 %v5907_v38, 16 }
  0x95   : > { %5023 = vmatprep.mubr.bf16.mxu1 %v1458_v60  ;;  %5164 = vmatpush3.bf16.msra.mxu0 %v5800_v24  ;;  %v1875_v24 = vshrl.u32 %v5898_v32, 16  ;;  %v1464_v60 = vsel %vm992_vm1, %v1461_v19, %v1463_v37  ;;  %v6041_v19 = vsel %vm992_vm1, %v1467_v51, %v6999_v29  ;;  %v1896_v51 = vshll.u32 %v5921_v54, 16 }
  0x96   : > { %5079 = vmatprep.mubr.bf16.mxu0 %v1828_v17  ;;  %5165 = vmatprep.subr.bf16.mxu0 %v5413_v40  ;;  %v1871_v7 = vrot.slane %v1869_v52, 2  ;;  %v6026_v17 = vld [vmem:[%s5530_s23 + $0x90] sm:$0xff]   ;;  %v1889_v52 = vrot.slane %v1887_v18, 2 }
  0x97   : > { %v1877_v62 = vrot.slane %v1875_v24, 1  ;;  %v2298_v37 = vrot.slane %v6026_v17, 2  ;;  %v2300_v24 = vrot.slane %v6029_v21, 2  ;;  %v5431_v18 = vld [vmem:[%s6996_s1 + $0x190] sm:$0xff]  }
  0x98   : > { %v1872_v34 = vor.u32 %v1871_v7, %v1868_v3  ;;  %v5427_v3 = vld [vmem:[%s6996_s1 + $0x198] sm:$0xff]   ;;  %v6072_v7 = vld [vmem:[%s5530_s23 + $0x20] sm:$0xff]  }
  0x99   : > { %5166 = vmatpush3.bf16.msra.mxu0 %v5413_v40  ;;  %v6007_v40 = vsel %vm2264_vm2, %v2294_v43, %v2296_v59  ;;  %v6049_v47 = vor.u32 %v1880_v15, %v1877_v62  ;;  %v3515_v43 = vld [vmem:[%s5530_s23 + $0x10] sm:$0x8]  ;;  %v6075_v62 = vsel %vm2264_vm2, %v2298_v37, %v2300_v24  ;;  %v3067_v15 = vshrl.u32 %v6057_v56, 16 }
  0x9a   : > { %5167 = vmatprep.subr.bf16.mxu0 %v5418_v36  ;;  %v4426_v23 = vcombine.low %v3515_v43, %v2582_v1  ;;  %7009 = vst [vmem:[#allocation3_spill] sm:$0xff] %v6075_v62  ;;  %v3540_v31 = vrot.slane %v6072_v7, 3  ;;  %v3084_v24 = vshrl.u32 %v6072_v7, 16  ;;  %v1873_v63 = vsel %vm1793_vm3, %v6009_v30, %v1872_v34 }
  0x9b   : > { %v1907_v62 = vrot.slane %v1905_v25, 2 }
  0x9c   : > { %5024 = vmatmul.mubr.bf16.vlgmr.msra.gmra.mxu1 %v1460_v49  ;;  %5080 = vmatmul.mubr.bf16.gmra.mxu0 %v1837_v55  ;;  %v5420_v49 = vld [vmem:[%s6996_s1 + $0x160] sm:$0xff]   ;;  %v1893_v55 = vshrl.u32 %v5921_v54, 16 }
  0x9d   : > { %5112 = vmatpush3.bf16.msra.mxu1 %v5818_v33  ;;  %5027 = vmatprep.mubr.bf16.mxu1 %v1462_v0  ;;  %v5416_v33 = vld [vmem:[%s6996_s1 + $0x168] sm:$0xff]   ;;  %v6060_v0 = vld [vmem:[%s5530_s23 + $0x18] sm:$0xff]  }
  0x9e   : > { %5113 = vmatprep.subr.bf16.mxu1 %v5412_v22  ;;  %5083 = vmatprep.mubr.bf16.mxu0 %v1846_v57  ;;  %v1902_v57 = vshrl.u32 %v5932_v61, 16  ;;  %v3075_v1 = vshrl.u32 %v6060_v0, 16 }
  0x9f   : > { %5168 = vmatpush3.bf16.msra.mxu0 %v5418_v36  ;;  %v1886_v36 = vrot.slane %v1884_v39, 1  ;;  %v3070_v39 = vshll.u32 %v6057_v56, 16 }
  0xa0   : > { %5169 = vmatprep.subr.bf16.mxu0 %v5423_v8  ;;  %v1904_v30 = vrot.slane %v1902_v57, 1 }
  0xa1   : > { %5114 = vmatpush3.bf16.msra.mxu1 %v5412_v22  ;;  %v6063_v22 = vsel %vm2264_vm2, %v2296_v59, %v2298_v37  ;;  %v3537_v59 = vrot.slane %v4426_v23, 3  ;;  %v3072_v37 = vrot.slane %v3070_v39, 3  ;;  %v3077_v23 = vrot.slane %v3075_v1, 2 }
  0xa2   : > { %5115 = vmatprep.subr.bf16.mxu1 %v5416_v33  ;;  %7008 = vst [vmem:[#allocation2_spill] sm:$0xff] %v6063_v22  ;;  %v1890_v39 = vor.u32 %v1889_v52, %v1886_v36  ;;  %v1882_v1 = vsel %vm1793_vm3, %v1872_v34, %v6049_v47  ;;  %v6103_v22 = vld [vmem:[%s5530_s23 + $0x28] sm:$0xff]   ;;  %v5430_v36 = vld [vmem:[%s6996_s1 + $0x150] sm:$0xff]  }
  0xa3   : > { %5170 = vmatpush3.bf16.msra.mxu0 %v5423_v8  ;;  %v3538_v8 = vrot.slane %v6060_v0, 3  ;;  %v6113_v52 = vld [vmem:[%s5530_s23 + $0x30] sm:$0xff]   ;;  %v3093_v57 = vshrl.u32 %v6103_v22, 16  ;;  %v3096_v25 = vshll.u32 %v6103_v22, 16 }
  0xa4   : > { %5028 = vmatmul.mubr.bf16.gmra.mxu1 %v1464_v60  ;;  %5084 = vmatmul.mubr.bf16.gmra.mxu0 %v1855_v44  ;;  %v3078_v60 = vshll.u32 %v6060_v0, 16  ;;  %v5425_v44 = vld [vmem:[%s6996_s1 + $0x158] sm:$0xff]  }
  0xa5   : > { %5031 = vmatprep.mubr.bf16.mxu1 %v1466_v13  ;;  %5116 = vmatpush3.bf16.msra.mxu1 %v5416_v33  ;;  %v6090_v13 = vsel %vm3536_vm4, %v3537_v59, %v3538_v8  ;;  %v3069_v33 = vrot.slane %v3067_v15, 2  ;;  %v6094_v43 = vsel %vm3536_vm4, %v3538_v8, %v3540_v31  ;;  %v3086_v15 = vrot.slane %v3084_v24, 2 }
  0xa6   : > { %5087 = vmatprep.mubr.bf16.mxu0 %v1864_v53  ;;  %5117 = vmatprep.subr.bf16.mxu1 %v5420_v49  ;;  %7010 = vst [vmem:[#allocation4_spill] sm:$0xff] %v6090_v13  ;;  %7011 = vst [vmem:[#allocation5_spill] sm:$0xff] %v6094_v43  ;;  %v3080_v29 = vrot.slane %v3078_v60, 3  ;;  %v3087_v53 = vshll.u32 %v6072_v7, 16  ;;  %v1895_v60 = vrot.slane %v1893_v55, 1  ;;  %v1898_v13 = vrot.slane %v1896_v51, 2 }
  0xa7   : > { %5171 = vmatprep.subr.bf16.mxu0 %v5427_v3  ;;  %v3073_v59 = vor.u32 %v3072_v37, %v3069_v33  ;;  %v1914_v55 = vshll.u32 %v5938_v2, 16  ;;  %v3542_v51 = vrot.slane %v6103_v22, 3  ;;  %v3544_v37 = vrot.slane %v6113_v52, 3 }
  0xa8   : > { %5172 = vmatpush3.bf16.msra.mxu0 %v5427_v3  ;;  %v3081_v8 = vor.u32 %v3080_v29, %v3077_v23  ;;  %v3089_v43 = vrot.slane %v3087_v53, 3  ;;  %v1911_v3 = vshrl.u32 %v5938_v2, 16  ;;  %v5435_v29 = vld [vmem:[%s6996_s1 + $0x188] sm:$0xff]   ;;  %v3102_v24 = vshrl.u32 %v6113_v52, 16 }
  0xa9   : > { %5118 = vmatpush3.bf16.msra.mxu1 %v5420_v49  ;;  %5173 = vmatprep.subr.bf16.mxu0 %v5431_v18  ;;  %v3095_v23 = vrot.slane %v3093_v57, 2  ;;  %v3098_v53 = vrot.slane %v3096_v25, 3 }
  0xaa   : > { %5119 = vmatprep.subr.bf16.mxu1 %v5425_v44  ;;  %v6116_v34 = vsel %vm3065_vm5, %v3073_v59, %v3081_v8  ;;  %v3090_v49 = vor.u32 %v3089_v43, %v3086_v15  ;;  %v6133_v43 = vsel %vm3536_vm4, %v3540_v31, %v3542_v51  ;;  %v5434_v59 = vld [vmem:[%s6996_s1 + $0x148] sm:$0xff]   ;;  %v7015_v15 = vrot.slane %v5886_v20, 1  ;;  %v6163_v20 = vld [vmem:[%s5530_s23 + $0x38] sm:$0xff]  }
  0xab   : > { %7013 = vst [vmem:[#allocation7_spill] sm:$0xff] %v6133_v43  ;;  %v3099_v43 = vor.u32 %v3098_v53, %v3095_v23  ;;  %v1908_v23 = vor.u32 %v1907_v62, %v1904_v30  ;;  %v1932_v62 = vshll.u32 %v5972_v42, 16  ;;  %v3546_v30 = vrot.slane %v6163_v20, 3 }
  0xac   : > { %5032 = vmatmul.mubr.bf16.gmra.mxu1 %v6036_v14  ;;  %5088 = vmatmul.mubr.bf16.gmra.mxu0 %v1873_v63  ;;  %v6125_v33 = vsel %vm3065_vm5, %v3081_v8, %v3090_v49  ;;  %v3105_v14 = vshll.u32 %v6113_v52, 16  ;;  %v6130_v63 = vor.u32 %v1898_v13, %v1895_v60  ;;  %v5440_v13 = vld [vmem:[%s6996_s1 + $0x180] sm:$0xff]   ;;  %v7016_v8 = vrot.slane %v5870_v46, 1 }
  0xad   : > { %5035 = vmatprep.mubr.bf16.mxu1 %v6041_v19  ;;  %5091 = vmatprep.mubr.bf16.mxu0 %v1882_v1  ;;  %7012 = vst [vmem:[#allocation6_spill] sm:$0xff] %v6125_v33  ;;  %v1920_v19 = vshrl.u32 %v5949_v35, 16  ;;  %v7017_v60 = vrot.slane %v5898_v32, 1  ;;  %v7018_v57 = vmov %v7015_v15  ;;  %v1475_v33 = vrot.slane %v5907_v38, 1 }
  0xae   : > { %5120 = vmatpush3.bf16.msra.mxu1 %v5425_v44  ;;  %5174 = vmatpush3.bf16.msra.mxu0 %v5431_v18  ;;  %v6143_v44 = vsel %vm3536_vm4, %v3542_v51, %v3544_v37  ;;  %v3104_v18 = vrot.slane %v3102_v24, 2  ;;  %v3107_v31 = vrot.slane %v3105_v14, 3  ;;  %v1472_v1 = vsel %vm992_vm1, %v7016_v8, %v7015_v15 }
  0xaf   : > { %5121 = vmatprep.subr.bf16.mxu1 %v5430_v36  ;;  %5175 = vmatprep.subr.bf16.mxu0 %v5435_v29  ;;  %7014 = vst [vmem:[#allocation8_spill] sm:$0xff] %v6143_v44  ;;  %v1474_v25 = vsel %vm992_vm1, %v7018_v57, %v7017_v60  ;;  %v1891_v51 = vsel %vm1793_vm3, %v6049_v47, %v1890_v39  ;;  %v1913_v24 = vrot.slane %v1911_v3, 1  ;;  %v1916_v14 = vrot.slane %v1914_v55, 2 }
  0xb0   : > { %v3108_v44 = vor.u32 %v3107_v31, %v3104_v18  ;;  %v1900_v46 = vsel %vm1793_vm3, %v1890_v39, %v6130_v63  ;;  %v1923_v8 = vshll.u32 %v5949_v35, 16  ;;  %v6166_v38 = vsel %vm3065_vm5, %v3090_v49, %v3099_v43  ;;  %v5438_v39 = vld [vmem:[%s6996_s1 + $0x140] sm:$0xff]  }
  0xb1   : > { %7019 = vst [vmem:[#allocation9_spill] sm:$0xff] %v6166_v38  ;;  %v1922_v47 = vrot.slane %v1920_v19, 1  ;;  %v1929_v3 = vshrl.u32 %v5972_v42, 16  ;;  %v3111_v55 = vshrl.u32 %v6163_v20, 16  ;;  %v3114_v53 = vshll.u32 %v6163_v20, 16 }
  0xb2   : > { %5122 = vmatpush3.bf16.msra.mxu1 %v5430_v36  ;;  %5176 = vmatpush3.bf16.msra.mxu0 %v5435_v29  ;;  %v6175_v36 = vld [vmem:[%s6996_s1 + $0x238] sm:$0xff]   ;;  %v6178_v29 = vld [vmem:[%s5530_s23 + $0x40] sm:$0xff]   ;;  %v6181_v49 = vsel %vm3065_vm5, %v3099_v43, %v3108_v44  ;;  %v1917_v19 = vor.u32 %v1916_v14, %v1913_v24  ;;  %v1925_v60 = vrot.slane %v1923_v8, 2  ;;  %v1938_v15 = vshrl.u32 %v5979_v48, 16 }
  0xb3   : > { %5123 = vmatprep.subr.bf16.mxu1 %v5434_v59  ;;  %5177 = vmatprep.subr.bf16.mxu0 %v5440_v13  ;;  %7020 = vst [vmem:[#allocation10_spill] sm:$0xff] %v6181_v49  ;;  %v3548_v18 = vrot.slane %v6178_v29, 3  ;;  %v3120_v31 = vshrl.u32 %v6178_v29, 16  ;;  %v3123_v43 = vshll.u32 %v6178_v29, 16  ;;  %v3113_v57 = vrot.slane %v3111_v55, 2 }
  0xb4   : > { %5036 = vmatmul.mubr.bf16.gmra.mxu1 %v1472_v1  ;;  %5092 = vmatmul.mubr.bf16.gmra.mxu0 %v1891_v51  ;;  %v6191_v1 = vsel %vm3536_vm4, %v3544_v37, %v3546_v30  ;;  %v3116_v51 = vrot.slane %v3114_v53, 3  ;;  %v1931_v37 = vrot.slane %v1929_v3, 1  ;;  %v1934_v14 = vrot.slane %v1932_v62, 2  ;;  %v6215_v62 = vld [vmem:[%s5530_s23 + $0x48] sm:$0xff]  }
  0xb5   : > { %5039 = vmatprep.mubr.bf16.mxu1 %v1474_v25  ;;  %5095 = vmatprep.mubr.bf16.mxu0 %v1900_v46  ;;  %7021 = vst [vmem:[#allocation11_spill] sm:$0xff] %v6191_v1  ;;  %v6197_v25 = vld [vmem:[%s6996_s1 + $0x1f8] sm:$0xff]   ;;  %v6201_v24 = vsel %vm3536_vm4, %v3546_v30, %v3548_v18  ;;  %v7022_v8 = vrot.slane %v5898_v32, 1  ;;  %v1909_v53 = vsel %vm1793_vm3, %v6130_v63, %v1908_v23  ;;  %v1479_v49 = vrot.slane %v5932_v61, 1  ;;  %v6223_v61 = vld [vmem:[%s5530_s23 + $0x50] sm:$0xff]  }
  0xb6   : > { %5124 = vmatpush3.bf16.msra.mxu1 %v5434_v59  ;;  %5178 = vmatpush3.bf16.msra.mxu0 %v5440_v13  ;;  %v3122_v59 = vrot.slane %v3120_v31, 2  ;;  %v3125_v13 = vrot.slane %v3123_v43, 3  ;;  %v3117_v46 = vor.u32 %v3116_v51, %v3113_v57  ;;  %v7023_v38 = vrot.slane %v5921_v54, 1 }
  0xb7   : > { %5125 = vmatprep.subr.bf16.mxu1 %v5438_v39  ;;  %5267 = vmatprep.subr.bf16.mxu0 %v6175_v36  ;;  %v1476_v55 = vsel %vm992_vm1, %v7022_v8, %v1475_v33  ;;  %v1918_v31 = vsel %vm1793_vm3, %v1908_v23, %v1917_v19  ;;  %v1926_v43 = vor.u32 %v1925_v60, %v1922_v47  ;;  %v1940_v57 = vrot.slane %v1938_v15, 1 }
  0xb8   : > { %v3126_v1 = vor.u32 %v3125_v13, %v3122_v59  ;;  %v1478_v30 = vsel %vm992_vm1, %v1475_v33, %v7023_v38  ;;  %v6218_v32 = vsel %vm3065_vm5, %v3108_v44, %v3117_v46  ;;  %v1941_v63 = vshll.u32 %v5979_v48, 16 }
  0xb9   : > { %7024 = vst [vmem:[#allocation12_spill] sm:$0xff] %v6218_v32  ;;  %v1935_v38 = vor.u32 %v1934_v14, %v1931_v37  ;;  %v3550_v23 = vrot.slane %v6215_v62, 3  ;;  %v3132_v44 = vshll.u32 %v6215_v62, 16  ;;  %v1947_v15 = vshrl.u32 %v6026_v17, 16 }
  0xba   : > { %5126 = vmatpush3.bf16.msra.mxu1 %v5438_v39  ;;  %v6226_v33 = vsel %vm3065_vm5, %v3117_v46, %v3126_v1  ;;  %v3129_v39 = vshrl.u32 %v6215_v62, 16  ;;  %v3552_v47 = vrot.slane %v6223_v61, 3  ;;  %v3138_v60 = vshrl.u32 %v6223_v61, 16 }
  0xbb   : > { %5215 = vmatprep.subr.bf16.mxu1 %v6197_v25  ;;  %7025 = vst [vmem:[#allocation13_spill] sm:$0xff] %v6226_v33  ;;  %v3141_v51 = vshll.u32 %v6223_v61, 16  ;;  %v1950_v59 = vshll.u32 %v6026_v17, 16  ;;  %v6237_v13 = vsel %vm3536_vm4, %v3548_v18, %v3550_v23  ;;  %v3134_v14 = vrot.slane %v3132_v44, 3 }
  0xbc   : > { %5040 = vmatmul.mubr.bf16.gmra.mxu1 %v1476_v55  ;;  %5096 = vmatmul.mubr.bf16.gmra.mxu0 %v1909_v53  ;;  %v3131_v37 = vrot.slane %v3129_v39, 2  ;;  %v1943_v46 = vrot.slane %v1941_v63, 2  ;;  %v6240_v8 = vsel %vm3536_vm4, %v3550_v23, %v3552_v47  ;;  %v3140_v55 = vrot.slane %v3138_v60, 2 }
  0xbd   : > { %5043 = vmatprep.mubr.bf16.mxu1 %v1478_v30  ;;  %5099 = vmatprep.mubr.bf16.mxu0 %v1918_v31  ;;  %7026 = vst [vmem:[#allocation14_spill] sm:$0xff] %v6240_v8  ;;  %v3143_v53 = vrot.slane %v3141_v51, 3  ;;  %v7027_v31 = vrot.slane %v5921_v54, 1  ;;  %v1927_v33 = vsel %vm1793_vm3, %v1917_v19, %v1926_v43  ;;  %v7028_v32 = vrot.slane %v5938_v2, 1  ;;  %v6251_v8 = vld [vmem:[%s5530_s23 + $0x58] sm:$0xff]   ;;  %v6259_v19 = vld [vmem:[%s5530_s23 + $0x60] sm:$0xff]  }
  0xbe   : > { %v3135_v30 = vor.u32 %v3134_v14, %v3131_v37  ;;  %v1936_v63 = vsel %vm1793_vm3, %v1926_v43, %v1935_v38  ;;  %v1949_v44 = vrot.slane %v1947_v15, 1  ;;  %v1952_v23 = vrot.slane %v1950_v59, 2 }
  0xbf   : > { %v1480_v3 = vsel %vm992_vm1, %v7027_v31, %v1479_v49  ;;  %v1482_v18 = vsel %vm992_vm1, %v1479_v49, %v7028_v32  ;;  %v3144_v39 = vor.u32 %v3143_v53, %v3140_v55  ;;  %v1483_v54 = vrot.slane %v5949_v35, 1 }
  0xc0   : > { %v6254_v60 = vsel %vm3065_vm5, %v3126_v1, %v3135_v30  ;;  %v1944_v51 = vor.u32 %v1943_v46, %v1940_v57  ;;  %v1485_v37 = vrot.slane %v5972_v42, 1  ;;  %v1956_v49 = vshrl.u32 %v6029_v21, 16 }
  0xc1   : > { %v6262_v14 = vsel %vm3065_vm5, %v3135_v30, %v3144_v39  ;;  %v3554_v32 = vrot.slane %v6251_v8, 3  ;;  %v3147_v43 = vshrl.u32 %v6251_v8, 16  ;;  %v3150_v1 = vshll.u32 %v6251_v8, 16 }
  0xc2   : > { %7029 = vst [vmem:[#allocation15_spill] sm:$0xff] %v6262_v14  ;;  %v1959_v35 = vshll.u32 %v6029_v21, 16  ;;  %v3556_v42 = vrot.slane %v6259_v19, 3  ;;  %v3156_v57 = vshrl.u32 %v6259_v19, 16  ;;  %v3159_v15 = vshll.u32 %v6259_v19, 16 }
  0xc3   : > { %v3149_v59 = vrot.slane %v3147_v43, 2  ;;  %v3152_v46 = vrot.slane %v3150_v1, 3  ;;  %v7030_v21 = vrot.slane %v5938_v2, 1  ;;  %v1958_v14 = vrot.slane %v1956_v49, 1  ;;  %v6285_v1 = vld [vmem:[%s5530_s23 + $0x68] sm:$0xff]  }
  0xc4   : > { %5044 = vmatmul.mubr.bf16.gmra.mxu1 %v1480_v3  ;;  %5100 = vmatmul.mubr.bf16.gmra.mxu0 %v1927_v33  ;;  %v1953_v3 = vor.u32 %v1952_v23, %v1949_v44  ;;  %v6273_v33 = vsel %vm3536_vm4, %v3552_v47, %v3554_v32  ;;  %v6276_v55 = vsel %vm3536_vm4, %v3554_v32, %v3556_v42  ;;  %v3158_v53 = vrot.slane %v3156_v57, 2 }
  0xc5   : > { %5047 = vmatprep.mubr.bf16.mxu1 %v1482_v18  ;;  %5103 = vmatprep.mubr.bf16.mxu0 %v1936_v63  ;;  %v3161_v30 = vrot.slane %v3159_v15, 3  ;;  %v1484_v31 = vsel %vm992_vm1, %v7030_v21, %v1483_v54  ;;  %v3153_v18 = vor.u32 %v3152_v46, %v3149_v59  ;;  %v1945_v63 = vsel %vm1793_vm3, %v1935_v38, %v1944_v51  ;;  %v6293_v15 = vld [vmem:[%s5530_s23 + $0x70] sm:$0xff]  }
  0xc6   : > { %v1961_v44 = vrot.slane %v1959_v35, 2  ;;  %v1486_v47 = vsel %vm992_vm1, %v1483_v54, %v1485_v37  ;;  %v1954_v43 = vsel %vm1793_vm3, %v1944_v51, %v1953_v3  ;;  %v1487_v57 = vrot.slane %v5979_v48, 1 }
  0xc7   : > { %v3162_v23 = vor.u32 %v3161_v30, %v3158_v53  ;;  %v6288_v32 = vsel %vm3065_vm5, %v3144_v39, %v3153_v18  ;;  %v1489_v2 = vrot.slane %v6026_v17, 1  ;;  %v2729_v54 = vrot.slane %v6060_v0, 2 }
  0xc8   : > { %v3558_v51 = vrot.slane %v6285_v1, 3  ;;  %v3165_v49 = vshrl.u32 %v6285_v1, 16  ;;  %v3168_v39 = vshll.u32 %v6285_v1, 16  ;;  %v1962_v48 = vor.u32 %v1961_v44, %v1958_v14 }
  0xc9   : > { %v6296_v38 = vsel %vm3065_vm5, %v3153_v18, %v3162_v23  ;;  %v7000_v17 = vrot.slane %v6293_v15, 3  ;;  %v3174_v35 = vshrl.u32 %v6293_v15, 16  ;;  %v3177_v59 = vshll.u32 %v6293_v15, 16 }
  0xca   : > { %v2728_v46 = vrot.slane %v6057_v56, 2  ;;  %v6307_v0 = vsel %vm3536_vm4, %v3556_v42, %v3558_v51  ;;  %v3167_v53 = vrot.slane %v3165_v49, 2  ;;  %v3170_v30 = vrot.slane %v3168_v39, 3 }
  0xcb   : > { %v6312_v21 = vsel %vm3536_vm4, %v3558_v51, %v7000_v17  ;;  %v3179_v14 = vrot.slane %v3177_v59, 3  ;;  %v1963_v44 = vsel %vm1793_vm3, %v1953_v3, %v1962_v48  ;;  %v1490_v56 = vsel %vm992_vm1, %v1487_v57, %v1489_v2  ;;  %v5449_v59 = vld [vmem:[%s6996_s1 + $0x1f0] sm:$0xff]  }
  0xcc   : > { %5048 = vmatmul.mubr.bf16.gmra.mxu1 %v1484_v31  ;;  %5104 = vmatmul.mubr.bf16.gmra.mxu0 %v1945_v63  ;;  %v3176_v31 = vrot.slane %v3174_v35, 2  ;;  %v3171_v18 = vor.u32 %v3170_v30, %v3167_v53  ;;  %v1488_v63 = vsel %vm992_vm1, %v1485_v37, %v1487_v57  ;;  %v2730_v42 = vsel %vm2264_vm2, %v2728_v46, %v2729_v54 }
  0xcd   : > { %5051 = vmatprep.mubr.bf16.mxu1 %v1486_v47  ;;  %5107 = vmatprep.mubr.bf16.mxu0 %v1954_v43  ;;  %v5439_v47 = vld [vmem:[%s5530_s23 + $0x98] ss:$0 sps:$4 sm:$0x11]   ;;  %v2731_v3 = vrot.slane %v6072_v7, 2  ;;  %v2733_v39 = vrot.slane %v6103_v22, 2  ;;  %v2735_v7 = vrot.slane %v6113_v52, 2 }
  0xce   : > { %v6317_v43 = vor.u32 %v3179_v14, %v3176_v31  ;;  %v6322_v49 = vsel %vm3065_vm5, %v3162_v23, %v3171_v18  ;;  %v1491_v37 = vrot.slane %v5439_v47, 1  ;;  %v5450_v23 = vld [vmem:[%s6996_s1 + $0x230] sm:$0xff]   ;;  %v5455_v22 = vld [vmem:[%s6996_s1 + $0x228] sm:$0xff]   ;;  %v5460_v52 = vld [vmem:[%s6996_s1 + $0x220] sm:$0xff]   ;;  %v2741_v46 = vrot.slane %v6215_v62, 2 }
  0xcf   : > { %7032 = vst [vmem:[#allocation17_spill] sm:$0xff] %v6322_v49  ;;  %v2732_v48 = vsel %vm2264_vm2, %v2729_v54, %v2731_v3  ;;  %v2734_v35 = vsel %vm2264_vm2, %v2731_v3, %v2733_v39  ;;  %v2736_v54 = vsel %vm2264_vm2, %v2733_v39, %v2735_v7  ;;  %v2743_v30 = vrot.slane %v6223_v61, 2  ;;  %v5468_v31 = vld [vmem:[%s6996_s1 + $0x210] sm:$0xff]  }
  0xd0   : > { %7031 = vst [vmem:[#allocation16_spill] sm:$0xff] %v6317_v43  ;;  %v6326_v51 = vsel %vm3065_vm5, %v3171_v18, %v6317_v43  ;;  %v1492_v57 = vsel %vm992_vm1, %v1489_v2, %v1491_v37  ;;  %v2737_v2 = vrot.slane %v6163_v20, 2  ;;  %v2739_v20 = vrot.slane %v6178_v29, 2  ;;  %v5472_v37 = vld [vmem:[%s6996_s1 + $0x208] sm:$0xff]  }
  0xd1   : > { %7033 = vst [vmem:[#allocation18_spill] sm:$0xff] %v6326_v51 }
  0xd2   : > { %v2742_v29 = vsel %vm2264_vm2, %v2739_v20, %v2741_v46 }
  0xd4   : > { %5052 = vmatmul.mubr.bf16.gmra.mxu1 %v1488_v63  ;;  %5108 = vmatmul.mubr.bf16.gmra.mxu0 %v1963_v44  ;;  %v5462_v63 = vld [vmem:[%s6996_s1 + $0x1d8] sm:$0xff]   ;;  %v2744_v44 = vsel %vm2264_vm2, %v2741_v46, %v2743_v30 }
  0xd5   : > { %5055 = vmatprep.mubr.bf16.mxu1 %v1490_v56  ;;  %5179 = vmatprep.mubr.bf16.mxu0 %v2730_v42  ;;  %v5467_v42 = vld [vmem:[%s6996_s1 + $0x1d0] sm:$0xff]  }
  0xdc   : > { %5056 = vmatmul.mubr.bf16.gmra.mxu1 %v1492_v57  ;;  %5180 = vmatmul.mubr.bf16.vlgmr.msra.gmra.mxu0 %v2732_v48  ;;  %v2747_v57 = vrot.slane %v6259_v19, 2 }
  0xdd   : > { %5127 = vmatprep.mubr.bf16.mxu1 %v5865_v9  ;;  %5268 = vmatpush3.bf16.msra.mxu0 %v6175_v36  ;;  %v2738_v9 = vsel %vm2264_vm2, %v2735_v7, %v2737_v2  ;;  %v5453_v36 = vld [vmem:[%s6996_s1 + $0x1e8] sm:$0xff]  }
  0xde   : > { %5183 = vmatprep.mubr.bf16.mxu0 %v2734_v35  ;;  %5269 = vmatprep.subr.bf16.mxu0 %v5450_v23  ;;  %v2749_v35 = vrot.slane %v6285_v1, 2 }
  0xe1   : > { %5270 = vmatpush3.bf16.msra.mxu0 %v5450_v23 }
  0xe2   : > { %5271 = vmatprep.subr.bf16.mxu0 %v5455_v22 }
  0xe4   : > { %5128 = vmatmul.mubr.bf16.vlgmr.msra.gmra.mxu1 %v5827_v11  ;;  %5184 = vmatmul.mubr.bf16.gmra.mxu0 %v2736_v54  ;;  %v2740_v11 = vsel %vm2264_vm2, %v2737_v2, %v2739_v20  ;;  %v2750_v54 = vsel %vm2264_vm2, %v2747_v57, %v2749_v35 }
  0xe5   : > { %5216 = vmatpush3.bf16.msra.mxu1 %v6197_v25  ;;  %5131 = vmatprep.mubr.bf16.mxu1 %v5873_v10  ;;  %v5457_v10 = vld [vmem:[%s6996_s1 + $0x1e0] sm:$0xff]   ;;  %v5464_v25 = vld [vmem:[%s6996_s1 + $0x218] sm:$0xff]  }
  0xe6   : > { %5217 = vmatprep.subr.bf16.mxu1 %v5449_v59  ;;  %5187 = vmatprep.mubr.bf16.mxu0 %v2738_v9  ;;  %v5475_v9 = vld [vmem:[%s6996_s1 + $0x1c0] sm:$0xff]  }
  0xe7   : > { %5272 = vmatpush3.bf16.msra.mxu0 %v5455_v22 }
  0xe8   : > { %5273 = vmatprep.subr.bf16.mxu0 %v5460_v52 }
  0xe9   : > { %5218 = vmatpush3.bf16.msra.mxu1 %v5449_v59  ;;  %v6430_v59 = vld [vmem:[%s5530_s23 + $0x78] sm:$0xff]  }
  0xea   : > { %5219 = vmatprep.subr.bf16.mxu1 %v5453_v36 }
  0xeb   : > { %5274 = vmatpush3.bf16.msra.mxu0 %v5460_v52 }
  0xec   : > { %v6367_v53 = vpop.f32.mrf.mxu1  ;;  %5132 = vmatmul.mubr.bf16.gmra.mxu1 %v5876_v12  ;;  %v6370_v62 = vpop.f32.mrf.mxu0  ;;  %5188 = vmatmul.mubr.bf16.gmra.mxu0 %v2740_v11  ;;  %v2745_v12 = vrot.slane %v6251_v8, 2 }
  0xed   : > { %5135 = vmatprep.mubr.bf16.mxu1 %v5892_v26  ;;  %5220 = vmatpush3.bf16.msra.mxu1 %v5453_v36  ;;  %v2751_v36 = vrot.slane %v6293_v15, 2 }
  0xee   : > { %v6377_v14 = vpop.f32.mrf.mxu1  ;;  %v6379_v18 = vpop.f32.mrf.mxu0  ;;  %5191 = vmatprep.mubr.bf16.mxu0 %v2742_v29  ;;  %5221 = vmatprep.subr.bf16.mxu1 %v5457_v10  ;;  %v2746_v8 = vsel %vm2264_vm2, %v2743_v30, %v2745_v12  ;;  %v2748_v22 = vsel %vm2264_vm2, %v2745_v12, %v2747_v57 }
  0xef   : > { %5275 = vmatprep.subr.bf16.mxu0 %v5464_v25 }
  0xf0   : > { %v6385_v26 = vpop.f32.mrf.mxu1  ;;  %v6387_v61 = vpop.f32.mrf.mxu0  ;;  %5276 = vmatpush3.bf16.msra.mxu0 %v5464_v25  ;;  %v2752_v25 = vsel %vm2264_vm2, %v2749_v35, %v2751_v36 }
  0xf1   : > { %5222 = vmatpush3.bf16.msra.mxu1 %v5457_v10  ;;  %5277 = vmatprep.subr.bf16.mxu0 %v5468_v31  ;;  %v2753_v10 = vrot.slane %v6430_v59, 2 }
  0xf2   : > { %v6390_v47 = vpop.f32.mrf.mxu1  ;;  %v6392_v56 = vpop.f32.mrf.mxu0  ;;  %5223 = vmatprep.subr.bf16.mxu1 %v5462_v63 }
  0xf3   : > { %v2754_v12 = vsel %vm2264_vm2, %v2751_v36, %v2753_v10  ;;  %v6489_v36 = vld [vmem:[%s5530_s23 + $0x98] sm:$0xff]  }
  0xf4   : > { %v6401_v3 = vpop.f32.mrf.mxu1  ;;  %5136 = vmatmul.mubr.bf16.gmra.mxu1 %v5895_v28  ;;  %v6404_v39 = vpop.f32.mrf.mxu0  ;;  %5192 = vmatmul.mubr.bf16.gmra.mxu0 %v2744_v44  ;;  %v5471_v28 = vld [vmem:[%s6996_s1 + $0x1c8] sm:$0xff]   ;;  %7040 = vst [vmem:[#allocation25_spill] sm:$0xff] %v6489_v36 }
  0xf5   : > { %5139 = vmatprep.mubr.bf16.mxu1 %v5901_v4  ;;  %5195 = vmatprep.mubr.bf16.mxu0 %v2746_v8  ;;  %v5476_v4 = vld [vmem:[%s6996_s1 + $0x200] sm:$0xff]  }
  0xf6   : > { %v6408_v48 = vpop.f32.mrf.mxu1  ;;  %v6410_v23 = vpop.f32.mrf.mxu0  ;;  %5224 = vmatpush3.bf16.msra.mxu1 %v5462_v63  ;;  %5278 = vmatpush3.bf16.msra.mxu0 %v5468_v31  ;;  %v6461_v63 = vld [vmem:[%s5530_s23 + $0x88] sm:$0xff]  }
  0xf7   : > { %5225 = vmatprep.subr.bf16.mxu1 %v5467_v42  ;;  %5279 = vmatprep.subr.bf16.mxu0 %v5472_v37  ;;  %7034 = vst [vmem:[#allocation19_spill] sm:$0xff] %v6461_v63  ;;  %v2757_v35 = vrot.slane %v6461_v63, 2 }
  0xf8   : > { %v6419_v19 = vpop.f32.mrf.mxu1  ;;  %v6421_v7 = vpop.f32.mrf.mxu0 }
  0xfa   : > { %v6424_v2 = vpop.f32.mrf.mxu1  ;;  %v6426_v1 = vpop.f32.mrf.mxu0  ;;  %5226 = vmatpush3.bf16.msra.mxu1 %v5467_v42  ;;  %5280 = vmatpush3.bf16.msra.mxu0 %v5472_v37 }
  0xfb   : > { %5227 = vmatprep.subr.bf16.mxu1 %v5471_v28  ;;  %5281 = vmatprep.subr.bf16.mxu0 %v5476_v4 }
  0xfc   : > { %v6435_v52 = vpop.f32.mrf.mxu1  ;;  %5140 = vmatmul.mubr.bf16.gmra.mxu1 %v5910_v41  ;;  %v6438_v20 = vpop.f32.mrf.mxu0  ;;  %5196 = vmatmul.mubr.bf16.gmra.mxu0 %v2748_v22  ;;  %v6481_v22 = vld [vmem:[%s5530_s23 + $0x90] sm:$0xff]  }
  0xfd   : > { %5143 = vmatprep.mubr.bf16.mxu1 %v5917_v5  ;;  %5199 = vmatprep.mubr.bf16.mxu0 %v2750_v54  ;;  %v6453_v5 = vld [vmem:[%s5530_s23 + $0x80] sm:$0xff]   ;;  %7038 = vst [vmem:[#allocation23_spill] sm:$0xff] %v6481_v22 }
  0xfe   : > { %v6442_v46 = vpop.f32.mrf.mxu1  ;;  %v6444_v11 = vpop.f32.mrf.mxu0  ;;  %5228 = vmatpush3.bf16.msra.mxu1 %v5471_v28  ;;  %5282 = vmatpush3.bf16.msra.mxu0 %v5476_v4  ;;  %v2755_v42 = vrot.slane %v6453_v5, 2 }
  0xff   : > { %5229 = vmatprep.subr.bf16.mxu1 %v5475_v9 }
 0x100   : > { %v6447_v29 = vpop.f32.mrf.mxu1  ;;  %v6449_v41 = vpop.f32.mrf.mxu0 }
 0x102   : > { %v6455_v30 = vpop.f32.mrf.mxu1  ;;  %v6457_v31 = vpop.f32.mrf.mxu0  ;;  %5230 = vmatpush3.bf16.msra.mxu1 %v5475_v9  ;;  %v2758_v9 = vsel %vm2264_vm2, %v2755_v42, %v2757_v35 }
 0x104   : > { %v6463_v44 = vpop.f32.mrf.mxu1  ;;  %5144 = vmatmul.mubr.bf16.gmra.mxu1 %v5928_v58  ;;  %v6466_v8 = vpop.f32.mrf.mxu0  ;;  %5200 = vmatmul.mubr.bf16.gmra.mxu0 %v2752_v25  ;;  %v2756_v58 = vsel %vm2264_vm2, %v2753_v10, %v2755_v42  ;;  %v2759_v10 = vrot.slane %v6481_v22, 2 }
 0x105   : > { %7035 = vst [vmem:[#allocation20_spill] sm:$0xff] %v6463_v44  ;;  %5147 = vmatprep.mubr.bf16.mxu1 %v5941_v6  ;;  %5203 = vmatprep.mubr.bf16.mxu0 %v2754_v12 }
 0x106   : > { %v6470_v37 = vpop.f32.mrf.mxu1  ;;  %v6472_v57 = vpop.f32.mrf.mxu0 }
 0x107   : > { %7036 = vst [vmem:[#allocation21_spill] sm:$0xff] %v6470_v37 }
 0x108   : > { %v6475_v28 = vpop.f32.mrf.mxu1  ;;  %v6477_v4 = vpop.f32.mrf.mxu0 }
 0x109   : > { %7037 = vst [vmem:[#allocation22_spill] sm:$0xff] %v6475_v28  ;;  %v2760_v28 = vsel %vm2264_vm2, %v2757_v35, %v2759_v10 }
 0x10a   : > { %v6483_v54 = vpop.f32.mrf.mxu1  ;;  %v6485_v6 = vpop.f32.mrf.mxu0 }
 0x10b   : > { %7039 = vst [vmem:[#allocation24_spill] sm:$0xff] %v6483_v54  ;;  %v2761_v54 = vrot.slane %v6489_v36, 2 }
 0x10c   : > { %v6491_v25 = vpop.f32.mrf.mxu1  ;;  %5148 = vmatmul.mubr.bf16.gmra.mxu1 %v5952_v16  ;;  %v4973_v12 = vpop.f32.mrf.mxu0  ;;  %5204 = vmatmul.mubr.bf16.gmra.mxu0 %v2756_v58 }
 0x10d   : > { %7041 = vst [vmem:[#allocation26_spill] sm:$0xff] %v6491_v25  ;;  %5151 = vmatprep.mubr.bf16.mxu1 %v5962_v50  ;;  %5207 = vmatprep.mubr.bf16.mxu0 %v2758_v9  ;;  %v5474_v25 = vld [vmem:[%s5530_s23 + $0xa0] ss:$0 sps:$4 sm:$0x33]   ;;  %v2762_v58 = vsel %vm2264_vm2, %v2759_v10, %v2761_v54 }
 0x10e   : > { %v6496_v17 = vpop.f32.mrf.mxu1  ;;  %v1130_v51 = vpop.f32.mrf.mxu0 }
 0x10f   : > { %7042 = vst [vmem:[#allocation27_spill] sm:$0xff] %v6496_v17 }
 0x110   : > { %v6499_v43 = vpop.f32.mrf.mxu1  ;;  %v4974_v42 = vpop.f32.mrf.mxu0 }
 0x111   : > { %7043 = vst [vmem:[#allocation28_spill] sm:$0xff] %v6499_v43  ;;  %v2763_v43 = vrot.slane %v5474_v25, 2 }
 0x112   : > { %v6503_v37 = vpop.f32.mrf.mxu1  ;;  %v1133_v16 = vpop.f32.mrf.mxu0 }
 0x113   : > { %7044 = vst [vmem:[#allocation29_spill] sm:$0xff] %v6503_v37 }
 0x114   : > { %v4921_v50 = vpop.f32.mrf.mxu1  ;;  %5152 = vmatmul.mubr.bf16.gmra.mxu1 %v5975_v45  ;;  %v4977_v9 = vpop.f32.mrf.mxu0  ;;  %5208 = vmatmul.mubr.bf16.gmra.mxu0 %v2760_v28  ;;  %v2764_v45 = vsel %vm2264_vm2, %v2761_v54, %v2763_v43 }
 0x115   : > { %v837_v17 = vadd.f32 %v4921_v50, %v6370_v62  ;;  %5155 = vmatprep.mubr.bf16.mxu1 %v6002_v27  ;;  %5211 = vmatprep.mubr.bf16.mxu0 %v2762_v58 }
 0x116   : > { %v828_v36 = vpop.f32.mrf.mxu1  ;;  %v1146_v22 = vpop.f32.mrf.mxu0 }
 0x117   : > { %v829_v35 = vadd.f32 %v828_v36, %v6379_v18  ;;  %v6510_v63 = vadd.f32 %v4973_v12, %v837_v17  ;;  %v7045_v36 = vld [vmem:[#allocation2_spill] sm:$0xff] }
 0x118   : > { %v4922_v37 = vpop.f32.mrf.mxu1  ;;  %v4978_v49 = vpop.f32.mrf.mxu0 }
 0x119   : > { %v840_v10 = vadd.f32 %v4922_v37, %v6387_v61  ;;  %v6514_v44 = vadd.f32 %v1130_v51, %v829_v35  ;;  %v7046_v61 = vld [vmem:[#allocation4_spill] sm:$0xff] }
 0x11a   : > { %v831_v28 = vpop.f32.mrf.mxu1  ;;  %v1149_v62 = vpop.f32.mrf.mxu0 }
 0x11b   : > { %v832_v27 = vadd.f32 %v831_v28, %v6392_v56  ;;  %v6517_v58 = vadd.f32 %v4974_v42, %v840_v10  ;;  %v7047_v28 = vld [vmem:[#allocation3_spill] sm:$0xff] }
 0x11c   : > { %v4925_v25 = vpop.f32.mrf.mxu1  ;;  %5156 = vmatmul.mubr.bf16.gmra.mxu1 %v6007_v40  ;;  %v4981_v18 = vpop.f32.mrf.mxu0  ;;  %5212 = vmatmul.mubr.bf16.gmra.mxu0 %v2764_v45 }
 0x11d   : > { %v853_v17 = vadd.f32 %v4925_v25, %v6404_v39  ;;  %5159 = vmatprep.mubr.bf16.mxu1 %v7045_v36  ;;  %5283 = vmatprep.mubr.bf16.mxu0 %v7046_v61  ;;  %v6523_v43 = vadd.f32 %v1133_v16, %v832_v27  ;;  %v7048_v25 = vld [vmem:[#allocation5_spill] sm:$0xff] }
 0x11e   : > { %v844_v51 = vpop.f32.mrf.mxu1  ;;  %v1162_v37 = vpop.f32.mrf.mxu0 }
 0x11f   : > { %v845_v54 = vadd.f32 %v844_v51, %v6410_v23  ;;  %v6526_v56 = vadd.f32 %v4977_v9, %v853_v17  ;;  %v7049_v9 = vld [vmem:[#allocation7_spill] sm:$0xff] }
 0x120   : > { %v4926_v12 = vpop.f32.mrf.mxu1  ;;  %v4982_v42 = vpop.f32.mrf.mxu0 }
 0x121   : > { %v856_v40 = vadd.f32 %v4926_v12, %v6421_v7  ;;  %v6529_v50 = vadd.f32 %v1146_v22, %v845_v54 }
 0x122   : > { %v847_v35 = vpop.f32.mrf.mxu1  ;;  %v1165_v39 = vpop.f32.mrf.mxu0 }
 0x123   : > { %v848_v10 = vadd.f32 %v847_v35, %v6426_v1  ;;  %v6532_v45 = vadd.f32 %v4978_v49, %v856_v40  ;;  %v7050_v35 = vld [vmem:[#allocation6_spill] sm:$0xff] }
 0x124   : > { %v4929_v16 = vpop.f32.mrf.mxu1  ;;  %5160 = vmatmul.mubr.bf16.gmra.mxu1 %v7047_v28  ;;  %v4985_v27 = vpop.f32.mrf.mxu0  ;;  %5284 = vmatmul.mubr.bf16.vlgmr.msra.gmra.mxu0 %v7048_v25  ;;  %v7053_v28 = vld [vmem:[#allocation11_spill] sm:$0xff] }
 0x125   : > { %v869_v23 = vadd.f32 %v4929_v16, %v6438_v20  ;;  %5231 = vmatprep.mubr.bf16.mxu1 %v6116_v34  ;;  %5287 = vmatprep.mubr.bf16.mxu0 %v7049_v9  ;;  %v6539_v7 = vadd.f32 %v1149_v62, %v848_v10  ;;  %v7051_v16 = vld [vmem:[#allocation8_spill] sm:$0xff] }
 0x126   : > { %v860_v22 = vpop.f32.mrf.mxu1  ;;  %v1178_v17 = vpop.f32.mrf.mxu0 }
 0x127   : > { %v861_v1 = vadd.f32 %v860_v22, %v6444_v11  ;;  %v6542_v49 = vadd.f32 %v4981_v18, %v869_v23  ;;  %v7052_v18 = vld [vmem:[#allocation9_spill] sm:$0xff] }
 0x128   : > { %v4930_v36 = vpop.f32.mrf.mxu1  ;;  %v4986_v61 = vpop.f32.mrf.mxu0 }
 0x129   : > { %v872_v51 = vadd.f32 %v4930_v36, %v6449_v41  ;;  %v6545_v54 = vadd.f32 %v1162_v37, %v861_v1 }
 0x12a   : > { %v863_v12 = vpop.f32.mrf.mxu1  ;;  %v1181_v20 = vpop.f32.mrf.mxu0 }
 0x12b   : > { %v864_v34 = vadd.f32 %v863_v12, %v6457_v31  ;;  %v6548_v40 = vadd.f32 %v4982_v42, %v872_v51 }
 0x12c   : > { %v4933_v62 = vpop.f32.mrf.mxu1  ;;  %5232 = vmatmul.mubr.bf16.vlgmr.msra.gmra.mxu1 %v7050_v35  ;;  %v4989_v10 = vpop.f32.mrf.mxu0  ;;  %5288 = vmatmul.mubr.bf16.gmra.mxu0 %v7051_v16 }
 0x12d   : > { %v885_v11 = vadd.f32 %v4933_v62, %v6466_v8  ;;  %5235 = vmatprep.mubr.bf16.mxu1 %v7052_v18  ;;  %5291 = vmatprep.mubr.bf16.mxu0 %v7053_v28  ;;  %v6555_v41 = vadd.f32 %v1165_v39, %v864_v34  ;;  %v7054_v34 = vld [vmem:[#allocation10_spill] sm:$0xff] }
 0x12e   : > { %v876_v37 = vpop.f32.mrf.mxu1  ;;  %v1194_v25 = vpop.f32.mrf.mxu0 }
 0x12f   : > { %v877_v31 = vadd.f32 %v876_v37, %v6472_v57  ;;  %v6558_v42 = vadd.f32 %v4985_v27, %v885_v11  ;;  %v7055_v27 = vld [vmem:[#allocation12_spill] sm:$0xff] }
 0x130   : > { %v4934_v23 = vpop.f32.mrf.mxu1  ;;  %v4990_v9 = vpop.f32.mrf.mxu0 }
 0x131   : > { %v888_v22 = vadd.f32 %v4934_v23, %v6477_v4  ;;  %v6561_v1 = vadd.f32 %v1178_v17, %v877_v31 }
 0x132   : > { %v879_v36 = vpop.f32.mrf.mxu1  ;;  %v1197_v8 = vpop.f32.mrf.mxu0 }
 0x133   : > { %v880_v51 = vadd.f32 %v879_v36, %v6485_v6  ;;  %v6564_v12 = vadd.f32 %v4986_v61, %v888_v22  ;;  %v7057_v22 = vld [vmem:[#allocation14_spill] sm:$0xff] }
 0x134   : > { %v4937_v39 = vpop.f32.mrf.mxu1  ;;  %5236 = vmatmul.mubr.bf16.gmra.mxu1 %v7054_v34  ;;  %v4993_v62 = vpop.f32.mrf.mxu0  ;;  %5292 = vmatmul.mubr.bf16.gmra.mxu0 %v6201_v24 }
 0x135   : > { %v901_v57 = vadd.f32 %v4937_v39, %v6367_v53  ;;  %5239 = vmatprep.mubr.bf16.mxu1 %v7055_v27  ;;  %5295 = vmatprep.mubr.bf16.mxu0 %v6237_v13  ;;  %v6571_v4 = vadd.f32 %v1181_v20, %v880_v51  ;;  %v7056_v20 = vld [vmem:[#allocation13_spill] sm:$0xff] }
 0x136   : > { %v892_v17 = vpop.f32.mrf.mxu1  ;;  %v1210_v35 = vpop.f32.mrf.mxu0 }
 0x137   : > { %v893_v6 = vadd.f32 %v892_v17, %v6377_v14  ;;  %v6574_v61 = vadd.f32 %v4989_v10, %v901_v57 }
 0x138   : > { %v4938_v16 = vpop.f32.mrf.mxu1  ;;  %v4994_v11 = vpop.f32.mrf.mxu0 }
 0x139   : > { %v904_v18 = vadd.f32 %v4938_v16, %v6385_v26  ;;  %v6577_v28 = vadd.f32 %v1194_v25, %v893_v6  ;;  %v3183_v6 = vshrl.u32 %v6430_v59, 16  ;;  %v3186_v16 = vshll.u32 %v6430_v59, 16 }
 0x13a   : > { %v895_v24 = vpop.f32.mrf.mxu1  ;;  %v1213_v53 = vpop.f32.mrf.mxu0 }
 0x13b   : > { %v896_v37 = vadd.f32 %v895_v24, %v6390_v47  ;;  %v6580_v31 = vadd.f32 %v4990_v9, %v904_v18 }
 0x13c   : > { %v4941_v13 = vpop.f32.mrf.mxu1  ;;  %5240 = vmatmul.mubr.bf16.gmra.mxu1 %v7056_v20  ;;  %v4997_v23 = vpop.f32.mrf.mxu0  ;;  %5296 = vmatmul.mubr.bf16.gmra.mxu0 %v7057_v22  ;;  %v3185_v20 = vrot.slane %v3183_v6, 2  ;;  %v3188_v22 = vrot.slane %v3186_v16, 3 }
 0x13d   : > { %v917_v14 = vadd.f32 %v4941_v13, %v6401_v3  ;;  %5243 = vmatprep.mubr.bf16.mxu1 %v6254_v60  ;;  %5299 = vmatprep.mubr.bf16.mxu0 %v6273_v33  ;;  %v6587_v26 = vadd.f32 %v1197_v8, %v896_v37  ;;  %v7058_v8 = vld [vmem:[#allocation15_spill] sm:$0xff]  ;;  %v7059_v37 = vrot.slane %v6293_v15, 3  ;;  %v3192_v15 = vshrl.u32 %v6453_v5, 16 }
 0x13e   : > { %v908_v10 = vpop.f32.mrf.mxu1  ;;  %v1226_v25 = vpop.f32.mrf.mxu0 }
 0x13f   : > { %v909_v47 = vadd.f32 %v908_v10, %v6408_v48  ;;  %v6590_v9 = vadd.f32 %v4993_v62, %v917_v14  ;;  %v7060_v10 = vld [vmem:[#allocation20_spill] sm:$0xff] }
 0x140   : > { %v4942_v36 = vpop.f32.mrf.mxu1  ;;  %v4998_v51 = vpop.f32.mrf.mxu0 }
 0x141   : > { %v920_v39 = vadd.f32 %v4942_v36, %v6419_v19  ;;  %v6593_v34 = vadd.f32 %v1210_v35, %v909_v47  ;;  %v7061_v47 = vld [vmem:[#allocation17_spill] sm:$0xff]  ;;  %v3195_v36 = vshll.u32 %v6453_v5, 16 }
 0x142   : > { %v911_v57 = vpop.f32.mrf.mxu1  ;;  %v1229_v3 = vpop.f32.mrf.mxu0 }
 0x143   : > { %v912_v60 = vadd.f32 %v911_v57, %v6424_v2  ;;  %v6596_v27 = vadd.f32 %v4994_v11, %v920_v39  ;;  %v3562_v2 = vrot.slane %v6430_v59, 3  ;;  %v3189_v57 = vor.u32 %v3188_v22, %v3185_v20  ;;  %v7065_v20 = vld [vmem:[#allocation16_spill] sm:$0xff] }
 0x144   : > { %v4945_v33 = vpop.f32.mrf.mxu1  ;;  %5244 = vmatmul.mubr.bf16.gmra.mxu1 %v7058_v8  ;;  %v5001_v17 = vpop.f32.mrf.mxu0  ;;  %5300 = vmatmul.mubr.bf16.gmra.mxu0 %v6276_v55  ;;  %v7063_v8 = vld [vmem:[#allocation21_spill] sm:$0xff] }
 0x145   : > { %v933_v48 = vadd.f32 %v4945_v33, %v6435_v52  ;;  %5247 = vmatprep.mubr.bf16.mxu1 %v6288_v32  ;;  %5303 = vmatprep.mubr.bf16.mxu0 %v6307_v0  ;;  %v6603_v19 = vadd.f32 %v1213_v53, %v912_v60  ;;  %v3563_v13 = vsel %vm3536_vm4, %v7059_v37, %v3562_v2 }
 0x146   : > { %v924_v62 = vpop.f32.mrf.mxu1  ;;  %v1242_v35 = vpop.f32.mrf.mxu0  ;;  %v3190_v22 = vsel %vm3065_vm5, %v7065_v20, %v3189_v57 }
 0x147   : > { %v925_v11 = vadd.f32 %v924_v62, %v6442_v46  ;;  %v6609_v18 = vadd.f32 %v4997_v23, %v933_v48 }
 0x148   : > { %v4946_v55 = vpop.f32.mrf.mxu1  ;;  %v5002_v52 = vpop.f32.mrf.mxu0 }
 0x149   : > { %v936_v32 = vadd.f32 %v4946_v55, %v6447_v29  ;;  %v6612_v24 = vadd.f32 %v1226_v25, %v925_v11  ;;  %v3564_v29 = vrot.slane %v6453_v5, 3  ;;  %v7064_v5 = vld [vmem:[#allocation22_spill] sm:$0xff]  ;;  %v3194_v55 = vrot.slane %v3192_v15, 2 }
 0x14a   : > { %v927_v0 = vpop.f32.mrf.mxu1  ;;  %v1245_v53 = vpop.f32.mrf.mxu0 }
 0x14b   : > { %v928_v59 = vadd.f32 %v927_v0, %v6455_v30  ;;  %v6618_v14 = vadd.f32 %v4998_v51, %v936_v32  ;;  %v3565_v11 = vsel %vm3536_vm4, %v3562_v2, %v3564_v29  ;;  %v3197_v32 = vrot.slane %v3195_v36, 3 }
 0x14c   : > { %v4949_v46 = vpop.f32.mrf.mxu1  ;;  %5248 = vmatmul.mubr.bf16.gmra.mxu1 %v6296_v38  ;;  %v5005_v23 = vpop.f32.mrf.mxu0  ;;  %5304 = vmatmul.mubr.bf16.gmra.mxu0 %v6312_v21  ;;  %v7062_v38 = vld [vmem:[#allocation19_spill] sm:$0xff] }
 0x14d   : > { %v949_v25 = vadd.f32 %v4949_v46, %v7060_v10  ;;  %5251 = vmatprep.mubr.bf16.mxu1 %v7061_v47  ;;  %5307 = vmatprep.mubr.bf16.mxu0 %v3563_v13  ;;  %v6627_v30 = vadd.f32 %v1229_v3, %v928_v59  ;;  %v3566_v60 = vrot.slane %v7062_v38, 3  ;;  %v3201_v21 = vshrl.u32 %v7062_v38, 16  ;;  %v7066_v10 = vld [vmem:[#allocation24_spill] sm:$0xff] }
 0x14e   : > { %v940_v51 = vpop.f32.mrf.mxu1  ;;  %v1258_v39 = vpop.f32.mrf.mxu0  ;;  %v3204_v33 = vshll.u32 %v7062_v38, 16 }
 0x14f   : > { %v941_v48 = vadd.f32 %v940_v51, %v7063_v8  ;;  %v6633_v62 = vadd.f32 %v5001_v17, %v949_v25  ;;  %v3567_v59 = vsel %vm3536_vm4, %v3564_v29, %v3566_v60  ;;  %v3203_v46 = vrot.slane %v3201_v21, 2  ;;  %v7068_v51 = vld [vmem:[#allocation18_spill] sm:$0xff] }
 0x150   : > { %v4950_v6 = vpop.f32.mrf.mxu1  ;;  %v5006_v16 = vpop.f32.mrf.mxu0  ;;  %v3206_v17 = vrot.slane %v3204_v33, 3  ;;  %v7070_v8 = vld [vmem:[#allocation26_spill] sm:$0xff] }
 0x151   : > { %v952_v3 = vadd.f32 %v4950_v6, %v7064_v5  ;;  %v6637_v0 = vadd.f32 %v1242_v35, %v941_v48  ;;  %v7069_v35 = vld [vmem:[#allocation23_spill] sm:$0xff]  ;;  %v3198_v6 = vor.u32 %v3197_v32, %v3194_v55 }
 0x152   : > { %v943_v37 = vpop.f32.mrf.mxu1  ;;  %v1261_v13 = vpop.f32.mrf.mxu0  ;;  %v3210_v36 = vshrl.u32 %v7069_v35, 16  ;;  %v3213_v38 = vshll.u32 %v7069_v35, 16  ;;  %v3568_v29 = vrot.slane %v7069_v35, 3  ;;  %v3207_v5 = vor.u32 %v3206_v17, %v3203_v46  ;;  %v5478_v35 = vld [vmem:[%s5530_s23 + $0xa0] ss:$0 sps:$4 sm:$0x77]  }
 0x153   : > { %v944_v25 = vadd.f32 %v943_v37, %v7066_v10  ;;  %v6643_v47 = vadd.f32 %v5002_v52, %v952_v3  ;;  %v7072_v3 = vld [vmem:[#allocation25_spill] sm:$0xff]  ;;  %v7073_v10 = vld [vmem:[#allocation27_spill] sm:$0xff] }
 0x154   : > { %v4953_v2 = vpop.f32.mrf.mxu1  ;;  %5252 = vmatmul.mubr.bf16.gmra.mxu1 %v7068_v51  ;;  %v5077_v15 = vpop.f32.mrf.mxu0  ;;  %5308 = vmatmul.mubr.bf16.gmra.mxu0 %v3565_v11  ;;  %v3570_v37 = vrot.slane %v7072_v3, 3  ;;  %v3219_v11 = vshrl.u32 %v7072_v3, 16  ;;  %v3222_v20 = vshll.u32 %v7072_v3, 16  ;;  %v3569_v46 = vsel %vm3536_vm4, %v3566_v60, %v3568_v29 }
 0x155   : > { %7067 = vst [vmem:[#allocation2_spill] sm:$0xff] %v6643_v47  ;;  %v965_v48 = vadd.f32 %v4953_v2, %v7070_v8  ;;  %5255 = vmatprep.mubr.bf16.mxu1 %v3190_v22  ;;  %5311 = vmatprep.mubr.bf16.mxu0 %v3567_v59  ;;  %v6650_v21 = vadd.f32 %v1245_v53, %v944_v25  ;;  %v3212_v22 = vrot.slane %v3210_v36, 2  ;;  %v3215_v59 = vrot.slane %v3213_v38, 3  ;;  %v7075_v53 = vld [vmem:[#allocation28_spill] sm:$0xff] }
 0x156   : > { %v956_v52 = vpop.f32.mrf.mxu1  ;;  %v2064_v33 = vpop.f32.mrf.mxu0  ;;  %v3199_v8 = vsel %vm3065_vm5, %v3189_v57, %v3198_v6  ;;  %v3208_v3 = vsel %vm3065_vm5, %v3198_v6, %v3207_v5  ;;  %v3572_v60 = vrot.slane %v5478_v35, 3  ;;  %v3231_v6 = vshll.u32 %v5478_v35, 16 }
 0x157   : > { %7071 = vst [vmem:[#allocation4_spill] sm:$0xff] %v6650_v21  ;;  %v957_v51 = vadd.f32 %v956_v52, %v7073_v10  ;;  %v6656_v2 = vadd.f32 %v5005_v23, %v965_v48  ;;  %v3571_v23 = vsel %vm3536_vm4, %v3568_v29, %v3570_v37  ;;  %v3221_v48 = vrot.slane %v3219_v11, 2  ;;  %v7076_v10 = vld [vmem:[#allocation29_spill] sm:$0xff] }
 0x158   : > { %v4954_v55 = vpop.f32.mrf.mxu1  ;;  %v5078_v32 = vpop.f32.mrf.mxu0  ;;  %v3224_v52 = vrot.slane %v3222_v20, 3  ;;  %v3216_v57 = vor.u32 %v3215_v59, %v3212_v22  ;;  %v3573_v59 = vsel %vm3536_vm4, %v3570_v37, %v3572_v60 }
 0x159   : > { %7074 = vst [vmem:[#allocation3_spill] sm:$0xff] %v6656_v2  ;;  %v968_v25 = vadd.f32 %v4954_v55, %v7075_v53  ;;  %v6662_v17 = vadd.f32 %v1258_v39, %v957_v51  ;;  %v3228_v51 = vshrl.u32 %v5478_v35, 16 }
 0x15a   : > { %v959_v21 = vpop.f32.mrf.mxu1  ;;  %v2067_v47 = vpop.f32.mrf.mxu0  ;;  %v3225_v20 = vor.u32 %v3224_v52, %v3221_v48 }
 0x15b   : > { %v960_v36 = vadd.f32 %v959_v21, %v7076_v10  ;;  %v6667_v38 = vadd.f32 %v5006_v16, %v968_v25 }
 0x15c   : > { %v5025_v2 = vpop.f32.mrf.mxu1  ;;  %5256 = vmatmul.mubr.bf16.gmra.mxu1 %v3199_v8  ;;  %v5081_v55 = vpop.f32.mrf.mxu0  ;;  %5312 = vmatmul.mubr.bf16.gmra.mxu0 %v3569_v46  ;;  %v3217_v8 = vsel %vm3065_vm5, %v3207_v5, %v3216_v57  ;;  %v3233_v46 = vrot.slane %v3231_v6, 3 }
 0x15d   : > { %v1738_v39 = vadd.f32 %v5025_v2, %v6510_v63  ;;  %5259 = vmatprep.mubr.bf16.mxu1 %v3208_v3  ;;  %5315 = vmatprep.mubr.bf16.mxu0 %v3571_v23  ;;  %v6670_v53 = vadd.f32 %v1261_v13, %v960_v36  ;;  %v3230_v2 = vrot.slane %v3228_v51, 2  ;;  %v3226_v23 = vsel %vm3065_vm5, %v3216_v57, %v3225_v20 }
 0x15e   : > { %v1593_v29 = vpop.f32.mrf.mxu1  ;;  %v2080_v11 = vpop.f32.mrf.mxu0 }
 0x15f   : > { %v1736_v16 = vadd.f32 %v1593_v29, %v6514_v44  ;;  %v6673_v21 = vadd.f32 %v5077_v15, %v1738_v39 }
 0x160   : > { %v5026_v25 = vpop.f32.mrf.mxu1  ;;  %v5082_v22 = vpop.f32.mrf.mxu0 }
 0x161   : > { %v1739_v63 = vadd.f32 %v5026_v25, %v6517_v58  ;;  %v6678_v35 = vadd.f32 %v2064_v33, %v1736_v16  ;;  %v3234_v58 = vor.u32 %v3233_v46, %v3230_v2 }
 0x162   : > { %v1596_v13 = vpop.f32.mrf.mxu1  ;;  %v2083_v3 = vpop.f32.mrf.mxu0 }
 0x163   : > { %v1737_v44 = vadd.f32 %v1596_v13, %v6523_v43  ;;  %v6682_v15 = vadd.f32 %v5078_v32, %v1739_v63  ;;  %v3235_v39 = vsel %vm3065_vm5, %v3225_v20, %v3234_v58 }
 0x164   : > { %v5029_v48 = vpop.f32.mrf.mxu1  ;;  %5260 = vmatmul.mubr.bf16.gmra.mxu1 %v3217_v8  ;;  %v5085_v5 = vpop.f32.mrf.mxu0  ;;  %5316 = vmatmul.mubr.bf16.gmra.mxu0 %v3573_v59 }
 0x165   : > { %v1742_v37 = vadd.f32 %v5029_v48, %v6526_v56  ;;  %5263 = vmatprep.mubr.bf16.mxu1 %v3226_v23  ;;  %v6685_v52 = vadd.f32 %v2067_v47, %v1737_v44 }
 0x166   : > { %v1609_v33 = vpop.f32.mrf.mxu1  ;;  %v2096_v10 = vpop.f32.mrf.mxu0 }
 0x167   : > { %v1740_v36 = vadd.f32 %v1609_v33, %v6529_v50  ;;  %v6688_v60 = vadd.f32 %v5081_v55, %v1742_v37 }
 0x168   : > { %v5030_v57 = vpop.f32.mrf.mxu1  ;;  %v5086_v43 = vpop.f32.mrf.mxu0 }
 0x169   : > { %v1743_v32 = vadd.f32 %v5030_v57, %v6532_v45  ;;  %v6692_v51 = vadd.f32 %v2080_v11, %v1740_v36 }
 0x16a   : > { %v1612_v6 = vpop.f32.mrf.mxu1  ;;  %v2099_v56 = vpop.f32.mrf.mxu0 }
 0x16b   : > { %v1741_v29 = vadd.f32 %v1612_v6, %v6539_v7  ;;  %v6695_v47 = vadd.f32 %v5082_v22, %v1743_v32 }
 0x16c   : > { %v5033_v16 = vpop.f32.mrf.mxu1  ;;  %5264 = vmatmul.mubr.bf16.gmra.mxu1 %v3235_v39  ;;  %v5089_v25 = vpop.f32.mrf.mxu0 }
 0x16d   : > { %v1746_v50 = vadd.f32 %v5033_v16, %v6542_v49  ;;  %v6698_v55 = vadd.f32 %v2083_v3, %v1741_v29 }
 0x16e   : > { %v1625_v8 = vpop.f32.mrf.mxu1  ;;  %v2112_v59 = vpop.f32.mrf.mxu0 }
 0x16f   : > { %v1744_v45 = vadd.f32 %v1625_v8, %v6545_v54  ;;  %v6701_v20 = vadd.f32 %v5085_v5, %v1746_v50 }
 0x170   : > { %v5034_v11 = vpop.f32.mrf.mxu1  ;;  %v5090_v63 = vpop.f32.mrf.mxu0 }
 0x171   : > { %v1747_v2 = vadd.f32 %v5034_v11, %v6548_v40  ;;  %v6704_v7 = vadd.f32 %v2096_v10, %v1744_v45 }
 0x172   : > { %v1628_v22 = vpop.f32.mrf.mxu1  ;;  %v2115_v46 = vpop.f32.mrf.mxu0 }
 0x173   : > { %v1745_v13 = vadd.f32 %v1628_v22, %v6555_v41  ;;  %v6707_v23 = vadd.f32 %v5086_v43, %v1747_v2 }
 0x174   : > { %v5037_v49 = vpop.f32.mrf.mxu1  ;;  %v5093_v3 = vpop.f32.mrf.mxu0 }
 0x175   : > { %v1750_v44 = vadd.f32 %v5037_v49, %v6558_v42  ;;  %v6710_v48 = vadd.f32 %v2099_v56, %v1745_v13 }
 0x176   : > { %v1641_v54 = vpop.f32.mrf.mxu1  ;;  %v2128_v5 = vpop.f32.mrf.mxu0 }
 0x177   : > { %v1748_v37 = vadd.f32 %v1641_v54, %v6561_v1  ;;  %v6713_v58 = vadd.f32 %v5089_v25, %v1750_v44 }
 0x178   : > { %v5038_v40 = vpop.f32.mrf.mxu1  ;;  %v5094_v33 = vpop.f32.mrf.mxu0 }
 0x179   : > { %v1751_v10 = vadd.f32 %v5038_v40, %v6564_v12  ;;  %v6716_v36 = vadd.f32 %v2112_v59, %v1748_v37 }
 0x17a   : > { %v1644_v41 = vpop.f32.mrf.mxu1  ;;  %v2131_v57 = vpop.f32.mrf.mxu0 }
 0x17b   : > { %v1749_v43 = vadd.f32 %v1644_v41, %v6571_v4  ;;  %v6719_v32 = vadd.f32 %v5090_v63, %v1751_v10 }
 0x17c   : > { %v5041_v42 = vpop.f32.mrf.mxu1  ;;  %v5097_v39 = vpop.f32.mrf.mxu0 }
 0x17d   : > { %v1754_v6 = vadd.f32 %v5041_v42, %v6574_v61  ;;  %v6722_v56 = vadd.f32 %v2115_v46, %v1749_v43 }
 0x17e   : > { %v1657_v1 = vpop.f32.mrf.mxu1  ;;  %v2144_v29 = vpop.f32.mrf.mxu0 }
 0x17f   : > { %v1752_v16 = vadd.f32 %v1657_v1, %v6577_v28  ;;  %v6725_v25 = vadd.f32 %v5093_v3, %v1754_v6 }
 0x180   : > { %v5042_v12 = vpop.f32.mrf.mxu1  ;;  %v5098_v50 = vpop.f32.mrf.mxu0 }
 0x181   : > { %v1755_v8 = vadd.f32 %v5042_v12, %v6580_v31  ;;  %v6728_v59 = vadd.f32 %v2128_v5, %v1752_v16 }
 0x182   : > { %v1660_v4 = vpop.f32.mrf.mxu1  ;;  %v2147_v45 = vpop.f32.mrf.mxu0 }
 0x183   : > { %v1753_v11 = vadd.f32 %v1660_v4, %v6587_v26  ;;  %v6731_v63 = vadd.f32 %v5094_v33, %v1755_v8 }
 0x184   : > { %v5045_v61 = vpop.f32.mrf.mxu1  ;;  %v5101_v2 = vpop.f32.mrf.mxu0 }
 0x185   : > { %v1758_v22 = vadd.f32 %v5045_v61, %v6590_v9  ;;  %v6734_v46 = vadd.f32 %v2131_v57, %v1753_v11 }
 0x186   : > { %v1673_v28 = vpop.f32.mrf.mxu1  ;;  %v2160_v13 = vpop.f32.mrf.mxu0 }
 0x187   : > { %v1756_v49 = vadd.f32 %v1673_v28, %v6593_v34  ;;  %v6737_v3 = vadd.f32 %v5097_v39, %v1758_v22  ;;  %v7077_v28 = vld [vmem:[#allocation2_spill] sm:$0xff] }
 0x188   : > { %v5046_v31 = vpop.f32.mrf.mxu1  ;;  %v5102_v44 = vpop.f32.mrf.mxu0 }
 0x189   : > { %v1759_v54 = vadd.f32 %v5046_v31, %v6596_v27  ;;  %v6740_v5 = vadd.f32 %v2144_v29, %v1756_v49 }
 0x18a   : > { %v1676_v26 = vpop.f32.mrf.mxu1  ;;  %v2163_v37 = vpop.f32.mrf.mxu0 }
 0x18b   : > { %v1757_v40 = vadd.f32 %v1676_v26, %v6603_v19  ;;  %v6743_v33 = vadd.f32 %v5098_v50, %v1759_v54 }
 0x18c   : > { %v5049_v9 = vpop.f32.mrf.mxu1  ;;  %v5105_v10 = vpop.f32.mrf.mxu0 }
 0x18d   : > { %v1762_v41 = vadd.f32 %v5049_v9, %v6609_v18  ;;  %v6746_v57 = vadd.f32 %v2147_v45, %v1757_v40  ;;  %v7079_v40 = vld [vmem:[#allocation3_spill] sm:$0xff] }
 0x18e   : > { %v1689_v34 = vpop.f32.mrf.mxu1  ;;  %v2176_v43 = vpop.f32.mrf.mxu0 }
 0x18f   : > { %v1760_v42 = vadd.f32 %v1689_v34, %v6612_v24  ;;  %v6749_v39 = vadd.f32 %v5101_v2, %v1762_v41 }
 0x190   : > { %v5050_v27 = vpop.f32.mrf.mxu1  ;;  %v5106_v6 = vpop.f32.mrf.mxu0 }
 0x191   : > { %v1763_v1 = vadd.f32 %v5050_v27, %v6618_v14  ;;  %v6752_v29 = vadd.f32 %v2160_v13, %v1760_v42 }
 0x192   : > { %v1692_v19 = vpop.f32.mrf.mxu1  ;;  %v2179_v16 = vpop.f32.mrf.mxu0 }
 0x193   : > { %v1761_v12 = vadd.f32 %v1692_v19, %v6627_v30  ;;  %v6755_v50 = vadd.f32 %v5102_v44, %v1763_v1  ;;  %v7078_v44 = vld [vmem:[#allocation4_spill] sm:$0xff] }
 0x194   : > { %v5053_v18 = vpop.f32.mrf.mxu1  ;;  %v5109_v8 = vpop.f32.mrf.mxu0 }
 0x195   : > { %v1766_v4 = vadd.f32 %v5053_v18, %v6633_v62  ;;  %v6758_v45 = vadd.f32 %v2163_v37, %v1761_v12 }
 0x196   : > { %v1705_v24 = vpop.f32.mrf.mxu1  ;;  %v2192_v11 = vpop.f32.mrf.mxu0 }
 0x197   : > { %v1764_v61 = vadd.f32 %v1705_v24, %v6637_v0  ;;  %v6761_v2 = vadd.f32 %v5105_v10, %v1766_v4 }
 0x198   : > { %v5054_v14 = vpop.f32.mrf.mxu1  ;;  %v5110_v22 = vpop.f32.mrf.mxu0 }
 0x199   : > { %v1767_v13 = vadd.f32 %v5054_v14, %v7077_v28  ;;  %v6764_v49 = vadd.f32 %v2176_v43, %v1764_v61 }
 0x19a   : > { %v1708_v30 = vpop.f32.mrf.mxu1  ;;  %v2195_v31 = vpop.f32.mrf.mxu0 }
 0x19b   : > { %v1765_v54 = vadd.f32 %v1708_v30, %v7078_v44  ;;  %v6767_v26 = vadd.f32 %v5106_v6, %v1767_v13 }
 0x19c   : > { %v5057_v62 = vpop.f32.mrf.mxu1  ;;  %v5181_v37 = vpop.f32.mrf.mxu0 }
 0x19d   : > { %v1770_v9 = vadd.f32 %v5057_v62, %v7079_v40  ;;  %v6770_v41 = vadd.f32 %v2179_v16, %v1765_v54 }
 0x19e   : > { %v1721_v0 = vpop.f32.mrf.mxu1  ;;  %v2865_v10 = vpop.f32.mrf.mxu0 }
 0x19f   : > { %v1768_v34 = vadd.f32 %v1721_v0, %v6662_v17  ;;  %v6773_v42 = vadd.f32 %v5109_v8, %v1770_v9 }
 0x1a0   : > { %v5058_v43 = vpop.f32.mrf.mxu1  ;;  %v5182_v27 = vpop.f32.mrf.mxu0 }
 0x1a1   : > { %v1771_v1 = vadd.f32 %v5058_v43, %v6667_v38  ;;  %v6776_v19 = vadd.f32 %v2192_v11, %v1768_v34 }
 0x1a2   : > { %v1724_v6 = vpop.f32.mrf.mxu1  ;;  %v2868_v12 = vpop.f32.mrf.mxu0 }
 0x1a3   : > { %v1769_v18 = vadd.f32 %v1724_v6, %v6670_v53  ;;  %v6779_v4 = vadd.f32 %v5110_v22, %v1771_v1 }
 0x1a4   : > { %v5129_v16 = vpop.f32.mrf.mxu1  ;;  %v5185_v24 = vpop.f32.mrf.mxu0 }
 0x1a5   : > { %v2547_v61 = vadd.f32 %v5129_v16, %v6673_v21  ;;  %v6782_v14 = vadd.f32 %v2195_v31, %v1769_v18 }
 0x1a6   : > { %v2402_v17 = vpop.f32.mrf.mxu1  ;;  %v2881_v8 = vpop.f32.mrf.mxu0 }
 0x1a7   : > { %v2545_v28 = vadd.f32 %v2402_v17, %v6678_v35  ;;  %v6785_v13 = vadd.f32 %v5181_v37, %v2547_v61 }
 0x1a8   : > { %v5130_v38 = vpop.f32.mrf.mxu1  ;;  %v5186_v11 = vpop.f32.mrf.mxu0 }
 0x1a9   : > { %v2548_v30 = vadd.f32 %v5130_v38, %v6682_v15  ;;  %v6788_v44 = vadd.f32 %v2865_v10, %v2545_v28 }
 0x1aa   : > { %v2405_v53 = vpop.f32.mrf.mxu1  ;;  %v2884_v22 = vpop.f32.mrf.mxu0 }
 0x1ab   : > { %v2546_v54 = vadd.f32 %v2405_v53, %v6685_v52  ;;  %v6791_v62 = vadd.f32 %v5182_v27, %v2548_v30 }
 0x1ac   : > { %v5133_v21 = vpop.f32.mrf.mxu1  ;;  %v5189_v31 = vpop.f32.mrf.mxu0 }
 0x1ad   : > { %v2551_v40 = vadd.f32 %v5133_v21, %v6688_v60  ;;  %v6794_v9 = vadd.f32 %v2868_v12, %v2546_v54 }
 0x1ae   : > { %v2418_v35 = vpop.f32.mrf.mxu1  ;;  %v2897_v37 = vpop.f32.mrf.mxu0 }
 0x1af   : > { %v2549_v0 = vadd.f32 %v2418_v35, %v6692_v51  ;;  %v6797_v34 = vadd.f32 %v5185_v24, %v2551_v40 }
 0x1b0   : > { %v5134_v15 = vpop.f32.mrf.mxu1  ;;  %v5190_v10 = vpop.f32.mrf.mxu0 }
 0x1b1   : > { %v2552_v43 = vadd.f32 %v5134_v15, %v6695_v47  ;;  %v6800_v1 = vadd.f32 %v2881_v8, %v2549_v0 }
 0x1b2   : > { %v2421_v52 = vpop.f32.mrf.mxu1  ;;  %v2900_v27 = vpop.f32.mrf.mxu0 }
 0x1b3   : > { %v2550_v6 = vadd.f32 %v2421_v52, %v6698_v55  ;;  %v6803_v18 = vadd.f32 %v5186_v11, %v2552_v43 }
 0x1b4   : > { %v5137_v60 = vpop.f32.mrf.mxu1  ;;  %v5193_v12 = vpop.f32.mrf.mxu0 }
 0x1b5   : > { %v2555_v16 = vadd.f32 %v5137_v60, %v6701_v20  ;;  %v6806_v61 = vadd.f32 %v2884_v22, %v2550_v6 }
 0x1b6   : > { %v2434_v51 = vpop.f32.mrf.mxu1  ;;  %v2913_v24 = vpop.f32.mrf.mxu0 }
 0x1b7   : > { %v2553_v17 = vadd.f32 %v2434_v51, %v6704_v7  ;;  %v6809_v28 = vadd.f32 %v5189_v31, %v2555_v16 }
 0x1b8   : > { %v5138_v47 = vpop.f32.mrf.mxu1  ;;  %v5194_v8 = vpop.f32.mrf.mxu0 }
 0x1b9   : > { %v2556_v38 = vadd.f32 %v5138_v47, %v6707_v23  ;;  %v6812_v30 = vadd.f32 %v2897_v37, %v2553_v17 }
 0x1ba   : > { %v2437_v55 = vpop.f32.mrf.mxu1  ;;  %v2916_v11 = vpop.f32.mrf.mxu0 }
 0x1bb   : > { %v2554_v53 = vadd.f32 %v2437_v55, %v6710_v48  ;;  %v6815_v54 = vadd.f32 %v5190_v10, %v2556_v38 }
 0x1bc   : > { %v5141_v20 = vpop.f32.mrf.mxu1  ;;  %v5197_v22 = vpop.f32.mrf.mxu0 }
 0x1bd   : > { %v2559_v21 = vadd.f32 %v5141_v20, %v6713_v58  ;;  %v6818_v40 = vadd.f32 %v2900_v27, %v2554_v53 }
 0x1be   : > { %v2450_v7 = vpop.f32.mrf.mxu1  ;;  %v2929_v31 = vpop.f32.mrf.mxu0 }
 0x1bf   : > { %v2557_v35 = vadd.f32 %v2450_v7, %v6716_v36  ;;  %v6821_v0 = vadd.f32 %v5193_v12, %v2559_v21 }
 0x1c0   : > { %v5142_v23 = vpop.f32.mrf.mxu1  ;;  %v5198_v37 = vpop.f32.mrf.mxu0 }
 0x1c1   : > { %v2560_v15 = vadd.f32 %v5142_v23, %v6719_v32  ;;  %v6824_v43 = vadd.f32 %v2913_v24, %v2557_v35 }
 0x1c2   : > { %v2453_v48 = vpop.f32.mrf.mxu1  ;;  %v2932_v10 = vpop.f32.mrf.mxu0 }
 0x1c3   : > { %v2558_v52 = vadd.f32 %v2453_v48, %v6722_v56  ;;  %v6827_v6 = vadd.f32 %v5194_v8, %v2560_v15 }
 0x1c4   : > { %v5145_v58 = vpop.f32.mrf.mxu1  ;;  %v5201_v27 = vpop.f32.mrf.mxu0 }
 0x1c5   : > { %v2563_v60 = vadd.f32 %v5145_v58, %v6725_v25  ;;  %v6830_v16 = vadd.f32 %v2916_v11, %v2558_v52 }
 0x1c6   : > { %v2466_v36 = vpop.f32.mrf.mxu1  ;;  %v2945_v12 = vpop.f32.mrf.mxu0 }
 0x1c7   : > { %v2561_v51 = vadd.f32 %v2466_v36, %v6728_v59  ;;  %v6833_v17 = vadd.f32 %v5197_v22, %v2563_v60 }
 0x1c8   : > { %v5146_v32 = vpop.f32.mrf.mxu1  ;;  %v5202_v24 = vpop.f32.mrf.mxu0 }
 0x1c9   : > { %v2564_v47 = vadd.f32 %v5146_v32, %v6731_v63  ;;  %v6836_v38 = vadd.f32 %v2929_v31, %v2561_v51 }
 0x1ca   : > { %v2469_v56 = vpop.f32.mrf.mxu1  ;;  %v2948_v8 = vpop.f32.mrf.mxu0 }
 0x1cb   : > { %v2562_v55 = vadd.f32 %v2469_v56, %v6734_v46  ;;  %v6839_v53 = vadd.f32 %v5198_v37, %v2564_v47 }
 0x1cc   : > { %v5149_v25 = vpop.f32.mrf.mxu1  ;;  %v5205_v11 = vpop.f32.mrf.mxu0 }
 0x1cd   : > { %v2567_v20 = vadd.f32 %v5149_v25, %v6737_v3  ;;  %v6842_v21 = vadd.f32 %v2932_v10, %v2562_v55 }
 0x1ce   : > { %v2482_v59 = vpop.f32.mrf.mxu1  ;;  %v2961_v22 = vpop.f32.mrf.mxu0 }
 0x1cf   : > { %v2565_v7 = vadd.f32 %v2482_v59, %v6740_v5  ;;  %v6845_v35 = vadd.f32 %v5201_v27, %v2567_v20 }
 0x1d0   : > { %v5150_v63 = vpop.f32.mrf.mxu1  ;;  %v5206_v31 = vpop.f32.mrf.mxu0 }
 0x1d1   : > { %v2568_v23 = vadd.f32 %v5150_v63, %v6743_v33  ;;  %v6848_v15 = vadd.f32 %v2945_v12, %v2565_v7 }
 0x1d2   : > { %v2485_v46 = vpop.f32.mrf.mxu1  ;;  %v2964_v37 = vpop.f32.mrf.mxu0 }
 0x1d3   : > { %v2566_v48 = vadd.f32 %v2485_v46, %v6746_v57  ;;  %v6851_v52 = vadd.f32 %v5202_v24, %v2568_v23 }
 0x1d4   : > { %v5153_v3 = vpop.f32.mrf.mxu1  ;;  %v5209_v10 = vpop.f32.mrf.mxu0 }
 0x1d5   : > { %v2571_v58 = vadd.f32 %v5153_v3, %v6749_v39  ;;  %v6854_v60 = vadd.f32 %v2948_v8, %v2566_v48 }
 0x1d6   : > { %v2498_v5 = vpop.f32.mrf.mxu1  ;;  %v2977_v27 = vpop.f32.mrf.mxu0 }
 0x1d7   : > { %v2569_v36 = vadd.f32 %v2498_v5, %v6752_v29  ;;  %v6857_v51 = vadd.f32 %v5205_v11, %v2571_v58 }
 0x1d8   : > { %v5154_v33 = vpop.f32.mrf.mxu1  ;;  %v5210_v12 = vpop.f32.mrf.mxu0 }
 0x1d9   : > { %v2572_v32 = vadd.f32 %v5154_v33, %v6755_v50  ;;  %v6860_v47 = vadd.f32 %v2961_v22, %v2569_v36 }
 0x1da   : > { %v2501_v57 = vpop.f32.mrf.mxu1  ;;  %v2980_v24 = vpop.f32.mrf.mxu0 }
 0x1db   : > { %v2570_v56 = vadd.f32 %v2501_v57, %v6758_v45  ;;  %v6863_v55 = vadd.f32 %v5206_v31, %v2572_v32 }
 0x1dc   : > { %v5157_v39 = vpop.f32.mrf.mxu1  ;;  %v5213_v8 = vpop.f32.mrf.mxu0 }
 0x1dd   : > { %v2575_v25 = vadd.f32 %v5157_v39, %v6761_v2  ;;  %v6866_v20 = vadd.f32 %v2964_v37, %v2570_v56 }
 0x1de   : > { %v2514_v29 = vpop.f32.mrf.mxu1  ;;  %v2993_v11 = vpop.f32.mrf.mxu0 }
 0x1df   : > { %v2573_v59 = vadd.f32 %v2514_v29, %v6764_v49  ;;  %v6869_v7 = vadd.f32 %v5209_v10, %v2575_v25 }
 0x1e0   : > { %v5158_v50 = vpop.f32.mrf.mxu1  ;;  %v5214_v22 = vpop.f32.mrf.mxu0 }
 0x1e1   : > { %v2576_v63 = vadd.f32 %v5158_v50, %v6767_v26  ;;  %v6872_v23 = vadd.f32 %v2977_v27, %v2573_v59 }
 0x1e2   : > { %v2517_v45 = vpop.f32.mrf.mxu1  ;;  %v2996_v31 = vpop.f32.mrf.mxu0 }
 0x1e3   : > { %v2574_v46 = vadd.f32 %v2517_v45, %v6770_v41  ;;  %v6875_v48 = vadd.f32 %v5210_v12, %v2576_v63 }
 0x1e4   : > { %v5161_v2 = vpop.f32.mrf.mxu1  ;;  %v5285_v37 = vpop.f32.mrf.mxu0 }
 0x1e5   : > { %v2579_v3 = vadd.f32 %v5161_v2, %v6773_v42  ;;  %v6878_v58 = vadd.f32 %v2980_v24, %v2574_v46 }
 0x1e6   : > { %v2530_v49 = vpop.f32.mrf.mxu1  ;;  %v3674_v10 = vpop.f32.mrf.mxu0 }
 0x1e7   : > { %v2577_v5 = vadd.f32 %v2530_v49, %v6776_v19  ;;  %v6881_v36 = vadd.f32 %v5213_v8, %v2579_v3 }
 0x1e8   : > { %v5162_v26 = vpop.f32.mrf.mxu1  ;;  %v5286_v27 = vpop.f32.mrf.mxu0 }
 0x1e9   : > { %v2580_v33 = vadd.f32 %v5162_v26, %v6779_v4  ;;  %v6884_v32 = vadd.f32 %v2993_v11, %v2577_v5  ;;  %v6896_v11 = vld [vmem:[%s6997_s2] ss:$0 sm:$0xff] }
 0x1ea   : > { %v2533_v41 = vpop.f32.mrf.mxu1  ;;  %v3677_v12 = vpop.f32.mrf.mxu0 }
 0x1eb   : > { %v2578_v57 = vadd.f32 %v2533_v41, %v6782_v14  ;;  %v6887_v56 = vadd.f32 %v5214_v22, %v2580_v33 }
 0x1ec   : > { %v5233_v42 = vpop.f32.mrf.mxu1  ;;  %v5289_v24 = vpop.f32.mrf.mxu0 }
 0x1ed   : > { %v3481_v39 = vadd.f32 %v5233_v42, %v6785_v13  ;;  %v6890_v19 = vadd.f32 %v2996_v31, %v2578_v57 }
 0x1ee   : > { %v3336_v8 = vpop.f32.mrf.mxu1  ;;  %v3690_v25 = vpop.f32.mrf.mxu0 }
 0x1ef   : > { %v3819_v29 = vadd.f32 %v5285_v37, %v3481_v39  ;;  %v3479_v4 = vadd.f32 %v3336_v8, %v6788_v44 }
 0x1f0   : > { %v5234_v14 = vpop.f32.mrf.mxu1  ;;  %v5290_v59 = vpop.f32.mrf.mxu0 }
 0x1f1   : > { %v3817_v50 = vadd.f32 %v3674_v10, %v3479_v4  ;;  %v3482_v22 = vadd.f32 %v5234_v14, %v6791_v62  ;;  %v3861_v45 = vadd.f32 %v6896_v11, %v3819_v29 }
 0x1f2   : > { %v3339_v63 = vpop.f32.mrf.mxu1  ;;  %v3693_v13 = vpop.f32.mrf.mxu0 }
 0x1f3   : > { %v3820_v31 = vadd.f32 %v5286_v27, %v3482_v22  ;;  %v3480_v46 = vadd.f32 %v3339_v63, %v6794_v9  ;;  %v3859_v37 = vadd.f32 %v6896_v11, %v3817_v50  ;;  %v3897_v62 = vmax.f32 %v3861_v45, 0.0 }
 0x1f4   : > { %v5237_v2 = vpop.f32.mrf.mxu1  ;;  %v5293_v44 = vpop.f32.mrf.mxu0 }
 0x1f5   : > { %v3862_v3 = vadd.f32 %v6896_v11, %v3820_v31  ;;  %v3818_v49 = vadd.f32 %v3677_v12, %v3480_v46  ;;  %v3485_v5 = vadd.f32 %v5237_v2, %v6797_v34  ;;  %v3895_v42 = vmax.f32 %v3859_v37, 0.0 }
 0x1f6   : > { %v3352_v10 = vpop.f32.mrf.mxu1  ;;  %v3706_v26 = vpop.f32.mrf.mxu0 }
 0x1f7   : > { %v3898_v33 = vmax.f32 %v3862_v3, 0.0  ;;  %v3860_v41 = vadd.f32 %v6896_v11, %v3818_v49  ;;  %v3483_v27 = vadd.f32 %v3352_v10, %v6800_v1  ;;  %v3823_v9 = vadd.f32 %v5289_v24, %v3485_v5 }
 0x1f8   : > { %v5238_v57 = vpop.f32.mrf.mxu1  ;;  %v5294_v12 = vpop.f32.mrf.mxu0 }
 0x1f9   : > { %v4518_v34 = vpack.c.bf16 %v3898_v33, %v3897_v62  ;;  %v3896_v39 = vmax.f32 %v3860_v41, 0.0  ;;  %v3821_v8 = vadd.f32 %v3690_v25, %v3483_v27  ;;  %v3486_v29 = vadd.f32 %v5238_v57, %v6803_v18 }
 0x1fa   : > { %v3355_v4 = vpop.f32.mrf.mxu1  ;;  %v3709_v14 = vpop.f32.mrf.mxu0  ;;  %v3865_v22 = vadd.f32 %v6896_v11, %v3823_v9 }
 0x1fb   : > { %4600 = vst [vmem:[%s6910_s13 + $0x8] sm:$0xff] %v4518_v34   ;;  %v4513_v1 = vpack.c.bf16 %v3896_v39, %v3895_v42  ;;  %v3484_v50 = vadd.f32 %v3355_v4, %v6806_v61  ;;  %v3824_v63 = vadd.f32 %v5290_v59, %v3486_v29  ;;  %v3863_v31 = vadd.f32 %v6896_v11, %v3821_v8 }
 0x1fc   : > { %v5241_v45 = vpop.f32.mrf.mxu1  ;;  %v5297_v24 = vpop.f32.mrf.mxu0  ;;  %v3901_v5 = vmax.f32 %v3865_v22, 0.0 }
 0x1fd   : > { %4514 = vst [vmem:[%s6910_s13] sm:$0xff] %v4513_v1   ;;  %v3822_v46 = vadd.f32 %v3693_v13, %v3484_v50  ;;  %v3489_v2 = vadd.f32 %v5241_v45, %v6809_v28  ;;  %v3866_v25 = vadd.f32 %v6896_v11, %v3824_v63  ;;  %v3899_v33 = vmax.f32 %v3863_v31, 0.0 }
 0x1fe   : > { %v3368_v18 = vpop.f32.mrf.mxu1  ;;  %v3722_v37 = vpop.f32.mrf.mxu0 }
 0x1ff   : > { %v3864_v3 = vadd.f32 %v6896_v11, %v3822_v46  ;;  %v3827_v49 = vadd.f32 %v5293_v44, %v3489_v2  ;;  %v3487_v61 = vadd.f32 %v3368_v18, %v6812_v30  ;;  %v3902_v59 = vmax.f32 %v3866_v25, 0.0 }
 0x200   : > { %v5242_v10 = vpop.f32.mrf.mxu1  ;;  %v5298_v62 = vpop.f32.mrf.mxu0 }
 0x201   : > { %v3900_v41 = vmax.f32 %v3864_v3, 0.0  ;;  %v3490_v13 = vadd.f32 %v5242_v10, %v6815_v54  ;;  %v4528_v28 = vpack.c.bf16 %v3902_v59, %v3901_v5  ;;  %v3825_v27 = vadd.f32 %v3706_v26, %v3487_v61 }
 0x202   : > { %v3371_v9 = vpop.f32.mrf.mxu1  ;;  %v3725_v57 = vpop.f32.mrf.mxu0  ;;  %v3869_v34 = vadd.f32 %v6896_v11, %v3827_v49 }
 0x203   : > { %v4523_v42 = vpack.c.bf16 %v3900_v41, %v3899_v33  ;;  %v3828_v44 = vadd.f32 %v5294_v12, %v3490_v13  ;;  %4602 = vst [vmem:[%s6910_s13 + $0x18] sm:$0xff] %v4528_v28   ;;  %v3488_v30 = vadd.f32 %v3371_v9, %v6818_v40  ;;  %v3867_v54 = vadd.f32 %v6896_v11, %v3825_v27 }
 0x204   : > { %v5245_v39 = vpop.f32.mrf.mxu1  ;;  %v5301_v8 = vpop.f32.mrf.mxu0  ;;  %v3905_v22 = vmax.f32 %v3869_v34, 0.0 }
 0x205   : > { %4601 = vst [vmem:[%s6910_s13 + $0x10] sm:$0xff] %v4523_v42   ;;  %v3870_v29 = vadd.f32 %v6896_v11, %v3828_v44  ;;  %v3493_v4 = vadd.f32 %v5245_v39, %v6821_v0  ;;  %v3826_v1 = vadd.f32 %v3709_v14, %v3488_v30  ;;  %v3903_v0 = vmax.f32 %v3867_v54, 0.0 }
 0x206   : > { %v3384_v26 = vpop.f32.mrf.mxu1  ;;  %v3738_v50 = vpop.f32.mrf.mxu0 }
 0x207   : > { %v3906_v63 = vmax.f32 %v3870_v29, 0.0  ;;  %v3831_v45 = vadd.f32 %v5297_v24, %v3493_v4  ;;  %v3491_v12 = vadd.f32 %v3384_v26, %v6824_v43  ;;  %v3868_v40 = vadd.f32 %v6896_v11, %v3826_v1 }
 0x208   : > { %v5246_v31 = vpop.f32.mrf.mxu1  ;;  %v5302_v46 = vpop.f32.mrf.mxu0 }
 0x209   : > { %v4538_v2 = vpack.c.bf16 %v3906_v63, %v3905_v22  ;;  %v3829_v25 = vadd.f32 %v3722_v37, %v3491_v12  ;;  %v3494_v18 = vadd.f32 %v5246_v31, %v6827_v6  ;;  %v3904_v3 = vmax.f32 %v3868_v40, 0.0 }
 0x20a   : > { %v3387_v14 = vpop.f32.mrf.mxu1  ;;  %v3741_v49 = vpop.f32.mrf.mxu0  ;;  %v3873_v61 = vadd.f32 %v6896_v11, %v3831_v45 }
 0x20b   : > { %4604 = vst [vmem:[%s6910_s13 + $0x28] sm:$0xff] %v4538_v2   ;;  %v3832_v5 = vadd.f32 %v5298_v62, %v3494_v18  ;;  %v3492_v24 = vadd.f32 %v3387_v14, %v6830_v16  ;;  %v4533_v43 = vpack.c.bf16 %v3904_v3, %v3903_v0  ;;  %v3871_v33 = vadd.f32 %v6896_v11, %v3829_v25 }
 0x20c   : > { %v5249_v59 = vpop.f32.mrf.mxu1  ;;  %v5305_v10 = vpop.f32.mrf.mxu0  ;;  %v3909_v27 = vmax.f32 %v3873_v61, 0.0 }
 0x20d   : > { %v3874_v37 = vadd.f32 %v6896_v11, %v3832_v5  ;;  %v3830_v41 = vadd.f32 %v3725_v57, %v3492_v24  ;;  %v3497_v6 = vadd.f32 %v5249_v59, %v6833_v17  ;;  %4603 = vst [vmem:[%s6910_s13 + $0x20] sm:$0xff] %v4533_v43   ;;  %v3907_v30 = vmax.f32 %v3871_v33, 0.0 }
 0x20e   : > { %v3400_v13 = vpop.f32.mrf.mxu1  ;;  %v3754_v28 = vpop.f32.mrf.mxu0 }
 0x20f   : > { %v3910_v9 = vmax.f32 %v3874_v37, 0.0  ;;  %v3872_v62 = vadd.f32 %v6896_v11, %v3830_v41  ;;  %v3495_v16 = vadd.f32 %v3400_v13, %v6836_v38  ;;  %v3835_v42 = vadd.f32 %v5301_v8, %v3497_v6 }
 0x210   : > { %v5250_v34 = vpop.f32.mrf.mxu1  ;;  %v5306_v44 = vpop.f32.mrf.mxu0 }
 0x211   : > { %v4548_v39 = vpack.c.bf16 %v3910_v9, %v3909_v27  ;;  %v3908_v29 = vmax.f32 %v3872_v62, 0.0  ;;  %v3833_v57 = vadd.f32 %v3738_v50, %v3495_v16  ;;  %v3498_v17 = vadd.f32 %v5250_v34, %v6839_v53 }
 0x212   : > { %v3403_v4 = vpop.f32.mrf.mxu1  ;;  %v3757_v54 = vpop.f32.mrf.mxu0  ;;  %v3877_v22 = vadd.f32 %v6896_v11, %v3835_v42 }
 0x213   : > { %4606 = vst [vmem:[%s6910_s13 + $0x38] sm:$0xff] %v4548_v39   ;;  %v4543_v1 = vpack.c.bf16 %v3908_v29, %v3907_v30  ;;  %v3496_v26 = vadd.f32 %v3403_v4, %v6842_v21  ;;  %v3836_v63 = vadd.f32 %v5302_v46, %v3498_v17  ;;  %v3875_v45 = vadd.f32 %v6896_v11, %v3833_v57 }
 0x214   : > { %v5253_v38 = vpop.f32.mrf.mxu1  ;;  %v5309_v8 = vpop.f32.mrf.mxu0  ;;  %v3913_v18 = vmax.f32 %v3877_v22, 0.0 }
 0x215   : > { %4605 = vst [vmem:[%s6910_s13 + $0x30] sm:$0xff] %v4543_v1   ;;  %v3834_v12 = vadd.f32 %v3741_v49, %v3496_v26  ;;  %v3501_v40 = vadd.f32 %v5253_v38, %v6845_v35  ;;  %v3878_v50 = vadd.f32 %v6896_v11, %v3836_v63  ;;  %v3911_v14 = vmax.f32 %v3875_v45, 0.0 }
 0x216   : > { %v3416_v53 = vpop.f32.mrf.mxu1  ;;  %v3770_v31 = vpop.f32.mrf.mxu0 }
 0x217   : > { %v3876_v2 = vadd.f32 %v6896_v11, %v3834_v12  ;;  %v3839_v25 = vadd.f32 %v5305_v10, %v3501_v40  ;;  %v3499_v21 = vadd.f32 %v3416_v53, %v6848_v15  ;;  %v3914_v46 = vmax.f32 %v3878_v50, 0.0 }
 0x218   : > { %v5254_v0 = vpop.f32.mrf.mxu1  ;;  %v5310_v3 = vpop.f32.mrf.mxu0 }
 0x219   : > { %v3912_v61 = vmax.f32 %v3876_v2, 0.0  ;;  %v3502_v49 = vadd.f32 %v5254_v0, %v6851_v52  ;;  %v4558_v35 = vpack.c.bf16 %v3914_v46, %v3913_v18  ;;  %v3837_v5 = vadd.f32 %v3754_v28, %v3499_v21 }
 0x21a   : > { %v3419_v24 = vpop.f32.mrf.mxu1  ;;  %v3773_v43 = vpop.f32.mrf.mxu0  ;;  %v3881_v33 = vadd.f32 %v6896_v11, %v3839_v25 }
 0x21b   : > { %v4553_v59 = vpack.c.bf16 %v3912_v61, %v3911_v14  ;;  %v3840_v10 = vadd.f32 %v5306_v44, %v3502_v49  ;;  %4608 = vst [vmem:[%s6910_s13 + $0x48] sm:$0xff] %v4558_v35   ;;  %v3500_v15 = vadd.f32 %v3419_v24, %v6854_v60  ;;  %v3879_v52 = vadd.f32 %v6896_v11, %v3837_v5 }
 0x21c   : > { %v5257_v37 = vpop.f32.mrf.mxu1  ;;  %v5313_v41 = vpop.f32.mrf.mxu0  ;;  %v3917_v62 = vmax.f32 %v3881_v33, 0.0 }
 0x21d   : > { %4607 = vst [vmem:[%s6910_s13 + $0x40] sm:$0xff] %v4553_v59   ;;  %v3882_v6 = vadd.f32 %v6896_v11, %v3840_v10  ;;  %v3505_v13 = vadd.f32 %v5257_v37, %v6857_v51  ;;  %v3838_v27 = vadd.f32 %v3757_v54, %v3500_v15  ;;  %v3915_v57 = vmax.f32 %v3879_v52, 0.0 }
 0x21e   : > { %v3432_v28 = vpop.f32.mrf.mxu1  ;;  %v3786_v9 = vpop.f32.mrf.mxu0 }
 0x21f   : > { %v3918_v16 = vmax.f32 %v3882_v6, 0.0  ;;  %v3843_v42 = vadd.f32 %v5309_v8, %v3505_v13  ;;  %v3503_v34 = vadd.f32 %v3432_v28, %v6860_v47  ;;  %v3880_v60 = vadd.f32 %v6896_v11, %v3838_v27 }
 0x220   : > { %v5258_v44 = vpop.f32.mrf.mxu1  ;;  %v5314_v51 = vpop.f32.mrf.mxu0 }
 0x221   : > { %v4568_v30 = vpack.c.bf16 %v3918_v16, %v3917_v62  ;;  %v3841_v39 = vadd.f32 %v3770_v31, %v3503_v34  ;;  %v3506_v29 = vadd.f32 %v5258_v44, %v6863_v55  ;;  %v3916_v17 = vmax.f32 %v3880_v60, 0.0 }
 0x222   : > { %v3435_v4 = vpop.f32.mrf.mxu1  ;;  %v3885_v54 = vadd.f32 %v6896_v11, %v3843_v42  ;;  %v3789_v45 = vpop.f32.mrf.mxu0 }
 0x223   : > { %4610 = vst [vmem:[%s6910_s13 + $0x58] sm:$0xff] %v4568_v30   ;;  %v3844_v1 = vadd.f32 %v5310_v3, %v3506_v29  ;;  %v3504_v26 = vadd.f32 %v3435_v4, %v6866_v20  ;;  %v4563_v22 = vpack.c.bf16 %v3916_v17, %v3915_v57  ;;  %v3883_v63 = vadd.f32 %v6896_v11, %v3841_v39 }
 0x224   : > { %v5261_v47 = vpop.f32.mrf.mxu1  ;;  %v3921_v40 = vmax.f32 %v3885_v54, 0.0  ;;  %v5317_v0 = vpop.f32.mrf.mxu0 }
 0x225   : > { %v3886_v38 = vadd.f32 %v6896_v11, %v3844_v1  ;;  %v3842_v8 = vadd.f32 %v3773_v43, %v3504_v26  ;;  %v3509_v55 = vadd.f32 %v5261_v47, %v6869_v7  ;;  %4609 = vst [vmem:[%s6910_s13 + $0x50] sm:$0xff] %v4563_v22   ;;  %v3919_v25 = vmax.f32 %v3883_v63, 0.0 }
 0x226   : > { %v3448_v12 = vpop.f32.mrf.mxu1  ;;  %v3802_v43 = vpop.f32.mrf.mxu0 }
 0x227   : > { %v3922_v50 = vmax.f32 %v3886_v38, 0.0  ;;  %v3884_v53 = vadd.f32 %v6896_v11, %v3842_v8  ;;  %v3507_v31 = vadd.f32 %v3448_v12, %v6872_v23  ;;  %v3847_v20 = vadd.f32 %v5313_v41, %v3509_v55 }
 0x228   : > { %v5262_v2 = vpop.f32.mrf.mxu1  ;;  %v5318_v27 = vpop.f32.mrf.mxu0 }
 0x229   : > { %v4578_v21 = vpack.c.bf16 %v3922_v50, %v3921_v40  ;;  %v3920_v18 = vmax.f32 %v3884_v53, 0.0  ;;  %v3845_v46 = vadd.f32 %v3786_v9, %v3507_v31  ;;  %v3510_v7 = vadd.f32 %v5262_v2, %v6875_v48 }
 0x22a   : > { %v3451_v3 = vpop.f32.mrf.mxu1  ;;  %v3889_v49 = vadd.f32 %v6896_v11, %v3847_v20  ;;  %v3805_v60 = vpop.f32.mrf.mxu0 }
 0x22b   : > { %4612 = vst [vmem:[%s6910_s13 + $0x68] sm:$0xff] %v4578_v21   ;;  %v4573_v14 = vpack.c.bf16 %v3920_v18, %v3919_v25  ;;  %v3508_v61 = vadd.f32 %v3451_v3, %v6878_v58  ;;  %v3848_v35 = vadd.f32 %v5314_v51, %v3510_v7  ;;  %v3887_v23 = vadd.f32 %v6896_v11, %v3845_v46 }
 0x22c   : > { %v5265_v5 = vpop.f32.mrf.mxu1  ;;  %v3925_v37 = vmax.f32 %v3889_v49, 0.0 }
 0x22d   : > { %4611 = vst [vmem:[%s6910_s13 + $0x60] sm:$0xff] %v4573_v14   ;;  %v3846_v24 = vadd.f32 %v3789_v45, %v3508_v61  ;;  %v3513_v59 = vadd.f32 %v5265_v5, %v6881_v36  ;;  %v3890_v33 = vadd.f32 %v6896_v11, %v3848_v35  ;;  %v3923_v13 = vmax.f32 %v3887_v23, 0.0 }
 0x22e   : > { %v3464_v10 = vpop.f32.mrf.mxu1 }
 0x22f   : > { %v3888_v48 = vadd.f32 %v6896_v11, %v3846_v24  ;;  %v3851_v15 = vadd.f32 %v5317_v0, %v3513_v59  ;;  %v3511_v58 = vadd.f32 %v3464_v10, %v6884_v32  ;;  %v3926_v41 = vmax.f32 %v3890_v33, 0.0 }
 0x230   : > { %v5266_v6 = vpop.f32.mrf.mxu1 }
 0x231   : > { %v3924_v52 = vmax.f32 %v3888_v48, 0.0  ;;  %v3514_v28 = vadd.f32 %v5266_v6, %v6887_v56  ;;  %v4588_v9 = vpack.c.bf16 %v3926_v41, %v3925_v37  ;;  %v3849_v36 = vadd.f32 %v3802_v43, %v3511_v58 }
 0x232   : > { %v3467_v62 = vpop.f32.mrf.mxu1  ;;  %v3893_v42 = vadd.f32 %v6896_v11, %v3851_v15 }
 0x233   : > { %v4583_v16 = vpack.c.bf16 %v3924_v52, %v3923_v13  ;;  %v3852_v34 = vadd.f32 %v5318_v27, %v3514_v28  ;;  %4614 = vst [vmem:[%s6910_s13 + $0x78] sm:$0xff] %v4588_v9   ;;  %v3512_v32 = vadd.f32 %v3467_v62, %v6890_v19  ;;  %v3891_v30 = vadd.f32 %v6896_v11, %v3849_v36 }
 0x234   : > { %v3929_v56 = vmax.f32 %v3893_v42, 0.0 }
 0x235   : > { %4613 = vst [vmem:[%s6910_s13 + $0x70] sm:$0xff] %v4583_v16   ;;  %v3894_v44 = vadd.f32 %v6896_v11, %v3852_v34  ;;  %v3850_v39 = vadd.f32 %v3805_v60, %v3512_v32  ;;  %v3927_v17 = vmax.f32 %v3891_v30, 0.0 }
 0x237   : > { %v3930_v29 = vmax.f32 %v3894_v44, 0.0  ;;  %v3892_v51 = vadd.f32 %v6896_v11, %v3850_v39 }
 0x239   : > { %v4598_v57 = vpack.c.bf16 %v3930_v29, %v3929_v56  ;;  %v3928_v4 = vmax.f32 %v3892_v51, 0.0 }
 0x23b   : > { %4616 = vst [vmem:[%s6910_s13 + $0x88] sm:$0xff] %v4598_v57   ;;  %v4593_v54 = vpack.c.bf16 %v3928_v4, %v3927_v17 }
 0x23d   : > { %4615 = vst [vmem:[%s6910_s13 + $0x80] sm:$0xff] %v4593_v54  }
 0x23e PF: > { %s13_s12 = sadd.s32 1, %s5485_s12  }
 0x23f   : > { %p10_p4 = scmp.ge.s32.totalorder %s13_s12, 4  }
 0x241   :  { %12 = sbr.rel (!%p10_p4) target bundleno = 1 (0x1), region = 70 }

</bundles_post_ra>
